<compile_context>
chip_gen: v7x
topology: tpu7x:2x2x1
jax: 0.10.0
libtpu: 0.0.40
codegen_flags: <defaults>
</compile_context>

<pallas_src>
import jax
import jax.numpy as jnp
from jax.experimental import pallas as pl
from jax.experimental.pallas import tpu as pltpu

NEG_SLOPE = 0.01   # nn.LeakyReLU default
EPS = 1e-5         # nn.InstanceNorm3d default (affine=False)


def _round_up(x, m):
    return ((x + m - 1) // m) * m


# --------------------------- fused UnetConv3D kernel -------------------------

def _make_fused_kernel(cin, cout, hp, wp, do, ho, wo, q1p, hp2, wp2, q2p, l2p):
    hpwp = hp * wp
    h2w2 = hp2 * wp2
    inv_cnt = 1.0 / float(do * ho * wo)   # both convs have (do, ho, wo) outputs

    def kernel(x_ref, w1_ref, b1_ref, w2_ref, b2_ref, m1_ref, m2_ref, o_ref,
               y1_scr, buf2_scr, y2_scr):
        # ---- conv1 (k3, stride 2, pad 1): 27 shifted-slice bf16 matmuls ----
        acc = jnp.zeros((cout, q1p), jnp.float32)
        for kd in range(3):
            for kh in range(3):
                for kw in range(3):
                    tap = kd * 9 + kh * 3 + kw
                    ofs = kd * hpwp + kh * wp + kw
                    par, m = ofs % 2, ofs // 2
                    slab = x_ref[0, par * cin:(par + 1) * cin, m:m + q1p]
                    acc = acc + jnp.dot(w1_ref[tap], slab,
                                        preferred_element_type=jnp.float32)
        acc = acc + b1_ref[...]

        # ---- InstanceNorm3d (affine=False) + LeakyReLU over valid lanes ----
        m1 = m1_ref[...]
        mean = jnp.sum(acc * m1, axis=-1, keepdims=True) * inv_cnt
        cen = (acc - mean) * m1
        var = jnp.sum(cen * cen, axis=-1, keepdims=True) * inv_cnt
        y1 = cen * jax.lax.rsqrt(var + EPS)
        y1_scr[...] = jnp.where(y1 >= 0, y1, NEG_SLOPE * y1)

        # ---- relayout: conv1 output -> conv2 zero-padded flat input (VMEM) ----
        buf2_scr[...] = jnp.zeros((cout, l2p), jnp.float32)
        for od in range(do):
            for oh in range(ho):
                src = od * hpwp + oh * wp
                dst = (od + 1) * h2w2 + (oh + 1) * wp2 + 1
                buf2_scr[:, dst:dst + wo] = y1_scr[:, src:src + wo]

        # ---- conv2 (k3, stride 1, pad 1): 27 shifted-slice bf16 matmuls ----
        acc2 = jnp.zeros((cout, q2p), jnp.float32)
        for kd in range(3):
            for kh in range(3):
                for kw in range(3):
                    tap = kd * 9 + kh * 3 + kw
                    ofs2 = kd * h2w2 + kh * wp2 + kw
                    slab2 = buf2_scr[:, ofs2:ofs2 + q2p].astype(jnp.bfloat16)
                    acc2 = acc2 + jnp.dot(w2_ref[tap], slab2,
                                          preferred_element_type=jnp.float32)
        acc2 = acc2 + b2_ref[...]

        m2 = m2_ref[...]
        mean2 = jnp.sum(acc2 * m2, axis=-1, keepdims=True) * inv_cnt
        cen2 = (acc2 - mean2) * m2
        var2 = jnp.sum(cen2 * cen2, axis=-1, keepdims=True) * inv_cnt
        y2 = cen2 * jax.lax.rsqrt(var2 + EPS)
        y2_scr[...] = jnp.where(y2 >= 0, y2, NEG_SLOPE * y2)

        # ---- compact valid voxels into the dense (cout, do*ho*wo) output ----
        for od in range(do):
            for oh in range(ho):
                src = od * h2w2 + oh * wp2
                dst = od * ho * wo + oh * wo
                o_ref[0, :, dst:dst + wo] = y2_scr[:, src:src + wo]

    return kernel


def unet_conv3d_fused(x, w1, b1, w2, b2):
    """UnetConv3D forward (conv->IN->LReLU twice) as one fused Pallas kernel.

    x: (N, Cin, D, H, W) f32; w1: (Cout, Cin, 3,3,3); w2: (Cout, Cout, 3,3,3).
    """
    n, cin, d, h, w = x.shape
    cout = w1.shape[0]

    # conv1 geometry (k3, stride 2, pad 1)
    dp, hp, wp = d + 2, h + 2, w + 2
    do, ho, wo = (d - 1) // 2 + 1, (h - 1) // 2 + 1, (w - 1) // 2 + 1
    q1 = (do - 1) * hp * wp + (ho - 1) * wp + wo
    q1p = _round_up(q1, 128)
    max_m1 = hp * wp + wp + 1                       # max tap offset // 2
    lh = _round_up(max(-(-(dp * hp * wp) // 2), max_m1 + q1p), 128)

    # conv2 geometry (k3, stride 1, pad 1) on the (do, ho, wo) volume
    hp2, wp2 = ho + 2, wo + 2
    q2 = (do - 1) * hp2 * wp2 + (ho - 1) * wp2 + wo
    q2p = _round_up(q2, 128)
    l2p = _round_up(2 * hp2 * wp2 + 2 * wp2 + 2 + q2p, 128)
    dhw2 = do * ho * wo

    # --- flatten padded input over spatial, even/odd flat-parity split, bf16 ---
    xp = jnp.pad(x, ((0, 0), (0, 0), (1, 1), (1, 1), (1, 1)))
    xf = xp.reshape(n, cin, dp * hp * wp)
    xf = jnp.pad(xf, ((0, 0), (0, 0), (0, 2 * lh - dp * hp * wp)))
    xpar = xf.reshape(n, cin, lh, 2).transpose(0, 3, 1, 2).reshape(n, 2 * cin, lh)
    xpar = xpar.astype(jnp.bfloat16)

    # --- per-tap weight slices (27, cout, cin) bf16; biases (cout, 1) f32 ---
    w1t = jnp.transpose(w1, (2, 3, 4, 0, 1)).reshape(27, cout, cin).astype(jnp.bfloat16)
    w2t = jnp.transpose(w2, (2, 3, 4, 0, 1)).reshape(27, cout, cout).astype(jnp.bfloat16)
    b1c = b1.reshape(cout, 1).astype(jnp.float32)
    b2c = b2.reshape(cout, 1).astype(jnp.float32)

    # --- lane masks selecting the valid output voxels of each conv ---
    def valid_mask(qp, wpad, hpad):
        q = jnp.arange(qp, dtype=jnp.int32)
        ow = q % wpad
        oh = (q // wpad) % hpad
        od = q // (wpad * hpad)
        m = (ow < wo) & (oh < ho) & (od < do)
        return m.astype(jnp.float32).reshape(1, qp)

    mask1 = valid_mask(q1p, wp, hp)
    mask2 = valid_mask(q2p, wp2, hp2)

    kernel = _make_fused_kernel(cin, cout, hp, wp, do, ho, wo, q1p,
                                hp2, wp2, q2p, l2p)

    out = pl.pallas_call(
        kernel,
        out_shape=jax.ShapeDtypeStruct((n, cout, dhw2), jnp.float32),
        grid=(n,),
        in_specs=[
            pl.BlockSpec((1, 2 * cin, lh), lambda i: (i, 0, 0)),
            pl.BlockSpec((27, cout, cin), lambda i: (0, 0, 0)),
            pl.BlockSpec((cout, 1), lambda i: (0, 0)),
            pl.BlockSpec((27, cout, cout), lambda i: (0, 0, 0)),
            pl.BlockSpec((cout, 1), lambda i: (0, 0)),
            pl.BlockSpec((1, q1p), lambda i: (0, 0)),
            pl.BlockSpec((1, q2p), lambda i: (0, 0)),
        ],
        out_specs=pl.BlockSpec((1, cout, dhw2), lambda i: (i, 0, 0)),
        scratch_shapes=[
            pltpu.VMEM((cout, q1p), jnp.float32),   # conv1 post-IN/LReLU result
            pltpu.VMEM((cout, l2p), jnp.float32),   # conv2 zero-padded flat input
            pltpu.VMEM((cout, q2p), jnp.float32),   # conv2 post-IN/LReLU result
        ],
        compiler_params=pltpu.CompilerParams(dimension_semantics=("parallel",)),
    )(xpar, w1t, b1c, w2t, b2c, mask1, mask2)

    return out.reshape(n, cout, do, ho, wo)


# ------- trilinear 2x upsample (align_corners=False), gather-free glue -------

def _upsample2x_axis(x, axis):
    ln = x.shape[axis]

    def sl(lo, hi):
        idx = [slice(None)] * x.ndim
        idx[axis] = slice(lo, hi)
        return x[tuple(idx)]

    left = jnp.concatenate([sl(0, 1), sl(0, ln - 1)], axis=axis)    # x[max(i-1,0)]
    right = jnp.concatenate([sl(1, ln), sl(ln - 1, ln)], axis=axis)  # x[min(i+1,n-1)]
    even = 0.75 * x + 0.25 * left
    odd = 0.75 * x + 0.25 * right
    y = jnp.stack([even, odd], axis=axis + 1)
    shp = list(x.shape)
    shp[axis] = 2 * ln
    return y.reshape(shp)


def trilinear_upsample2x(x):
    # nn.Upsample(scale_factor=(2,2,2), mode='trilinear') defaults
    for ax in (2, 3, 4):
        x = _upsample2x_axis(x, ax)
    return x


# -------------- UnetUpscale3D forward (is_deconv = False branch) -------------

def init_params(key, in_size, out_size):
    k1, k2, k3, k4 = jax.random.split(key, 4)
    cin1 = in_size + out_size
    return {
        "w1": 0.1 * jax.random.normal(k1, (out_size, cin1, 3, 3, 3), jnp.float32),
        "b1": 0.1 * jax.random.normal(k2, (out_size,), jnp.float32),
        "w2": 0.1 * jax.random.normal(k3, (out_size, out_size, 3, 3, 3), jnp.float32),
        "b2": 0.1 * jax.random.normal(k4, (out_size,), jnp.float32),
    }


@jax.jit
def unet_upscale3d(params, inputs1, inputs2):
    outputs2 = trilinear_upsample2x(inputs2)
    offset = outputs2.shape[2] - inputs1.shape[2]
    o2 = offset // 2
    outputs1 = jnp.pad(inputs1, ((0, 0), (0, 0), (o2, o2), (o2, o2), (o2, o2)))
    x = jnp.concatenate([outputs1, outputs2], axis=1)
    return unet_conv3d_fused(x, params["w1"], params["b1"],
                             params["w2"], params["b2"])


# -------------------------- pure-JAX reference (f32) -------------------------

def _conv3d_ref(x, w, b, stride):
    out = jax.lax.conv_general_dilated(
        x, w, window_strides=(stride,) * 3, padding=[(1, 1)] * 3,
        dimension_numbers=("NCDHW", "OIDHW", "NCDHW"))
    return out + b.reshape(1, -1, 1, 1, 1)


def _inorm_lrelu_ref(x):
    mean = jnp.mean(x, axis=(2, 3, 4), keepdims=True)
    var = jnp.mean((x - mean) ** 2, axis=(2, 3, 4), keepdims=True)
    y = (x - mean) * jax.lax.rsqrt(var + EPS)
    return jnp.where(y >= 0, y, NEG_SLOPE * y)


def _forward_ref(params, inputs1, inputs2):
    outputs2 = trilinear_upsample2x(inputs2)
    offset = outputs2.shape[2] - inputs1.shape[2]
    o2 = offset // 2
    outputs1 = jnp.pad(inputs1, ((0, 0), (0, 0), (o2, o2), (o2, o2), (o2, o2)))
    x = jnp.concatenate([outputs1, outputs2], axis=1)
    y = _inorm_lrelu_ref(_conv3d_ref(x, params["w1"], params["b1"], 2))
    y = _inorm_lrelu_ref(_conv3d_ref(y, params["w2"], params["b2"], 1))
    return y


if __name__ == "__main__":
    in_size, out_size = 8, 4
    key = jax.random.PRNGKey(0)
    kp, k1, k2 = jax.random.split(key, 3)
    params = init_params(kp, in_size, out_size)
    inputs2 = jax.random.normal(k1, (2, in_size, 4, 4, 4), jnp.float32)    # deep features
    inputs1 = jax.random.normal(k2, (2, out_size, 8, 8, 8), jnp.float32)   # skip connection

    out = unet_upscale3d(params, inputs1, inputs2)
    jax.block_until_ready(out)

    assert out.shape == (2, out_size, 4, 4, 4), out.shape
    assert bool(jnp.all(jnp.isfinite(out)))

    ref = _forward_ref(params, inputs1, inputs2)
    err = float(jnp.max(jnp.abs(out - ref)))
    assert err < 1e-1, f"max |kernel - reference| = {err}"

    print("KERNEL_OK")
</pallas_src>

<mosaic_0001>
module attributes {stable_mosaic.version = 11 : i64} {
  func.func @kernel(%arg0: i32, %arg1: memref<1x24x512xbf16, #tpu.memory_space<vmem>>, %arg2: memref<27x4x12xbf16, #tpu.memory_space<vmem>>, %arg3: memref<4x1xf32, #tpu.memory_space<vmem>>, %arg4: memref<27x4x4xbf16, #tpu.memory_space<vmem>>, %arg5: memref<4x1xf32, #tpu.memory_space<vmem>>, %arg6: memref<1x384xf32, #tpu.memory_space<vmem>>, %arg7: memref<1x256xf32, #tpu.memory_space<vmem>>, %arg8: memref<1x4x64xf32, #tpu.memory_space<vmem>>, %arg9: memref<4x384xf32, #tpu.memory_space<vmem>>, %arg10: memref<4x384xf32, #tpu.memory_space<vmem>>, %arg11: memref<4x256xf32, #tpu.memory_space<vmem>>) attributes {dimension_semantics = [#tpu.dimension_semantics<parallel>], iteration_bounds = array<i64: 2>, scalar_prefetch = 0 : i64, scratch_operands = 3 : i64, tpu.core_type = #tpu.core_type<tc>, window_params = [{transform_indices = @transform_0, window_bounds = array<i64: 1, 24, 512>}, {pipeline_mode = #tpu.pipeline_mode<synchronous>, transform_indices = @transform_1, window_bounds = array<i64: 27, 4, 12>}, {pipeline_mode = #tpu.pipeline_mode<synchronous>, transform_indices = @transform_2, window_bounds = array<i64: 4, 1>}, {pipeline_mode = #tpu.pipeline_mode<synchronous>, transform_indices = @transform_3, window_bounds = array<i64: 27, 4, 4>}, {pipeline_mode = #tpu.pipeline_mode<synchronous>, transform_indices = @transform_4, window_bounds = array<i64: 4, 1>}, {pipeline_mode = #tpu.pipeline_mode<synchronous>, transform_indices = @transform_5, window_bounds = array<i64: 1, 384>}, {pipeline_mode = #tpu.pipeline_mode<synchronous>, transform_indices = @transform_6, window_bounds = array<i64: 1, 256>}, {transform_indices = @transform_7, window_bounds = array<i64: 1, 4, 64>}]} {
    %cst = arith.constant 0.000000e+00 : f32
    %0 = vector.broadcast %cst : f32 to vector<4x384xf32>
    %c0 = arith.constant 0 : index
    %c0_0 = arith.constant 0 : index
    %c0_1 = arith.constant 0 : index
    %1 = vector.load %arg1[%c0, %c0_0, %c0_1] : memref<1x24x512xbf16, #tpu.memory_space<vmem>>, vector<1x12x384xbf16>
    %2 = vector.shape_cast %1 : vector<1x12x384xbf16> to vector<12x384xbf16>
    %c0_2 = arith.constant 0 : index
    %c0_3 = arith.constant 0 : index
    %c0_4 = arith.constant 0 : index
    %3 = vector.load %arg2[%c0_2, %c0_3, %c0_4] : memref<27x4x12xbf16, #tpu.memory_space<vmem>>, vector<1x4x12xbf16>
    %4 = vector.shape_cast %3 : vector<1x4x12xbf16> to vector<4x12xbf16>
    %cst_5 = arith.constant dense<0.000000e+00> : vector<4x384xf32>
    %5 = tpu.matmul %4, %2, %cst_5 {dimension_numbers = #tpu.dot_dimension_numbers<[1], [0], [0], [1], [0, 0, 1, 1], [], []>} : vector<4x12xbf16>, vector<12x384xbf16>, vector<4x384xf32> -> vector<4x384xf32>
    %6 = arith.addf %0, %5 : vector<4x384xf32>
    %c0_6 = arith.constant 0 : index
    %c12 = arith.constant 12 : index
    %c0_7 = arith.constant 0 : index
    %7 = vector.load %arg1[%c0_6, %c12, %c0_7] : memref<1x24x512xbf16, #tpu.memory_space<vmem>>, vector<1x12x384xbf16>
    %8 = vector.shape_cast %7 : vector<1x12x384xbf16> to vector<12x384xbf16>
    %c1 = arith.constant 1 : index
    %c0_8 = arith.constant 0 : index
    %c0_9 = arith.constant 0 : index
    %9 = vector.load %arg2[%c1, %c0_8, %c0_9] : memref<27x4x12xbf16, #tpu.memory_space<vmem>>, vector<1x4x12xbf16>
    %10 = vector.shape_cast %9 : vector<1x4x12xbf16> to vector<4x12xbf16>
    %cst_10 = arith.constant dense<0.000000e+00> : vector<4x384xf32>
    %11 = tpu.matmul %10, %8, %cst_10 {dimension_numbers = #tpu.dot_dimension_numbers<[1], [0], [0], [1], [0, 0, 1, 1], [], []>} : vector<4x12xbf16>, vector<12x384xbf16>, vector<4x384xf32> -> vector<4x384xf32>
    %12 = arith.addf %6, %11 : vector<4x384xf32>
    %c0_11 = arith.constant 0 : index
    %c0_12 = arith.constant 0 : index
    %c1_13 = arith.constant 1 : index
    %13 = vector.load %arg1[%c0_11, %c0_12, %c1_13] : memref<1x24x512xbf16, #tpu.memory_space<vmem>>, vector<1x12x384xbf16>
    %14 = vector.shape_cast %13 : vector<1x12x384xbf16> to vector<12x384xbf16>
    %c2 = arith.constant 2 : index
    %c0_14 = arith.constant 0 : index
    %c0_15 = arith.constant 0 : index
    %15 = vector.load %arg2[%c2, %c0_14, %c0_15] : memref<27x4x12xbf16, #tpu.memory_space<vmem>>, vector<1x4x12xbf16>
    %16 = vector.shape_cast %15 : vector<1x4x12xbf16> to vector<4x12xbf16>
    %cst_16 = arith.constant dense<0.000000e+00> : vector<4x384xf32>
    %17 = tpu.matmul %16, %14, %cst_16 {dimension_numbers = #tpu.dot_dimension_numbers<[1], [0], [0], [1], [0, 0, 1, 1], [], []>} : vector<4x12xbf16>, vector<12x384xbf16>, vector<4x384xf32> -> vector<4x384xf32>
    %18 = arith.addf %12, %17 : vector<4x384xf32>
    %c0_17 = arith.constant 0 : index
    %c0_18 = arith.constant 0 : index
    %c5 = arith.constant 5 : index
    %19 = vector.load %arg1[%c0_17, %c0_18, %c5] : memref<1x24x512xbf16, #tpu.memory_space<vmem>>, vector<1x12x384xbf16>
    %20 = vector.shape_cast %19 : vector<1x12x384xbf16> to vector<12x384xbf16>
    %c3 = arith.constant 3 : index
    %c0_19 = arith.constant 0 : index
    %c0_20 = arith.constant 0 : index
    %21 = vector.load %arg2[%c3, %c0_19, %c0_20] : memref<27x4x12xbf16, #tpu.memory_space<vmem>>, vector<1x4x12xbf16>
    %22 = vector.shape_cast %21 : vector<1x4x12xbf16> to vector<4x12xbf16>
    %cst_21 = arith.constant dense<0.000000e+00> : vector<4x384xf32>
    %23 = tpu.matmul %22, %20, %cst_21 {dimension_numbers = #tpu.dot_dimension_numbers<[1], [0], [0], [1], [0, 0, 1, 1], [], []>} : vector<4x12xbf16>, vector<12x384xbf16>, vector<4x384xf32> -> vector<4x384xf32>
    %24 = arith.addf %18, %23 : vector<4x384xf32>
    %c0_22 = arith.constant 0 : index
    %c12_23 = arith.constant 12 : index
    %c5_24 = arith.constant 5 : index
    %25 = vector.load %arg1[%c0_22, %c12_23, %c5_24] : memref<1x24x512xbf16, #tpu.memory_space<vmem>>, vector<1x12x384xbf16>
    %26 = vector.shape_cast %25 : vector<1x12x384xbf16> to vector<12x384xbf16>
    %c4 = arith.constant 4 : index
    %c0_25 = arith.constant 0 : index
    %c0_26 = arith.constant 0 : index
    %27 = vector.load %arg2[%c4, %c0_25, %c0_26] : memref<27x4x12xbf16, #tpu.memory_space<vmem>>, vector<1x4x12xbf16>
    %28 = vector.shape_cast %27 : vector<1x4x12xbf16> to vector<4x12xbf16>
    %cst_27 = arith.constant dense<0.000000e+00> : vector<4x384xf32>
    %29 = tpu.matmul %28, %26, %cst_27 {dimension_numbers = #tpu.dot_dimension_numbers<[1], [0], [0], [1], [0, 0, 1, 1], [], []>} : vector<4x12xbf16>, vector<12x384xbf16>, vector<4x384xf32> -> vector<4x384xf32>
    %30 = arith.addf %24, %29 : vector<4x384xf32>
    %c0_28 = arith.constant 0 : index
    %c0_29 = arith.constant 0 : index
    %c6 = arith.constant 6 : index
    %31 = vector.load %arg1[%c0_28, %c0_29, %c6] : memref<1x24x512xbf16, #tpu.memory_space<vmem>>, vector<1x12x384xbf16>
    %32 = vector.shape_cast %31 : vector<1x12x384xbf16> to vector<12x384xbf16>
    %c5_30 = arith.constant 5 : index
    %c0_31 = arith.constant 0 : index
    %c0_32 = arith.constant 0 : index
    %33 = vector.load %arg2[%c5_30, %c0_31, %c0_32] : memref<27x4x12xbf16, #tpu.memory_space<vmem>>, vector<1x4x12xbf16>
    %34 = vector.shape_cast %33 : vector<1x4x12xbf16> to vector<4x12xbf16>
    %cst_33 = arith.constant dense<0.000000e+00> : vector<4x384xf32>
    %35 = tpu.matmul %34, %32, %cst_33 {dimension_numbers = #tpu.dot_dimension_numbers<[1], [0], [0], [1], [0, 0, 1, 1], [], []>} : vector<4x12xbf16>, vector<12x384xbf16>, vector<4x384xf32> -> vector<4x384xf32>
    %36 = arith.addf %30, %35 : vector<4x384xf32>
    %c0_34 = arith.constant 0 : index
    %c0_35 = arith.constant 0 : index
    %c10 = arith.constant 10 : index
    %37 = vector.load %arg1[%c0_34, %c0_35, %c10] : memref<1x24x512xbf16, #tpu.memory_space<vmem>>, vector<1x12x384xbf16>
    %38 = vector.shape_cast %37 : vector<1x12x384xbf16> to vector<12x384xbf16>
    %c6_36 = arith.constant 6 : index
    %c0_37 = arith.constant 0 : index
    %c0_38 = arith.constant 0 : index
    %39 = vector.load %arg2[%c6_36, %c0_37, %c0_38] : memref<27x4x12xbf16, #tpu.memory_space<vmem>>, vector<1x4x12xbf16>
    %40 = vector.shape_cast %39 : vector<1x4x12xbf16> to vector<4x12xbf16>
    %cst_39 = arith.constant dense<0.000000e+00> : vector<4x384xf32>
    %41 = tpu.matmul %40, %38, %cst_39 {dimension_numbers = #tpu.dot_dimension_numbers<[1], [0], [0], [1], [0, 0, 1, 1], [], []>} : vector<4x12xbf16>, vector<12x384xbf16>, vector<4x384xf32> -> vector<4x384xf32>
    %42 = arith.addf %36, %41 : vector<4x384xf32>
    %c0_40 = arith.constant 0 : index
    %c12_41 = arith.constant 12 : index
    %c10_42 = arith.constant 10 : index
    %43 = vector.load %arg1[%c0_40, %c12_41, %c10_42] : memref<1x24x512xbf16, #tpu.memory_space<vmem>>, vector<1x12x384xbf16>
    %44 = vector.shape_cast %43 : vector<1x12x384xbf16> to vector<12x384xbf16>
    %c7 = arith.constant 7 : index
    %c0_43 = arith.constant 0 : index
    %c0_44 = arith.constant 0 : index
    %45 = vector.load %arg2[%c7, %c0_43, %c0_44] : memref<27x4x12xbf16, #tpu.memory_space<vmem>>, vector<1x4x12xbf16>
    %46 = vector.shape_cast %45 : vector<1x4x12xbf16> to vector<4x12xbf16>
    %cst_45 = arith.constant dense<0.000000e+00> : vector<4x384xf32>
    %47 = tpu.matmul %46, %44, %cst_45 {dimension_numbers = #tpu.dot_dimension_numbers<[1], [0], [0], [1], [0, 0, 1, 1], [], []>} : vector<4x12xbf16>, vector<12x384xbf16>, vector<4x384xf32> -> vector<4x384xf32>
    %48 = arith.addf %42, %47 : vector<4x384xf32>
    %c0_46 = arith.constant 0 : index
    %c0_47 = arith.constant 0 : index
    %c11 = arith.constant 11 : index
    %49 = vector.load %arg1[%c0_46, %c0_47, %c11] : memref<1x24x512xbf16, #tpu.memory_space<vmem>>, vector<1x12x384xbf16>
    %50 = vector.shape_cast %49 : vector<1x12x384xbf16> to vector<12x384xbf16>
    %c8 = arith.constant 8 : index
    %c0_48 = arith.constant 0 : index
    %c0_49 = arith.constant 0 : index
    %51 = vector.load %arg2[%c8, %c0_48, %c0_49] : memref<27x4x12xbf16, #tpu.memory_space<vmem>>, vector<1x4x12xbf16>
    %52 = vector.shape_cast %51 : vector<1x4x12xbf16> to vector<4x12xbf16>
    %cst_50 = arith.constant dense<0.000000e+00> : vector<4x384xf32>
    %53 = tpu.matmul %52, %50, %cst_50 {dimension_numbers = #tpu.dot_dimension_numbers<[1], [0], [0], [1], [0, 0, 1, 1], [], []>} : vector<4x12xbf16>, vector<12x384xbf16>, vector<4x384xf32> -> vector<4x384xf32>
    %54 = arith.addf %48, %53 : vector<4x384xf32>
    %c0_51 = arith.constant 0 : index
    %c0_52 = arith.constant 0 : index
    %c50 = arith.constant 50 : index
    %55 = vector.load %arg1[%c0_51, %c0_52, %c50] : memref<1x24x512xbf16, #tpu.memory_space<vmem>>, vector<1x12x384xbf16>
    %56 = vector.shape_cast %55 : vector<1x12x384xbf16> to vector<12x384xbf16>
    %c9 = arith.constant 9 : index
    %c0_53 = arith.constant 0 : index
    %c0_54 = arith.constant 0 : index
    %57 = vector.load %arg2[%c9, %c0_53, %c0_54] : memref<27x4x12xbf16, #tpu.memory_space<vmem>>, vector<1x4x12xbf16>
    %58 = vector.shape_cast %57 : vector<1x4x12xbf16> to vector<4x12xbf16>
    %cst_55 = arith.constant dense<0.000000e+00> : vector<4x384xf32>
    %59 = tpu.matmul %58, %56, %cst_55 {dimension_numbers = #tpu.dot_dimension_numbers<[1], [0], [0], [1], [0, 0, 1, 1], [], []>} : vector<4x12xbf16>, vector<12x384xbf16>, vector<4x384xf32> -> vector<4x384xf32>
    %60 = arith.addf %54, %59 : vector<4x384xf32>
    %c0_56 = arith.constant 0 : index
    %c12_57 = arith.constant 12 : index
    %c50_58 = arith.constant 50 : index
    %61 = vector.load %arg1[%c0_56, %c12_57, %c50_58] : memref<1x24x512xbf16, #tpu.memory_space<vmem>>, vector<1x12x384xbf16>
    %62 = vector.shape_cast %61 : vector<1x12x384xbf16> to vector<12x384xbf16>
    %c10_59 = arith.constant 10 : index
    %c0_60 = arith.constant 0 : index
    %c0_61 = arith.constant 0 : index
    %63 = vector.load %arg2[%c10_59, %c0_60, %c0_61] : memref<27x4x12xbf16, #tpu.memory_space<vmem>>, vector<1x4x12xbf16>
    %64 = vector.shape_cast %63 : vector<1x4x12xbf16> to vector<4x12xbf16>
    %cst_62 = arith.constant dense<0.000000e+00> : vector<4x384xf32>
    %65 = tpu.matmul %64, %62, %cst_62 {dimension_numbers = #tpu.dot_dimension_numbers<[1], [0], [0], [1], [0, 0, 1, 1], [], []>} : vector<4x12xbf16>, vector<12x384xbf16>, vector<4x384xf32> -> vector<4x384xf32>
    %66 = arith.addf %60, %65 : vector<4x384xf32>
    %c0_63 = arith.constant 0 : index
    %c0_64 = arith.constant 0 : index
    %c51 = arith.constant 51 : index
    %67 = vector.load %arg1[%c0_63, %c0_64, %c51] : memref<1x24x512xbf16, #tpu.memory_space<vmem>>, vector<1x12x384xbf16>
    %68 = vector.shape_cast %67 : vector<1x12x384xbf16> to vector<12x384xbf16>
    %c11_65 = arith.constant 11 : index
    %c0_66 = arith.constant 0 : index
    %c0_67 = arith.constant 0 : index
    %69 = vector.load %arg2[%c11_65, %c0_66, %c0_67] : memref<27x4x12xbf16, #tpu.memory_space<vmem>>, vector<1x4x12xbf16>
    %70 = vector.shape_cast %69 : vector<1x4x12xbf16> to vector<4x12xbf16>
    %cst_68 = arith.constant dense<0.000000e+00> : vector<4x384xf32>
    %71 = tpu.matmul %70, %68, %cst_68 {dimension_numbers = #tpu.dot_dimension_numbers<[1], [0], [0], [1], [0, 0, 1, 1], [], []>} : vector<4x12xbf16>, vector<12x384xbf16>, vector<4x384xf32> -> vector<4x384xf32>
    %72 = arith.addf %66, %71 : vector<4x384xf32>
    %c0_69 = arith.constant 0 : index
    %c0_70 = arith.constant 0 : index
    %c55 = arith.constant 55 : index
    %73 = vector.load %arg1[%c0_69, %c0_70, %c55] : memref<1x24x512xbf16, #tpu.memory_space<vmem>>, vector<1x12x384xbf16>
    %74 = vector.shape_cast %73 : vector<1x12x384xbf16> to vector<12x384xbf16>
    %c12_71 = arith.constant 12 : index
    %c0_72 = arith.constant 0 : index
    %c0_73 = arith.constant 0 : index
    %75 = vector.load %arg2[%c12_71, %c0_72, %c0_73] : memref<27x4x12xbf16, #tpu.memory_space<vmem>>, vector<1x4x12xbf16>
    %76 = vector.shape_cast %75 : vector<1x4x12xbf16> to vector<4x12xbf16>
    %cst_74 = arith.constant dense<0.000000e+00> : vector<4x384xf32>
    %77 = tpu.matmul %76, %74, %cst_74 {dimension_numbers = #tpu.dot_dimension_numbers<[1], [0], [0], [1], [0, 0, 1, 1], [], []>} : vector<4x12xbf16>, vector<12x384xbf16>, vector<4x384xf32> -> vector<4x384xf32>
    %78 = arith.addf %72, %77 : vector<4x384xf32>
    %c0_75 = arith.constant 0 : index
    %c12_76 = arith.constant 12 : index
    %c55_77 = arith.constant 55 : index
    %79 = vector.load %arg1[%c0_75, %c12_76, %c55_77] : memref<1x24x512xbf16, #tpu.memory_space<vmem>>, vector<1x12x384xbf16>
    %80 = vector.shape_cast %79 : vector<1x12x384xbf16> to vector<12x384xbf16>
    %c13 = arith.constant 13 : index
    %c0_78 = arith.constant 0 : index
    %c0_79 = arith.constant 0 : index
    %81 = vector.load %arg2[%c13, %c0_78, %c0_79] : memref<27x4x12xbf16, #tpu.memory_space<vmem>>, vector<1x4x12xbf16>
    %82 = vector.shape_cast %81 : vector<1x4x12xbf16> to vector<4x12xbf16>
    %cst_80 = arith.constant dense<0.000000e+00> : vector<4x384xf32>
    %83 = tpu.matmul %82, %80, %cst_80 {dimension_numbers = #tpu.dot_dimension_numbers<[1], [0], [0], [1], [0, 0, 1, 1], [], []>} : vector<4x12xbf16>, vector<12x384xbf16>, vector<4x384xf32> -> vector<4x384xf32>
    %84 = arith.addf %78, %83 : vector<4x384xf32>
    %c0_81 = arith.constant 0 : index
    %c0_82 = arith.constant 0 : index
    %c56 = arith.constant 56 : index
    %85 = vector.load %arg1[%c0_81, %c0_82, %c56] : memref<1x24x512xbf16, #tpu.memory_space<vmem>>, vector<1x12x384xbf16>
    %86 = vector.shape_cast %85 : vector<1x12x384xbf16> to vector<12x384xbf16>
    %c14 = arith.constant 14 : index
    %c0_83 = arith.constant 0 : index
    %c0_84 = arith.constant 0 : index
    %87 = vector.load %arg2[%c14, %c0_83, %c0_84] : memref<27x4x12xbf16, #tpu.memory_space<vmem>>, vector<1x4x12xbf16>
    %88 = vector.shape_cast %87 : vector<1x4x12xbf16> to vector<4x12xbf16>
    %cst_85 = arith.constant dense<0.000000e+00> : vector<4x384xf32>
    %89 = tpu.matmul %88, %86, %cst_85 {dimension_numbers = #tpu.dot_dimension_numbers<[1], [0], [0], [1], [0, 0, 1, 1], [], []>} : vector<4x12xbf16>, vector<12x384xbf16>, vector<4x384xf32> -> vector<4x384xf32>
    %90 = arith.addf %84, %89 : vector<4x384xf32>
    %c0_86 = arith.constant 0 : index
    %c0_87 = arith.constant 0 : index
    %c60 = arith.constant 60 : index
    %91 = vector.load %arg1[%c0_86, %c0_87, %c60] : memref<1x24x512xbf16, #tpu.memory_space<vmem>>, vector<1x12x384xbf16>
    %92 = vector.shape_cast %91 : vector<1x12x384xbf16> to vector<12x384xbf16>
    %c15 = arith.constant 15 : index
    %c0_88 = arith.constant 0 : index
    %c0_89 = arith.constant 0 : index
    %93 = vector.load %arg2[%c15, %c0_88, %c0_89] : memref<27x4x12xbf16, #tpu.memory_space<vmem>>, vector<1x4x12xbf16>
    %94 = vector.shape_cast %93 : vector<1x4x12xbf16> to vector<4x12xbf16>
    %cst_90 = arith.constant dense<0.000000e+00> : vector<4x384xf32>
    %95 = tpu.matmul %94, %92, %cst_90 {dimension_numbers = #tpu.dot_dimension_numbers<[1], [0], [0], [1], [0, 0, 1, 1], [], []>} : vector<4x12xbf16>, vector<12x384xbf16>, vector<4x384xf32> -> vector<4x384xf32>
    %96 = arith.addf %90, %95 : vector<4x384xf32>
    %c0_91 = arith.constant 0 : index
    %c12_92 = arith.constant 12 : index
    %c60_93 = arith.constant 60 : index
    %97 = vector.load %arg1[%c0_91, %c12_92, %c60_93] : memref<1x24x512xbf16, #tpu.memory_space<vmem>>, vector<1x12x384xbf16>
    %98 = vector.shape_cast %97 : vector<1x12x384xbf16> to vector<12x384xbf16>
    %c16 = arith.constant 16 : index
    %c0_94 = arith.constant 0 : index
    %c0_95 = arith.constant 0 : index
    %99 = vector.load %arg2[%c16, %c0_94, %c0_95] : memref<27x4x12xbf16, #tpu.memory_space<vmem>>, vector<1x4x12xbf16>
    %100 = vector.shape_cast %99 : vector<1x4x12xbf16> to vector<4x12xbf16>
    %cst_96 = arith.constant dense<0.000000e+00> : vector<4x384xf32>
    %101 = tpu.matmul %100, %98, %cst_96 {dimension_numbers = #tpu.dot_dimension_numbers<[1], [0], [0], [1], [0, 0, 1, 1], [], []>} : vector<4x12xbf16>, vector<12x384xbf16>, vector<4x384xf32> -> vector<4x384xf32>
    %102 = arith.addf %96, %101 : vector<4x384xf32>
    %c0_97 = arith.constant 0 : index
    %c0_98 = arith.constant 0 : index
    %c61 = arith.constant 61 : index
    %103 = vector.load %arg1[%c0_97, %c0_98, %c61] : memref<1x24x512xbf16, #tpu.memory_space<vmem>>, vector<1x12x384xbf16>
    %104 = vector.shape_cast %103 : vector<1x12x384xbf16> to vector<12x384xbf16>
    %c17 = arith.constant 17 : index
    %c0_99 = arith.constant 0 : index
    %c0_100 = arith.constant 0 : index
    %105 = vector.load %arg2[%c17, %c0_99, %c0_100] : memref<27x4x12xbf16, #tpu.memory_space<vmem>>, vector<1x4x12xbf16>
    %106 = vector.shape_cast %105 : vector<1x4x12xbf16> to vector<4x12xbf16>
    %cst_101 = arith.constant dense<0.000000e+00> : vector<4x384xf32>
    %107 = tpu.matmul %106, %104, %cst_101 {dimension_numbers = #tpu.dot_dimension_numbers<[1], [0], [0], [1], [0, 0, 1, 1], [], []>} : vector<4x12xbf16>, vector<12x384xbf16>, vector<4x384xf32> -> vector<4x384xf32>
    %108 = arith.addf %102, %107 : vector<4x384xf32>
    %c0_102 = arith.constant 0 : index
    %c0_103 = arith.constant 0 : index
    %c100 = arith.constant 100 : index
    %109 = vector.load %arg1[%c0_102, %c0_103, %c100] : memref<1x24x512xbf16, #tpu.memory_space<vmem>>, vector<1x12x384xbf16>
    %110 = vector.shape_cast %109 : vector<1x12x384xbf16> to vector<12x384xbf16>
    %c18 = arith.constant 18 : index
    %c0_104 = arith.constant 0 : index
    %c0_105 = arith.constant 0 : index
    %111 = vector.load %arg2[%c18, %c0_104, %c0_105] : memref<27x4x12xbf16, #tpu.memory_space<vmem>>, vector<1x4x12xbf16>
    %112 = vector.shape_cast %111 : vector<1x4x12xbf16> to vector<4x12xbf16>
    %cst_106 = arith.constant dense<0.000000e+00> : vector<4x384xf32>
    %113 = tpu.matmul %112, %110, %cst_106 {dimension_numbers = #tpu.dot_dimension_numbers<[1], [0], [0], [1], [0, 0, 1, 1], [], []>} : vector<4x12xbf16>, vector<12x384xbf16>, vector<4x384xf32> -> vector<4x384xf32>
    %114 = arith.addf %108, %113 : vector<4x384xf32>
    %c0_107 = arith.constant 0 : index
    %c12_108 = arith.constant 12 : index
    %c100_109 = arith.constant 100 : index
    %115 = vector.load %arg1[%c0_107, %c12_108, %c100_109] : memref<1x24x512xbf16, #tpu.memory_space<vmem>>, vector<1x12x384xbf16>
    %116 = vector.shape_cast %115 : vector<1x12x384xbf16> to vector<12x384xbf16>
    %c19 = arith.constant 19 : index
    %c0_110 = arith.constant 0 : index
    %c0_111 = arith.constant 0 : index
    %117 = vector.load %arg2[%c19, %c0_110, %c0_111] : memref<27x4x12xbf16, #tpu.memory_space<vmem>>, vector<1x4x12xbf16>
    %118 = vector.shape_cast %117 : vector<1x4x12xbf16> to vector<4x12xbf16>
    %cst_112 = arith.constant dense<0.000000e+00> : vector<4x384xf32>
    %119 = tpu.matmul %118, %116, %cst_112 {dimension_numbers = #tpu.dot_dimension_numbers<[1], [0], [0], [1], [0, 0, 1, 1], [], []>} : vector<4x12xbf16>, vector<12x384xbf16>, vector<4x384xf32> -> vector<4x384xf32>
    %120 = arith.addf %114, %119 : vector<4x384xf32>
    %c0_113 = arith.constant 0 : index
    %c0_114 = arith.constant 0 : index
    %c101 = arith.constant 101 : index
    %121 = vector.load %arg1[%c0_113, %c0_114, %c101] : memref<1x24x512xbf16, #tpu.memory_space<vmem>>, vector<1x12x384xbf16>
    %122 = vector.shape_cast %121 : vector<1x12x384xbf16> to vector<12x384xbf16>
    %c20 = arith.constant 20 : index
    %c0_115 = arith.constant 0 : index
    %c0_116 = arith.constant 0 : index
    %123 = vector.load %arg2[%c20, %c0_115, %c0_116] : memref<27x4x12xbf16, #tpu.memory_space<vmem>>, vector<1x4x12xbf16>
    %124 = vector.shape_cast %123 : vector<1x4x12xbf16> to vector<4x12xbf16>
    %cst_117 = arith.constant dense<0.000000e+00> : vector<4x384xf32>
    %125 = tpu.matmul %124, %122, %cst_117 {dimension_numbers = #tpu.dot_dimension_numbers<[1], [0], [0], [1], [0, 0, 1, 1], [], []>} : vector<4x12xbf16>, vector<12x384xbf16>, vector<4x384xf32> -> vector<4x384xf32>
    %126 = arith.addf %120, %125 : vector<4x384xf32>
    %c0_118 = arith.constant 0 : index
    %c0_119 = arith.constant 0 : index
    %c105 = arith.constant 105 : index
    %127 = vector.load %arg1[%c0_118, %c0_119, %c105] : memref<1x24x512xbf16, #tpu.memory_space<vmem>>, vector<1x12x384xbf16>
    %128 = vector.shape_cast %127 : vector<1x12x384xbf16> to vector<12x384xbf16>
    %c21 = arith.constant 21 : index
    %c0_120 = arith.constant 0 : index
    %c0_121 = arith.constant 0 : index
    %129 = vector.load %arg2[%c21, %c0_120, %c0_121] : memref<27x4x12xbf16, #tpu.memory_space<vmem>>, vector<1x4x12xbf16>
    %130 = vector.shape_cast %129 : vector<1x4x12xbf16> to vector<4x12xbf16>
    %cst_122 = arith.constant dense<0.000000e+00> : vector<4x384xf32>
    %131 = tpu.matmul %130, %128, %cst_122 {dimension_numbers = #tpu.dot_dimension_numbers<[1], [0], [0], [1], [0, 0, 1, 1], [], []>} : vector<4x12xbf16>, vector<12x384xbf16>, vector<4x384xf32> -> vector<4x384xf32>
    %132 = arith.addf %126, %131 : vector<4x384xf32>
    %c0_123 = arith.constant 0 : index
    %c12_124 = arith.constant 12 : index
    %c105_125 = arith.constant 105 : index
    %133 = vector.load %arg1[%c0_123, %c12_124, %c105_125] : memref<1x24x512xbf16, #tpu.memory_space<vmem>>, vector<1x12x384xbf16>
    %134 = vector.shape_cast %133 : vector<1x12x384xbf16> to vector<12x384xbf16>
    %c22 = arith.constant 22 : index
    %c0_126 = arith.constant 0 : index
    %c0_127 = arith.constant 0 : index
    %135 = vector.load %arg2[%c22, %c0_126, %c0_127] : memref<27x4x12xbf16, #tpu.memory_space<vmem>>, vector<1x4x12xbf16>
    %136 = vector.shape_cast %135 : vector<1x4x12xbf16> to vector<4x12xbf16>
    %cst_128 = arith.constant dense<0.000000e+00> : vector<4x384xf32>
    %137 = tpu.matmul %136, %134, %cst_128 {dimension_numbers = #tpu.dot_dimension_numbers<[1], [0], [0], [1], [0, 0, 1, 1], [], []>} : vector<4x12xbf16>, vector<12x384xbf16>, vector<4x384xf32> -> vector<4x384xf32>
    %138 = arith.addf %132, %137 : vector<4x384xf32>
    %c0_129 = arith.constant 0 : index
    %c0_130 = arith.constant 0 : index
    %c106 = arith.constant 106 : index
    %139 = vector.load %arg1[%c0_129, %c0_130, %c106] : memref<1x24x512xbf16, #tpu.memory_space<vmem>>, vector<1x12x384xbf16>
    %140 = vector.shape_cast %139 : vector<1x12x384xbf16> to vector<12x384xbf16>
    %c23 = arith.constant 23 : index
    %c0_131 = arith.constant 0 : index
    %c0_132 = arith.constant 0 : index
    %141 = vector.load %arg2[%c23, %c0_131, %c0_132] : memref<27x4x12xbf16, #tpu.memory_space<vmem>>, vector<1x4x12xbf16>
    %142 = vector.shape_cast %141 : vector<1x4x12xbf16> to vector<4x12xbf16>
    %cst_133 = arith.constant dense<0.000000e+00> : vector<4x384xf32>
    %143 = tpu.matmul %142, %140, %cst_133 {dimension_numbers = #tpu.dot_dimension_numbers<[1], [0], [0], [1], [0, 0, 1, 1], [], []>} : vector<4x12xbf16>, vector<12x384xbf16>, vector<4x384xf32> -> vector<4x384xf32>
    %144 = arith.addf %138, %143 : vector<4x384xf32>
    %c0_134 = arith.constant 0 : index
    %c0_135 = arith.constant 0 : index
    %c110 = arith.constant 110 : index
    %145 = vector.load %arg1[%c0_134, %c0_135, %c110] : memref<1x24x512xbf16, #tpu.memory_space<vmem>>, vector<1x12x384xbf16>
    %146 = vector.shape_cast %145 : vector<1x12x384xbf16> to vector<12x384xbf16>
    %c24 = arith.constant 24 : index
    %c0_136 = arith.constant 0 : index
    %c0_137 = arith.constant 0 : index
    %147 = vector.load %arg2[%c24, %c0_136, %c0_137] : memref<27x4x12xbf16, #tpu.memory_space<vmem>>, vector<1x4x12xbf16>
    %148 = vector.shape_cast %147 : vector<1x4x12xbf16> to vector<4x12xbf16>
    %cst_138 = arith.constant dense<0.000000e+00> : vector<4x384xf32>
    %149 = tpu.matmul %148, %146, %cst_138 {dimension_numbers = #tpu.dot_dimension_numbers<[1], [0], [0], [1], [0, 0, 1, 1], [], []>} : vector<4x12xbf16>, vector<12x384xbf16>, vector<4x384xf32> -> vector<4x384xf32>
    %150 = arith.addf %144, %149 : vector<4x384xf32>
    %c0_139 = arith.constant 0 : index
    %c12_140 = arith.constant 12 : index
    %c110_141 = arith.constant 110 : index
    %151 = vector.load %arg1[%c0_139, %c12_140, %c110_141] : memref<1x24x512xbf16, #tpu.memory_space<vmem>>, vector<1x12x384xbf16>
    %152 = vector.shape_cast %151 : vector<1x12x384xbf16> to vector<12x384xbf16>
    %c25 = arith.constant 25 : index
    %c0_142 = arith.constant 0 : index
    %c0_143 = arith.constant 0 : index
    %153 = vector.load %arg2[%c25, %c0_142, %c0_143] : memref<27x4x12xbf16, #tpu.memory_space<vmem>>, vector<1x4x12xbf16>
    %154 = vector.shape_cast %153 : vector<1x4x12xbf16> to vector<4x12xbf16>
    %cst_144 = arith.constant dense<0.000000e+00> : vector<4x384xf32>
    %155 = tpu.matmul %154, %152, %cst_144 {dimension_numbers = #tpu.dot_dimension_numbers<[1], [0], [0], [1], [0, 0, 1, 1], [], []>} : vector<4x12xbf16>, vector<12x384xbf16>, vector<4x384xf32> -> vector<4x384xf32>
    %156 = arith.addf %150, %155 : vector<4x384xf32>
    %c0_145 = arith.constant 0 : index
    %c0_146 = arith.constant 0 : index
    %c111 = arith.constant 111 : index
    %157 = vector.load %arg1[%c0_145, %c0_146, %c111] : memref<1x24x512xbf16, #tpu.memory_space<vmem>>, vector<1x12x384xbf16>
    %158 = vector.shape_cast %157 : vector<1x12x384xbf16> to vector<12x384xbf16>
    %c26 = arith.constant 26 : index
    %c0_147 = arith.constant 0 : index
    %c0_148 = arith.constant 0 : index
    %159 = vector.load %arg2[%c26, %c0_147, %c0_148] : memref<27x4x12xbf16, #tpu.memory_space<vmem>>, vector<1x4x12xbf16>
    %160 = vector.shape_cast %159 : vector<1x4x12xbf16> to vector<4x12xbf16>
    %cst_149 = arith.constant dense<0.000000e+00> : vector<4x384xf32>
    %161 = tpu.matmul %160, %158, %cst_149 {dimension_numbers = #tpu.dot_dimension_numbers<[1], [0], [0], [1], [0, 0, 1, 1], [], []>} : vector<4x12xbf16>, vector<12x384xbf16>, vector<4x384xf32> -> vector<4x384xf32>
    %162 = arith.addf %156, %161 : vector<4x384xf32>
    %c0_150 = arith.constant 0 : index
    %c0_151 = arith.constant 0 : index
    %163 = vector.load %arg3[%c0_150, %c0_151] : memref<4x1xf32, #tpu.memory_space<vmem>>, vector<4x1xf32>
    %164 = vector.broadcast %163 : vector<4x1xf32> to vector<4x384xf32>
    %165 = arith.addf %162, %164 : vector<4x384xf32>
    %c0_152 = arith.constant 0 : index
    %c0_153 = arith.constant 0 : index
    %166 = vector.load %arg6[%c0_152, %c0_153] : memref<1x384xf32, #tpu.memory_space<vmem>>, vector<1x384xf32>
    %167 = vector.broadcast %166 : vector<1x384xf32> to vector<4x384xf32>
    %168 = arith.mulf %165, %167 : vector<4x384xf32>
    %cst_154 = arith.constant dense<0.000000e+00> : vector<4xf32>
    %169 = vector.multi_reduction <add>, %168, %cst_154 [1] : vector<4x384xf32> to vector<4xf32>
    %170 = vector.shape_cast %169 : vector<4xf32> to vector<4x1xf32>
    %cst_155 = arith.constant 1.562500e-02 : f32
    %171 = vector.broadcast %cst_155 : f32 to vector<4x1xf32>
    %172 = arith.mulf %170, %171 : vector<4x1xf32>
    %173 = vector.broadcast %172 : vector<4x1xf32> to vector<4x384xf32>
    %174 = arith.subf %165, %173 : vector<4x384xf32>
    %175 = vector.broadcast %166 : vector<1x384xf32> to vector<4x384xf32>
    %176 = arith.mulf %174, %175 : vector<4x384xf32>
    %177 = arith.mulf %176, %176 : vector<4x384xf32>
    %cst_156 = arith.constant dense<0.000000e+00> : vector<4xf32>
    %178 = vector.multi_reduction <add>, %177, %cst_156 [1] : vector<4x384xf32> to vector<4xf32>
    %179 = vector.shape_cast %178 : vector<4xf32> to vector<4x1xf32>
    %cst_157 = arith.constant 1.562500e-02 : f32
    %180 = vector.broadcast %cst_157 : f32 to vector<4x1xf32>
    %181 = arith.mulf %179, %180 : vector<4x1xf32>
    %cst_158 = arith.constant 9.99999974E-6 : f32
    %182 = vector.broadcast %cst_158 : f32 to vector<4x1xf32>
    %183 = arith.addf %181, %182 : vector<4x1xf32>
    %184 = math.rsqrt %183 : vector<4x1xf32>
    %185 = vector.broadcast %184 : vector<4x1xf32> to vector<4x384xf32>
    %186 = arith.mulf %176, %185 : vector<4x384xf32>
    %cst_159 = arith.constant 0.000000e+00 : f32
    %187 = vector.broadcast %cst_159 : f32 to vector<4x384xf32>
    %188 = arith.cmpf oge, %186, %187 : vector<4x384xf32>
    %cst_160 = arith.constant 0.00999999977 : f32
    %189 = vector.broadcast %cst_160 : f32 to vector<4x384xf32>
    %190 = arith.mulf %189, %186 : vector<4x384xf32>
    %191 = arith.select %188, %186, %190 : vector<4x384xi1>, vector<4x384xf32>
    %c0_161 = arith.constant 0 : index
    %c0_162 = arith.constant 0 : index
    %192 = vector.load %arg9[%c0_161, %c0_162] : memref<4x384xf32, #tpu.memory_space<vmem>>, vector<4x384xf32>
    tpu.vector_store %arg9[%c0_161, %c0_162], %191 {strides = array<i32>} : memref<4x384xf32, #tpu.memory_space<vmem>>, vector<4x384xf32>,
    %cst_163 = arith.constant 0.000000e+00 : f32
    %193 = vector.broadcast %cst_163 : f32 to vector<4x384xf32>
    %c0_164 = arith.constant 0 : index
    %c0_165 = arith.constant 0 : index
    %194 = vector.load %arg10[%c0_164, %c0_165] : memref<4x384xf32, #tpu.memory_space<vmem>>, vector<4x384xf32>
    tpu.vector_store %arg10[%c0_164, %c0_165], %193 {strides = array<i32>} : memref<4x384xf32, #tpu.memory_space<vmem>>, vector<4x384xf32>,
    %c0_166 = arith.constant 0 : index
    %c0_167 = arith.constant 0 : index
    %195 = vector.load %arg9[%c0_166, %c0_167] : memref<4x384xf32, #tpu.memory_space<vmem>>, vector<4x4xf32>
    %c0_168 = arith.constant 0 : index
    %c43 = arith.constant 43 : index
    %196 = vector.load %arg10[%c0_168, %c43] : memref<4x384xf32, #tpu.memory_space<vmem>>, vector<4x4xf32>
    tpu.vector_store %arg10[%c0_168, %c43], %195 {strides = array<i32>} : memref<4x384xf32, #tpu.memory_space<vmem>>, vector<4x4xf32>,
    %c0_169 = arith.constant 0 : index
    %c10_170 = arith.constant 10 : index
    %197 = vector.load %arg9[%c0_169, %c10_170] : memref<4x384xf32, #tpu.memory_space<vmem>>, vector<4x4xf32>
    %c0_171 = arith.constant 0 : index
    %c49 = arith.constant 49 : index
    %198 = vector.load %arg10[%c0_171, %c49] : memref<4x384xf32, #tpu.memory_space<vmem>>, vector<4x4xf32>
    tpu.vector_store %arg10[%c0_171, %c49], %197 {strides = array<i32>} : memref<4x384xf32, #tpu.memory_space<vmem>>, vector<4x4xf32>,
    %c0_172 = arith.constant 0 : index
    %c20_173 = arith.constant 20 : index
    %199 = vector.load %arg9[%c0_172, %c20_173] : memref<4x384xf32, #tpu.memory_space<vmem>>, vector<4x4xf32>
    %c0_174 = arith.constant 0 : index
    %c55_175 = arith.constant 55 : index
    %200 = vector.load %arg10[%c0_174, %c55_175] : memref<4x384xf32, #tpu.memory_space<vmem>>, vector<4x4xf32>
    tpu.vector_store %arg10[%c0_174, %c55_175], %199 {strides = array<i32>} : memref<4x384xf32, #tpu.memory_space<vmem>>, vector<4x4xf32>,
    %c0_176 = arith.constant 0 : index
    %c30 = arith.constant 30 : index
    %201 = vector.load %arg9[%c0_176, %c30] : memref<4x384xf32, #tpu.memory_space<vmem>>, vector<4x4xf32>
    %c0_177 = arith.constant 0 : index
    %c61_178 = arith.constant 61 : index
    %202 = vector.load %arg10[%c0_177, %c61_178] : memref<4x384xf32, #tpu.memory_space<vmem>>, vector<4x4xf32>
    tpu.vector_store %arg10[%c0_177, %c61_178], %201 {strides = array<i32>} : memref<4x384xf32, #tpu.memory_space<vmem>>, vector<4x4xf32>,
    %c0_179 = arith.constant 0 : index
    %c100_180 = arith.constant 100 : index
    %203 = vector.load %arg9[%c0_179, %c100_180] : memref<4x384xf32, #tpu.memory_space<vmem>>, vector<4x4xf32>
    %c0_181 = arith.constant 0 : index
    %c79 = arith.constant 79 : index
    %204 = vector.load %arg10[%c0_181, %c79] : memref<4x384xf32, #tpu.memory_space<vmem>>, vector<4x4xf32>
    tpu.vector_store %arg10[%c0_181, %c79], %203 {strides = array<i32>} : memref<4x384xf32, #tpu.memory_space<vmem>>, vector<4x4xf32>,
    %c0_182 = arith.constant 0 : index
    %c110_183 = arith.constant 110 : index
    %205 = vector.load %arg9[%c0_182, %c110_183] : memref<4x384xf32, #tpu.memory_space<vmem>>, vector<4x4xf32>
    %c0_184 = arith.constant 0 : index
    %c85 = arith.constant 85 : index
    %206 = vector.load %arg10[%c0_184, %c85] : memref<4x384xf32, #tpu.memory_space<vmem>>, vector<4x4xf32>
    tpu.vector_store %arg10[%c0_184, %c85], %205 {strides = array<i32>} : memref<4x384xf32, #tpu.memory_space<vmem>>, vector<4x4xf32>,
    %c0_185 = arith.constant 0 : index
    %c120 = arith.constant 120 : index
    %207 = vector.load %arg9[%c0_185, %c120] : memref<4x384xf32, #tpu.memory_space<vmem>>, vector<4x4xf32>
    %c0_186 = arith.constant 0 : index
    %c91 = arith.constant 91 : index
    %208 = vector.load %arg10[%c0_186, %c91] : memref<4x384xf32, #tpu.memory_space<vmem>>, vector<4x4xf32>
    tpu.vector_store %arg10[%c0_186, %c91], %207 {strides = array<i32>} : memref<4x384xf32, #tpu.memory_space<vmem>>, vector<4x4xf32>,
    %c0_187 = arith.constant 0 : index
    %c130 = arith.constant 130 : index
    %209 = vector.load %arg9[%c0_187, %c130] : memref<4x384xf32, #tpu.memory_space<vmem>>, vector<4x4xf32>
    %c0_188 = arith.constant 0 : index
    %c97 = arith.constant 97 : index
    %210 = vector.load %arg10[%c0_188, %c97] : memref<4x384xf32, #tpu.memory_space<vmem>>, vector<4x4xf32>
    tpu.vector_store %arg10[%c0_188, %c97], %209 {strides = array<i32>} : memref<4x384xf32, #tpu.memory_space<vmem>>, vector<4x4xf32>,
    %c0_189 = arith.constant 0 : index
    %c200 = arith.constant 200 : index
    %211 = vector.load %arg9[%c0_189, %c200] : memref<4x384xf32, #tpu.memory_space<vmem>>, vector<4x4xf32>
    %c0_190 = arith.constant 0 : index
    %c115 = arith.constant 115 : index
    %212 = vector.load %arg10[%c0_190, %c115] : memref<4x384xf32, #tpu.memory_space<vmem>>, vector<4x4xf32>
    tpu.vector_store %arg10[%c0_190, %c115], %211 {strides = array<i32>} : memref<4x384xf32, #tpu.memory_space<vmem>>, vector<4x4xf32>,
    %c0_191 = arith.constant 0 : index
    %c210 = arith.constant 210 : index
    %213 = vector.load %arg9[%c0_191, %c210] : memref<4x384xf32, #tpu.memory_space<vmem>>, vector<4x4xf32>
    %c0_192 = arith.constant 0 : index
    %c121 = arith.constant 121 : index
    %214 = vector.load %arg10[%c0_192, %c121] : memref<4x384xf32, #tpu.memory_space<vmem>>, vector<4x4xf32>
    tpu.vector_store %arg10[%c0_192, %c121], %213 {strides = array<i32>} : memref<4x384xf32, #tpu.memory_space<vmem>>, vector<4x4xf32>,
    %c0_193 = arith.constant 0 : index
    %c220 = arith.constant 220 : index
    %215 = vector.load %arg9[%c0_193, %c220] : memref<4x384xf32, #tpu.memory_space<vmem>>, vector<4x4xf32>
    %c0_194 = arith.constant 0 : index
    %c127 = arith.constant 127 : index
    %216 = vector.load %arg10[%c0_194, %c127] : memref<4x384xf32, #tpu.memory_space<vmem>>, vector<4x4xf32>
    tpu.vector_store %arg10[%c0_194, %c127], %215 {strides = array<i32>} : memref<4x384xf32, #tpu.memory_space<vmem>>, vector<4x4xf32>,
    %c0_195 = arith.constant 0 : index
    %c230 = arith.constant 230 : index
    %217 = vector.load %arg9[%c0_195, %c230] : memref<4x384xf32, #tpu.memory_space<vmem>>, vector<4x4xf32>
    %c0_196 = arith.constant 0 : index
    %c133 = arith.constant 133 : index
    %218 = vector.load %arg10[%c0_196, %c133] : memref<4x384xf32, #tpu.memory_space<vmem>>, vector<4x4xf32>
    tpu.vector_store %arg10[%c0_196, %c133], %217 {strides = array<i32>} : memref<4x384xf32, #tpu.memory_space<vmem>>, vector<4x4xf32>,
    %c0_197 = arith.constant 0 : index
    %c300 = arith.constant 300 : index
    %219 = vector.load %arg9[%c0_197, %c300] : memref<4x384xf32, #tpu.memory_space<vmem>>, vector<4x4xf32>
    %c0_198 = arith.constant 0 : index
    %c151 = arith.constant 151 : index
    %220 = vector.load %arg10[%c0_198, %c151] : memref<4x384xf32, #tpu.memory_space<vmem>>, vector<4x4xf32>
    tpu.vector_store %arg10[%c0_198, %c151], %219 {strides = array<i32>} : memref<4x384xf32, #tpu.memory_space<vmem>>, vector<4x4xf32>,
    %c0_199 = arith.constant 0 : index
    %c310 = arith.constant 310 : index
    %221 = vector.load %arg9[%c0_199, %c310] : memref<4x384xf32, #tpu.memory_space<vmem>>, vector<4x4xf32>
    %c0_200 = arith.constant 0 : index
    %c157 = arith.constant 157 : index
    %222 = vector.load %arg10[%c0_200, %c157] : memref<4x384xf32, #tpu.memory_space<vmem>>, vector<4x4xf32>
    tpu.vector_store %arg10[%c0_200, %c157], %221 {strides = array<i32>} : memref<4x384xf32, #tpu.memory_space<vmem>>, vector<4x4xf32>,
    %c0_201 = arith.constant 0 : index
    %c320 = arith.constant 320 : index
    %223 = vector.load %arg9[%c0_201, %c320] : memref<4x384xf32, #tpu.memory_space<vmem>>, vector<4x4xf32>
    %c0_202 = arith.constant 0 : index
    %c163 = arith.constant 163 : index
    %224 = vector.load %arg10[%c0_202, %c163] : memref<4x384xf32, #tpu.memory_space<vmem>>, vector<4x4xf32>
    tpu.vector_store %arg10[%c0_202, %c163], %223 {strides = array<i32>} : memref<4x384xf32, #tpu.memory_space<vmem>>, vector<4x4xf32>,
    %c0_203 = arith.constant 0 : index
    %c330 = arith.constant 330 : index
    %225 = vector.load %arg9[%c0_203, %c330] : memref<4x384xf32, #tpu.memory_space<vmem>>, vector<4x4xf32>
    %c0_204 = arith.constant 0 : index
    %c169 = arith.constant 169 : index
    %226 = vector.load %arg10[%c0_204, %c169] : memref<4x384xf32, #tpu.memory_space<vmem>>, vector<4x4xf32>
    tpu.vector_store %arg10[%c0_204, %c169], %225 {strides = array<i32>} : memref<4x384xf32, #tpu.memory_space<vmem>>, vector<4x4xf32>,
    %cst_205 = arith.constant 0.000000e+00 : f32
    %227 = vector.broadcast %cst_205 : f32 to vector<4x256xf32>
    %c0_206 = arith.constant 0 : index
    %c0_207 = arith.constant 0 : index
    %228 = vector.load %arg10[%c0_206, %c0_207] : memref<4x384xf32, #tpu.memory_space<vmem>>, vector<4x256xf32>
    %229 = arith.truncf %228 : vector<4x256xf32> to vector<4x256xbf16>
    %c0_208 = arith.constant 0 : index
    %c0_209 = arith.constant 0 : index
    %c0_210 = arith.constant 0 : index
    %230 = vector.load %arg4[%c0_208, %c0_209, %c0_210] : memref<27x4x4xbf16, #tpu.memory_space<vmem>>, vector<1x4x4xbf16>
    %231 = vector.shape_cast %230 : vector<1x4x4xbf16> to vector<4x4xbf16>
    %cst_211 = arith.constant dense<0.000000e+00> : vector<4x256xf32>
    %232 = tpu.matmul %231, %229, %cst_211 {dimension_numbers = #tpu.dot_dimension_numbers<[1], [0], [0], [1], [0, 0, 1, 1], [], []>} : vector<4x4xbf16>, vector<4x256xbf16>, vector<4x256xf32> -> vector<4x256xf32>
    %233 = arith.addf %227, %232 : vector<4x256xf32>
    %c0_212 = arith.constant 0 : index
    %c1_213 = arith.constant 1 : index
    %234 = vector.load %arg10[%c0_212, %c1_213] : memref<4x384xf32, #tpu.memory_space<vmem>>, vector<4x256xf32>
    %235 = arith.truncf %234 : vector<4x256xf32> to vector<4x256xbf16>
    %c1_214 = arith.constant 1 : index
    %c0_215 = arith.constant 0 : index
    %c0_216 = arith.constant 0 : index
    %236 = vector.load %arg4[%c1_214, %c0_215, %c0_216] : memref<27x4x4xbf16, #tpu.memory_space<vmem>>, vector<1x4x4xbf16>
    %237 = vector.shape_cast %236 : vector<1x4x4xbf16> to vector<4x4xbf16>
    %cst_217 = arith.constant dense<0.000000e+00> : vector<4x256xf32>
    %238 = tpu.matmul %237, %235, %cst_217 {dimension_numbers = #tpu.dot_dimension_numbers<[1], [0], [0], [1], [0, 0, 1, 1], [], []>} : vector<4x4xbf16>, vector<4x256xbf16>, vector<4x256xf32> -> vector<4x256xf32>
    %239 = arith.addf %233, %238 : vector<4x256xf32>
    %c0_218 = arith.constant 0 : index
    %c2_219 = arith.constant 2 : index
    %240 = vector.load %arg10[%c0_218, %c2_219] : memref<4x384xf32, #tpu.memory_space<vmem>>, vector<4x256xf32>
    %241 = arith.truncf %240 : vector<4x256xf32> to vector<4x256xbf16>
    %c2_220 = arith.constant 2 : index
    %c0_221 = arith.constant 0 : index
    %c0_222 = arith.constant 0 : index
    %242 = vector.load %arg4[%c2_220, %c0_221, %c0_222] : memref<27x4x4xbf16, #tpu.memory_space<vmem>>, vector<1x4x4xbf16>
    %243 = vector.shape_cast %242 : vector<1x4x4xbf16> to vector<4x4xbf16>
    %cst_223 = arith.constant dense<0.000000e+00> : vector<4x256xf32>
    %244 = tpu.matmul %243, %241, %cst_223 {dimension_numbers = #tpu.dot_dimension_numbers<[1], [0], [0], [1], [0, 0, 1, 1], [], []>} : vector<4x4xbf16>, vector<4x256xbf16>, vector<4x256xf32> -> vector<4x256xf32>
    %245 = arith.addf %239, %244 : vector<4x256xf32>
    %c0_224 = arith.constant 0 : index
    %c6_225 = arith.constant 6 : index
    %246 = vector.load %arg10[%c0_224, %c6_225] : memref<4x384xf32, #tpu.memory_space<vmem>>, vector<4x256xf32>
    %247 = arith.truncf %246 : vector<4x256xf32> to vector<4x256xbf16>
    %c3_226 = arith.constant 3 : index
    %c0_227 = arith.constant 0 : index
    %c0_228 = arith.constant 0 : index
    %248 = vector.load %arg4[%c3_226, %c0_227, %c0_228] : memref<27x4x4xbf16, #tpu.memory_space<vmem>>, vector<1x4x4xbf16>
    %249 = vector.shape_cast %248 : vector<1x4x4xbf16> to vector<4x4xbf16>
    %cst_229 = arith.constant dense<0.000000e+00> : vector<4x256xf32>
    %250 = tpu.matmul %249, %247, %cst_229 {dimension_numbers = #tpu.dot_dimension_numbers<[1], [0], [0], [1], [0, 0, 1, 1], [], []>} : vector<4x4xbf16>, vector<4x256xbf16>, vector<4x256xf32> -> vector<4x256xf32>
    %251 = arith.addf %245, %250 : vector<4x256xf32>
    %c0_230 = arith.constant 0 : index
    %c7_231 = arith.constant 7 : index
    %252 = vector.load %arg10[%c0_230, %c7_231] : memref<4x384xf32, #tpu.memory_space<vmem>>, vector<4x256xf32>
    %253 = arith.truncf %252 : vector<4x256xf32> to vector<4x256xbf16>
    %c4_232 = arith.constant 4 : index
    %c0_233 = arith.constant 0 : index
    %c0_234 = arith.constant 0 : index
    %254 = vector.load %arg4[%c4_232, %c0_233, %c0_234] : memref<27x4x4xbf16, #tpu.memory_space<vmem>>, vector<1x4x4xbf16>
    %255 = vector.shape_cast %254 : vector<1x4x4xbf16> to vector<4x4xbf16>
    %cst_235 = arith.constant dense<0.000000e+00> : vector<4x256xf32>
    %256 = tpu.matmul %255, %253, %cst_235 {dimension_numbers = #tpu.dot_dimension_numbers<[1], [0], [0], [1], [0, 0, 1, 1], [], []>} : vector<4x4xbf16>, vector<4x256xbf16>, vector<4x256xf32> -> vector<4x256xf32>
    %257 = arith.addf %251, %256 : vector<4x256xf32>
    %c0_236 = arith.constant 0 : index
    %c8_237 = arith.constant 8 : index
    %258 = vector.load %arg10[%c0_236, %c8_237] : memref<4x384xf32, #tpu.memory_space<vmem>>, vector<4x256xf32>
    %259 = arith.truncf %258 : vector<4x256xf32> to vector<4x256xbf16>
    %c5_238 = arith.constant 5 : index
    %c0_239 = arith.constant 0 : index
    %c0_240 = arith.constant 0 : index
    %260 = vector.load %arg4[%c5_238, %c0_239, %c0_240] : memref<27x4x4xbf16, #tpu.memory_space<vmem>>, vector<1x4x4xbf16>
    %261 = vector.shape_cast %260 : vector<1x4x4xbf16> to vector<4x4xbf16>
    %cst_241 = arith.constant dense<0.000000e+00> : vector<4x256xf32>
    %262 = tpu.matmul %261, %259, %cst_241 {dimension_numbers = #tpu.dot_dimension_numbers<[1], [0], [0], [1], [0, 0, 1, 1], [], []>} : vector<4x4xbf16>, vector<4x256xbf16>, vector<4x256xf32> -> vector<4x256xf32>
    %263 = arith.addf %257, %262 : vector<4x256xf32>
    %c0_242 = arith.constant 0 : index
    %c12_243 = arith.constant 12 : index
    %264 = vector.load %arg10[%c0_242, %c12_243] : memref<4x384xf32, #tpu.memory_space<vmem>>, vector<4x256xf32>
    %265 = arith.truncf %264 : vector<4x256xf32> to vector<4x256xbf16>
    %c6_244 = arith.constant 6 : index
    %c0_245 = arith.constant 0 : index
    %c0_246 = arith.constant 0 : index
    %266 = vector.load %arg4[%c6_244, %c0_245, %c0_246] : memref<27x4x4xbf16, #tpu.memory_space<vmem>>, vector<1x4x4xbf16>
    %267 = vector.shape_cast %266 : vector<1x4x4xbf16> to vector<4x4xbf16>
    %cst_247 = arith.constant dense<0.000000e+00> : vector<4x256xf32>
    %268 = tpu.matmul %267, %265, %cst_247 {dimension_numbers = #tpu.dot_dimension_numbers<[1], [0], [0], [1], [0, 0, 1, 1], [], []>} : vector<4x4xbf16>, vector<4x256xbf16>, vector<4x256xf32> -> vector<4x256xf32>
    %269 = arith.addf %263, %268 : vector<4x256xf32>
    %c0_248 = arith.constant 0 : index
    %c13_249 = arith.constant 13 : index
    %270 = vector.load %arg10[%c0_248, %c13_249] : memref<4x384xf32, #tpu.memory_space<vmem>>, vector<4x256xf32>
    %271 = arith.truncf %270 : vector<4x256xf32> to vector<4x256xbf16>
    %c7_250 = arith.constant 7 : index
    %c0_251 = arith.constant 0 : index
    %c0_252 = arith.constant 0 : index
    %272 = vector.load %arg4[%c7_250, %c0_251, %c0_252] : memref<27x4x4xbf16, #tpu.memory_space<vmem>>, vector<1x4x4xbf16>
    %273 = vector.shape_cast %272 : vector<1x4x4xbf16> to vector<4x4xbf16>
    %cst_253 = arith.constant dense<0.000000e+00> : vector<4x256xf32>
    %274 = tpu.matmul %273, %271, %cst_253 {dimension_numbers = #tpu.dot_dimension_numbers<[1], [0], [0], [1], [0, 0, 1, 1], [], []>} : vector<4x4xbf16>, vector<4x256xbf16>, vector<4x256xf32> -> vector<4x256xf32>
    %275 = arith.addf %269, %274 : vector<4x256xf32>
    %c0_254 = arith.constant 0 : index
    %c14_255 = arith.constant 14 : index
    %276 = vector.load %arg10[%c0_254, %c14_255] : memref<4x384xf32, #tpu.memory_space<vmem>>, vector<4x256xf32>
    %277 = arith.truncf %276 : vector<4x256xf32> to vector<4x256xbf16>
    %c8_256 = arith.constant 8 : index
    %c0_257 = arith.constant 0 : index
    %c0_258 = arith.constant 0 : index
    %278 = vector.load %arg4[%c8_256, %c0_257, %c0_258] : memref<27x4x4xbf16, #tpu.memory_space<vmem>>, vector<1x4x4xbf16>
    %279 = vector.shape_cast %278 : vector<1x4x4xbf16> to vector<4x4xbf16>
    %cst_259 = arith.constant dense<0.000000e+00> : vector<4x256xf32>
    %280 = tpu.matmul %279, %277, %cst_259 {dimension_numbers = #tpu.dot_dimension_numbers<[1], [0], [0], [1], [0, 0, 1, 1], [], []>} : vector<4x4xbf16>, vector<4x256xbf16>, vector<4x256xf32> -> vector<4x256xf32>
    %281 = arith.addf %275, %280 : vector<4x256xf32>
    %c0_260 = arith.constant 0 : index
    %c36 = arith.constant 36 : index
    %282 = vector.load %arg10[%c0_260, %c36] : memref<4x384xf32, #tpu.memory_space<vmem>>, vector<4x256xf32>
    %283 = arith.truncf %282 : vector<4x256xf32> to vector<4x256xbf16>
    %c9_261 = arith.constant 9 : index
    %c0_262 = arith.constant 0 : index
    %c0_263 = arith.constant 0 : index
    %284 = vector.load %arg4[%c9_261, %c0_262, %c0_263] : memref<27x4x4xbf16, #tpu.memory_space<vmem>>, vector<1x4x4xbf16>
    %285 = vector.shape_cast %284 : vector<1x4x4xbf16> to vector<4x4xbf16>
    %cst_264 = arith.constant dense<0.000000e+00> : vector<4x256xf32>
    %286 = tpu.matmul %285, %283, %cst_264 {dimension_numbers = #tpu.dot_dimension_numbers<[1], [0], [0], [1], [0, 0, 1, 1], [], []>} : vector<4x4xbf16>, vector<4x256xbf16>, vector<4x256xf32> -> vector<4x256xf32>
    %287 = arith.addf %281, %286 : vector<4x256xf32>
    %c0_265 = arith.constant 0 : index
    %c37 = arith.constant 37 : index
    %288 = vector.load %arg10[%c0_265, %c37] : memref<4x384xf32, #tpu.memory_space<vmem>>, vector<4x256xf32>
    %289 = arith.truncf %288 : vector<4x256xf32> to vector<4x256xbf16>
    %c10_266 = arith.constant 10 : index
    %c0_267 = arith.constant 0 : index
    %c0_268 = arith.constant 0 : index
    %290 = vector.load %arg4[%c10_266, %c0_267, %c0_268] : memref<27x4x4xbf16, #tpu.memory_space<vmem>>, vector<1x4x4xbf16>
    %291 = vector.shape_cast %290 : vector<1x4x4xbf16> to vector<4x4xbf16>
    %cst_269 = arith.constant dense<0.000000e+00> : vector<4x256xf32>
    %292 = tpu.matmul %291, %289, %cst_269 {dimension_numbers = #tpu.dot_dimension_numbers<[1], [0], [0], [1], [0, 0, 1, 1], [], []>} : vector<4x4xbf16>, vector<4x256xbf16>, vector<4x256xf32> -> vector<4x256xf32>
    %293 = arith.addf %287, %292 : vector<4x256xf32>
    %c0_270 = arith.constant 0 : index
    %c38 = arith.constant 38 : index
    %294 = vector.load %arg10[%c0_270, %c38] : memref<4x384xf32, #tpu.memory_space<vmem>>, vector<4x256xf32>
    %295 = arith.truncf %294 : vector<4x256xf32> to vector<4x256xbf16>
    %c11_271 = arith.constant 11 : index
    %c0_272 = arith.constant 0 : index
    %c0_273 = arith.constant 0 : index
    %296 = vector.load %arg4[%c11_271, %c0_272, %c0_273] : memref<27x4x4xbf16, #tpu.memory_space<vmem>>, vector<1x4x4xbf16>
    %297 = vector.shape_cast %296 : vector<1x4x4xbf16> to vector<4x4xbf16>
    %cst_274 = arith.constant dense<0.000000e+00> : vector<4x256xf32>
    %298 = tpu.matmul %297, %295, %cst_274 {dimension_numbers = #tpu.dot_dimension_numbers<[1], [0], [0], [1], [0, 0, 1, 1], [], []>} : vector<4x4xbf16>, vector<4x256xbf16>, vector<4x256xf32> -> vector<4x256xf32>
    %299 = arith.addf %293, %298 : vector<4x256xf32>
    %c0_275 = arith.constant 0 : index
    %c42 = arith.constant 42 : index
    %300 = vector.load %arg10[%c0_275, %c42] : memref<4x384xf32, #tpu.memory_space<vmem>>, vector<4x256xf32>
    %301 = arith.truncf %300 : vector<4x256xf32> to vector<4x256xbf16>
    %c12_276 = arith.constant 12 : index
    %c0_277 = arith.constant 0 : index
    %c0_278 = arith.constant 0 : index
    %302 = vector.load %arg4[%c12_276, %c0_277, %c0_278] : memref<27x4x4xbf16, #tpu.memory_space<vmem>>, vector<1x4x4xbf16>
    %303 = vector.shape_cast %302 : vector<1x4x4xbf16> to vector<4x4xbf16>
    %cst_279 = arith.constant dense<0.000000e+00> : vector<4x256xf32>
    %304 = tpu.matmul %303, %301, %cst_279 {dimension_numbers = #tpu.dot_dimension_numbers<[1], [0], [0], [1], [0, 0, 1, 1], [], []>} : vector<4x4xbf16>, vector<4x256xbf16>, vector<4x256xf32> -> vector<4x256xf32>
    %305 = arith.addf %299, %304 : vector<4x256xf32>
    %c0_280 = arith.constant 0 : index
    %c43_281 = arith.constant 43 : index
    %306 = vector.load %arg10[%c0_280, %c43_281] : memref<4x384xf32, #tpu.memory_space<vmem>>, vector<4x256xf32>
    %307 = arith.truncf %306 : vector<4x256xf32> to vector<4x256xbf16>
    %c13_282 = arith.constant 13 : index
    %c0_283 = arith.constant 0 : index
    %c0_284 = arith.constant 0 : index
    %308 = vector.load %arg4[%c13_282, %c0_283, %c0_284] : memref<27x4x4xbf16, #tpu.memory_space<vmem>>, vector<1x4x4xbf16>
    %309 = vector.shape_cast %308 : vector<1x4x4xbf16> to vector<4x4xbf16>
    %cst_285 = arith.constant dense<0.000000e+00> : vector<4x256xf32>
    %310 = tpu.matmul %309, %307, %cst_285 {dimension_numbers = #tpu.dot_dimension_numbers<[1], [0], [0], [1], [0, 0, 1, 1], [], []>} : vector<4x4xbf16>, vector<4x256xbf16>, vector<4x256xf32> -> vector<4x256xf32>
    %311 = arith.addf %305, %310 : vector<4x256xf32>
    %c0_286 = arith.constant 0 : index
    %c44 = arith.constant 44 : index
    %312 = vector.load %arg10[%c0_286, %c44] : memref<4x384xf32, #tpu.memory_space<vmem>>, vector<4x256xf32>
    %313 = arith.truncf %312 : vector<4x256xf32> to vector<4x256xbf16>
    %c14_287 = arith.constant 14 : index
    %c0_288 = arith.constant 0 : index
    %c0_289 = arith.constant 0 : index
    %314 = vector.load %arg4[%c14_287, %c0_288, %c0_289] : memref<27x4x4xbf16, #tpu.memory_space<vmem>>, vector<1x4x4xbf16>
    %315 = vector.shape_cast %314 : vector<1x4x4xbf16> to vector<4x4xbf16>
    %cst_290 = arith.constant dense<0.000000e+00> : vector<4x256xf32>
    %316 = tpu.matmul %315, %313, %cst_290 {dimension_numbers = #tpu.dot_dimension_numbers<[1], [0], [0], [1], [0, 0, 1, 1], [], []>} : vector<4x4xbf16>, vector<4x256xbf16>, vector<4x256xf32> -> vector<4x256xf32>
    %317 = arith.addf %311, %316 : vector<4x256xf32>
    %c0_291 = arith.constant 0 : index
    %c48 = arith.constant 48 : index
    %318 = vector.load %arg10[%c0_291, %c48] : memref<4x384xf32, #tpu.memory_space<vmem>>, vector<4x256xf32>
    %319 = arith.truncf %318 : vector<4x256xf32> to vector<4x256xbf16>
    %c15_292 = arith.constant 15 : index
    %c0_293 = arith.constant 0 : index
    %c0_294 = arith.constant 0 : index
    %320 = vector.load %arg4[%c15_292, %c0_293, %c0_294] : memref<27x4x4xbf16, #tpu.memory_space<vmem>>, vector<1x4x4xbf16>
    %321 = vector.shape_cast %320 : vector<1x4x4xbf16> to vector<4x4xbf16>
    %cst_295 = arith.constant dense<0.000000e+00> : vector<4x256xf32>
    %322 = tpu.matmul %321, %319, %cst_295 {dimension_numbers = #tpu.dot_dimension_numbers<[1], [0], [0], [1], [0, 0, 1, 1], [], []>} : vector<4x4xbf16>, vector<4x256xbf16>, vector<4x256xf32> -> vector<4x256xf32>
    %323 = arith.addf %317, %322 : vector<4x256xf32>
    %c0_296 = arith.constant 0 : index
    %c49_297 = arith.constant 49 : index
    %324 = vector.load %arg10[%c0_296, %c49_297] : memref<4x384xf32, #tpu.memory_space<vmem>>, vector<4x256xf32>
    %325 = arith.truncf %324 : vector<4x256xf32> to vector<4x256xbf16>
    %c16_298 = arith.constant 16 : index
    %c0_299 = arith.constant 0 : index
    %c0_300 = arith.constant 0 : index
    %326 = vector.load %arg4[%c16_298, %c0_299, %c0_300] : memref<27x4x4xbf16, #tpu.memory_space<vmem>>, vector<1x4x4xbf16>
    %327 = vector.shape_cast %326 : vector<1x4x4xbf16> to vector<4x4xbf16>
    %cst_301 = arith.constant dense<0.000000e+00> : vector<4x256xf32>
    %328 = tpu.matmul %327, %325, %cst_301 {dimension_numbers = #tpu.dot_dimension_numbers<[1], [0], [0], [1], [0, 0, 1, 1], [], []>} : vector<4x4xbf16>, vector<4x256xbf16>, vector<4x256xf32> -> vector<4x256xf32>
    %329 = arith.addf %323, %328 : vector<4x256xf32>
    %c0_302 = arith.constant 0 : index
    %c50_303 = arith.constant 50 : index
    %330 = vector.load %arg10[%c0_302, %c50_303] : memref<4x384xf32, #tpu.memory_space<vmem>>, vector<4x256xf32>
    %331 = arith.truncf %330 : vector<4x256xf32> to vector<4x256xbf16>
    %c17_304 = arith.constant 17 : index
    %c0_305 = arith.constant 0 : index
    %c0_306 = arith.constant 0 : index
    %332 = vector.load %arg4[%c17_304, %c0_305, %c0_306] : memref<27x4x4xbf16, #tpu.memory_space<vmem>>, vector<1x4x4xbf16>
    %333 = vector.shape_cast %332 : vector<1x4x4xbf16> to vector<4x4xbf16>
    %cst_307 = arith.constant dense<0.000000e+00> : vector<4x256xf32>
    %334 = tpu.matmul %333, %331, %cst_307 {dimension_numbers = #tpu.dot_dimension_numbers<[1], [0], [0], [1], [0, 0, 1, 1], [], []>} : vector<4x4xbf16>, vector<4x256xbf16>, vector<4x256xf32> -> vector<4x256xf32>
    %335 = arith.addf %329, %334 : vector<4x256xf32>
    %c0_308 = arith.constant 0 : index
    %c72 = arith.constant 72 : index
    %336 = vector.load %arg10[%c0_308, %c72] : memref<4x384xf32, #tpu.memory_space<vmem>>, vector<4x256xf32>
    %337 = arith.truncf %336 : vector<4x256xf32> to vector<4x256xbf16>
    %c18_309 = arith.constant 18 : index
    %c0_310 = arith.constant 0 : index
    %c0_311 = arith.constant 0 : index
    %338 = vector.load %arg4[%c18_309, %c0_310, %c0_311] : memref<27x4x4xbf16, #tpu.memory_space<vmem>>, vector<1x4x4xbf16>
    %339 = vector.shape_cast %338 : vector<1x4x4xbf16> to vector<4x4xbf16>
    %cst_312 = arith.constant dense<0.000000e+00> : vector<4x256xf32>
    %340 = tpu.matmul %339, %337, %cst_312 {dimension_numbers = #tpu.dot_dimension_numbers<[1], [0], [0], [1], [0, 0, 1, 1], [], []>} : vector<4x4xbf16>, vector<4x256xbf16>, vector<4x256xf32> -> vector<4x256xf32>
    %341 = arith.addf %335, %340 : vector<4x256xf32>
    %c0_313 = arith.constant 0 : index
    %c73 = arith.constant 73 : index
    %342 = vector.load %arg10[%c0_313, %c73] : memref<4x384xf32, #tpu.memory_space<vmem>>, vector<4x256xf32>
    %343 = arith.truncf %342 : vector<4x256xf32> to vector<4x256xbf16>
    %c19_314 = arith.constant 19 : index
    %c0_315 = arith.constant 0 : index
    %c0_316 = arith.constant 0 : index
    %344 = vector.load %arg4[%c19_314, %c0_315, %c0_316] : memref<27x4x4xbf16, #tpu.memory_space<vmem>>, vector<1x4x4xbf16>
    %345 = vector.shape_cast %344 : vector<1x4x4xbf16> to vector<4x4xbf16>
    %cst_317 = arith.constant dense<0.000000e+00> : vector<4x256xf32>
    %346 = tpu.matmul %345, %343, %cst_317 {dimension_numbers = #tpu.dot_dimension_numbers<[1], [0], [0], [1], [0, 0, 1, 1], [], []>} : vector<4x4xbf16>, vector<4x256xbf16>, vector<4x256xf32> -> vector<4x256xf32>
    %347 = arith.addf %341, %346 : vector<4x256xf32>
    %c0_318 = arith.constant 0 : index
    %c74 = arith.constant 74 : index
    %348 = vector.load %arg10[%c0_318, %c74] : memref<4x384xf32, #tpu.memory_space<vmem>>, vector<4x256xf32>
    %349 = arith.truncf %348 : vector<4x256xf32> to vector<4x256xbf16>
    %c20_319 = arith.constant 20 : index
    %c0_320 = arith.constant 0 : index
    %c0_321 = arith.constant 0 : index
    %350 = vector.load %arg4[%c20_319, %c0_320, %c0_321] : memref<27x4x4xbf16, #tpu.memory_space<vmem>>, vector<1x4x4xbf16>
    %351 = vector.shape_cast %350 : vector<1x4x4xbf16> to vector<4x4xbf16>
    %cst_322 = arith.constant dense<0.000000e+00> : vector<4x256xf32>
    %352 = tpu.matmul %351, %349, %cst_322 {dimension_numbers = #tpu.dot_dimension_numbers<[1], [0], [0], [1], [0, 0, 1, 1], [], []>} : vector<4x4xbf16>, vector<4x256xbf16>, vector<4x256xf32> -> vector<4x256xf32>
    %353 = arith.addf %347, %352 : vector<4x256xf32>
    %c0_323 = arith.constant 0 : index
    %c78 = arith.constant 78 : index
    %354 = vector.load %arg10[%c0_323, %c78] : memref<4x384xf32, #tpu.memory_space<vmem>>, vector<4x256xf32>
    %355 = arith.truncf %354 : vector<4x256xf32> to vector<4x256xbf16>
    %c21_324 = arith.constant 21 : index
    %c0_325 = arith.constant 0 : index
    %c0_326 = arith.constant 0 : index
    %356 = vector.load %arg4[%c21_324, %c0_325, %c0_326] : memref<27x4x4xbf16, #tpu.memory_space<vmem>>, vector<1x4x4xbf16>
    %357 = vector.shape_cast %356 : vector<1x4x4xbf16> to vector<4x4xbf16>
    %cst_327 = arith.constant dense<0.000000e+00> : vector<4x256xf32>
    %358 = tpu.matmul %357, %355, %cst_327 {dimension_numbers = #tpu.dot_dimension_numbers<[1], [0], [0], [1], [0, 0, 1, 1], [], []>} : vector<4x4xbf16>, vector<4x256xbf16>, vector<4x256xf32> -> vector<4x256xf32>
    %359 = arith.addf %353, %358 : vector<4x256xf32>
    %c0_328 = arith.constant 0 : index
    %c79_329 = arith.constant 79 : index
    %360 = vector.load %arg10[%c0_328, %c79_329] : memref<4x384xf32, #tpu.memory_space<vmem>>, vector<4x256xf32>
    %361 = arith.truncf %360 : vector<4x256xf32> to vector<4x256xbf16>
    %c22_330 = arith.constant 22 : index
    %c0_331 = arith.constant 0 : index
    %c0_332 = arith.constant 0 : index
    %362 = vector.load %arg4[%c22_330, %c0_331, %c0_332] : memref<27x4x4xbf16, #tpu.memory_space<vmem>>, vector<1x4x4xbf16>
    %363 = vector.shape_cast %362 : vector<1x4x4xbf16> to vector<4x4xbf16>
    %cst_333 = arith.constant dense<0.000000e+00> : vector<4x256xf32>
    %364 = tpu.matmul %363, %361, %cst_333 {dimension_numbers = #tpu.dot_dimension_numbers<[1], [0], [0], [1], [0, 0, 1, 1], [], []>} : vector<4x4xbf16>, vector<4x256xbf16>, vector<4x256xf32> -> vector<4x256xf32>
    %365 = arith.addf %359, %364 : vector<4x256xf32>
    %c0_334 = arith.constant 0 : index
    %c80 = arith.constant 80 : index
    %366 = vector.load %arg10[%c0_334, %c80] : memref<4x384xf32, #tpu.memory_space<vmem>>, vector<4x256xf32>
    %367 = arith.truncf %366 : vector<4x256xf32> to vector<4x256xbf16>
    %c23_335 = arith.constant 23 : index
    %c0_336 = arith.constant 0 : index
    %c0_337 = arith.constant 0 : index
    %368 = vector.load %arg4[%c23_335, %c0_336, %c0_337] : memref<27x4x4xbf16, #tpu.memory_space<vmem>>, vector<1x4x4xbf16>
    %369 = vector.shape_cast %368 : vector<1x4x4xbf16> to vector<4x4xbf16>
    %cst_338 = arith.constant dense<0.000000e+00> : vector<4x256xf32>
    %370 = tpu.matmul %369, %367, %cst_338 {dimension_numbers = #tpu.dot_dimension_numbers<[1], [0], [0], [1], [0, 0, 1, 1], [], []>} : vector<4x4xbf16>, vector<4x256xbf16>, vector<4x256xf32> -> vector<4x256xf32>
    %371 = arith.addf %365, %370 : vector<4x256xf32>
    %c0_339 = arith.constant 0 : index
    %c84 = arith.constant 84 : index
    %372 = vector.load %arg10[%c0_339, %c84] : memref<4x384xf32, #tpu.memory_space<vmem>>, vector<4x256xf32>
    %373 = arith.truncf %372 : vector<4x256xf32> to vector<4x256xbf16>
    %c24_340 = arith.constant 24 : index
    %c0_341 = arith.constant 0 : index
    %c0_342 = arith.constant 0 : index
    %374 = vector.load %arg4[%c24_340, %c0_341, %c0_342] : memref<27x4x4xbf16, #tpu.memory_space<vmem>>, vector<1x4x4xbf16>
    %375 = vector.shape_cast %374 : vector<1x4x4xbf16> to vector<4x4xbf16>
    %cst_343 = arith.constant dense<0.000000e+00> : vector<4x256xf32>
    %376 = tpu.matmul %375, %373, %cst_343 {dimension_numbers = #tpu.dot_dimension_numbers<[1], [0], [0], [1], [0, 0, 1, 1], [], []>} : vector<4x4xbf16>, vector<4x256xbf16>, vector<4x256xf32> -> vector<4x256xf32>
    %377 = arith.addf %371, %376 : vector<4x256xf32>
    %c0_344 = arith.constant 0 : index
    %c85_345 = arith.constant 85 : index
    %378 = vector.load %arg10[%c0_344, %c85_345] : memref<4x384xf32, #tpu.memory_space<vmem>>, vector<4x256xf32>
    %379 = arith.truncf %378 : vector<4x256xf32> to vector<4x256xbf16>
    %c25_346 = arith.constant 25 : index
    %c0_347 = arith.constant 0 : index
    %c0_348 = arith.constant 0 : index
    %380 = vector.load %arg4[%c25_346, %c0_347, %c0_348] : memref<27x4x4xbf16, #tpu.memory_space<vmem>>, vector<1x4x4xbf16>
    %381 = vector.shape_cast %380 : vector<1x4x4xbf16> to vector<4x4xbf16>
    %cst_349 = arith.constant dense<0.000000e+00> : vector<4x256xf32>
    %382 = tpu.matmul %381, %379, %cst_349 {dimension_numbers = #tpu.dot_dimension_numbers<[1], [0], [0], [1], [0, 0, 1, 1], [], []>} : vector<4x4xbf16>, vector<4x256xbf16>, vector<4x256xf32> -> vector<4x256xf32>
    %383 = arith.addf %377, %382 : vector<4x256xf32>
    %c0_350 = arith.constant 0 : index
    %c86 = arith.constant 86 : index
    %384 = vector.load %arg10[%c0_350, %c86] : memref<4x384xf32, #tpu.memory_space<vmem>>, vector<4x256xf32>
    %385 = arith.truncf %384 : vector<4x256xf32> to vector<4x256xbf16>
    %c26_351 = arith.constant 26 : index
    %c0_352 = arith.constant 0 : index
    %c0_353 = arith.constant 0 : index
    %386 = vector.load %arg4[%c26_351, %c0_352, %c0_353] : memref<27x4x4xbf16, #tpu.memory_space<vmem>>, vector<1x4x4xbf16>
    %387 = vector.shape_cast %386 : vector<1x4x4xbf16> to vector<4x4xbf16>
    %cst_354 = arith.constant dense<0.000000e+00> : vector<4x256xf32>
    %388 = tpu.matmul %387, %385, %cst_354 {dimension_numbers = #tpu.dot_dimension_numbers<[1], [0], [0], [1], [0, 0, 1, 1], [], []>} : vector<4x4xbf16>, vector<4x256xbf16>, vector<4x256xf32> -> vector<4x256xf32>
    %389 = arith.addf %383, %388 : vector<4x256xf32>
    %c0_355 = arith.constant 0 : index
    %c0_356 = arith.constant 0 : index
    %390 = vector.load %arg5[%c0_355, %c0_356] : memref<4x1xf32, #tpu.memory_space<vmem>>, vector<4x1xf32>
    %391 = vector.broadcast %390 : vector<4x1xf32> to vector<4x256xf32>
    %392 = arith.addf %389, %391 : vector<4x256xf32>
    %c0_357 = arith.constant 0 : index
    %c0_358 = arith.constant 0 : index
    %393 = vector.load %arg7[%c0_357, %c0_358] : memref<1x256xf32, #tpu.memory_space<vmem>>, vector<1x256xf32>
    %394 = vector.broadcast %393 : vector<1x256xf32> to vector<4x256xf32>
    %395 = arith.mulf %392, %394 : vector<4x256xf32>
    %cst_359 = arith.constant dense<0.000000e+00> : vector<4xf32>
    %396 = vector.multi_reduction <add>, %395, %cst_359 [1] : vector<4x256xf32> to vector<4xf32>
    %397 = vector.shape_cast %396 : vector<4xf32> to vector<4x1xf32>
    %cst_360 = arith.constant 1.562500e-02 : f32
    %398 = vector.broadcast %cst_360 : f32 to vector<4x1xf32>
    %399 = arith.mulf %397, %398 : vector<4x1xf32>
    %400 = vector.broadcast %399 : vector<4x1xf32> to vector<4x256xf32>
    %401 = arith.subf %392, %400 : vector<4x256xf32>
    %402 = vector.broadcast %393 : vector<1x256xf32> to vector<4x256xf32>
    %403 = arith.mulf %401, %402 : vector<4x256xf32>
    %404 = arith.mulf %403, %403 : vector<4x256xf32>
    %cst_361 = arith.constant dense<0.000000e+00> : vector<4xf32>
    %405 = vector.multi_reduction <add>, %404, %cst_361 [1] : vector<4x256xf32> to vector<4xf32>
    %406 = vector.shape_cast %405 : vector<4xf32> to vector<4x1xf32>
    %cst_362 = arith.constant 1.562500e-02 : f32
    %407 = vector.broadcast %cst_362 : f32 to vector<4x1xf32>
    %408 = arith.mulf %406, %407 : vector<4x1xf32>
    %cst_363 = arith.constant 9.99999974E-6 : f32
    %409 = vector.broadcast %cst_363 : f32 to vector<4x1xf32>
    %410 = arith.addf %408, %409 : vector<4x1xf32>
    %411 = math.rsqrt %410 : vector<4x1xf32>
    %412 = vector.broadcast %411 : vector<4x1xf32> to vector<4x256xf32>
    %413 = arith.mulf %403, %412 : vector<4x256xf32>
    %cst_364 = arith.constant 0.000000e+00 : f32
    %414 = vector.broadcast %cst_364 : f32 to vector<4x256xf32>
    %415 = arith.cmpf oge, %413, %414 : vector<4x256xf32>
    %cst_365 = arith.constant 0.00999999977 : f32
    %416 = vector.broadcast %cst_365 : f32 to vector<4x256xf32>
    %417 = arith.mulf %416, %413 : vector<4x256xf32>
    %418 = arith.select %415, %413, %417 : vector<4x256xi1>, vector<4x256xf32>
    %c0_366 = arith.constant 0 : index
    %c0_367 = arith.constant 0 : index
    %419 = vector.load %arg11[%c0_366, %c0_367] : memref<4x256xf32, #tpu.memory_space<vmem>>, vector<4x256xf32>
    tpu.vector_store %arg11[%c0_366, %c0_367], %418 {strides = array<i32>} : memref<4x256xf32, #tpu.memory_space<vmem>>, vector<4x256xf32>,
    %c0_368 = arith.constant 0 : index
    %c0_369 = arith.constant 0 : index
    %420 = vector.load %arg11[%c0_368, %c0_369] : memref<4x256xf32, #tpu.memory_space<vmem>>, vector<4x4xf32>
    %c0_370 = arith.constant 0 : index
    %c0_371 = arith.constant 0 : index
    %c0_372 = arith.constant 0 : index
    %421 = vector.load %arg8[%c0_370, %c0_371, %c0_372] : memref<1x4x64xf32, #tpu.memory_space<vmem>>, vector<1x4x4xf32>
    %422 = vector.shape_cast %421 : vector<1x4x4xf32> to vector<4x4xf32>
    %423 = vector.shape_cast %420 : vector<4x4xf32> to vector<1x4x4xf32>
    tpu.vector_store %arg8[%c0_370, %c0_371, %c0_372], %423 {strides = array<i32>} : memref<1x4x64xf32, #tpu.memory_space<vmem>>, vector<1x4x4xf32>,
    %c0_373 = arith.constant 0 : index
    %c6_374 = arith.constant 6 : index
    %424 = vector.load %arg11[%c0_373, %c6_374] : memref<4x256xf32, #tpu.memory_space<vmem>>, vector<4x4xf32>
    %c0_375 = arith.constant 0 : index
    %c0_376 = arith.constant 0 : index
    %c4_377 = arith.constant 4 : index
    %425 = vector.load %arg8[%c0_375, %c0_376, %c4_377] : memref<1x4x64xf32, #tpu.memory_space<vmem>>, vector<1x4x4xf32>
    %426 = vector.shape_cast %425 : vector<1x4x4xf32> to vector<4x4xf32>
    %427 = vector.shape_cast %424 : vector<4x4xf32> to vector<1x4x4xf32>
    tpu.vector_store %arg8[%c0_375, %c0_376, %c4_377], %427 {strides = array<i32>} : memref<1x4x64xf32, #tpu.memory_space<vmem>>, vector<1x4x4xf32>,
    %c0_378 = arith.constant 0 : index
    %c12_379 = arith.constant 12 : index
    %428 = vector.load %arg11[%c0_378, %c12_379] : memref<4x256xf32, #tpu.memory_space<vmem>>, vector<4x4xf32>
    %c0_380 = arith.constant 0 : index
    %c0_381 = arith.constant 0 : index
    %c8_382 = arith.constant 8 : index
    %429 = vector.load %arg8[%c0_380, %c0_381, %c8_382] : memref<1x4x64xf32, #tpu.memory_space<vmem>>, vector<1x4x4xf32>
    %430 = vector.shape_cast %429 : vector<1x4x4xf32> to vector<4x4xf32>
    %431 = vector.shape_cast %428 : vector<4x4xf32> to vector<1x4x4xf32>
    tpu.vector_store %arg8[%c0_380, %c0_381, %c8_382], %431 {strides = array<i32>} : memref<1x4x64xf32, #tpu.memory_space<vmem>>, vector<1x4x4xf32>,
    %c0_383 = arith.constant 0 : index
    %c18_384 = arith.constant 18 : index
    %432 = vector.load %arg11[%c0_383, %c18_384] : memref<4x256xf32, #tpu.memory_space<vmem>>, vector<4x4xf32>
    %c0_385 = arith.constant 0 : index
    %c0_386 = arith.constant 0 : index
    %c12_387 = arith.constant 12 : index
    %433 = vector.load %arg8[%c0_385, %c0_386, %c12_387] : memref<1x4x64xf32, #tpu.memory_space<vmem>>, vector<1x4x4xf32>
    %434 = vector.shape_cast %433 : vector<1x4x4xf32> to vector<4x4xf32>
    %435 = vector.shape_cast %432 : vector<4x4xf32> to vector<1x4x4xf32>
    tpu.vector_store %arg8[%c0_385, %c0_386, %c12_387], %435 {strides = array<i32>} : memref<1x4x64xf32, #tpu.memory_space<vmem>>, vector<1x4x4xf32>,
    %c0_388 = arith.constant 0 : index
    %c36_389 = arith.constant 36 : index
    %436 = vector.load %arg11[%c0_388, %c36_389] : memref<4x256xf32, #tpu.memory_space<vmem>>, vector<4x4xf32>
    %c0_390 = arith.constant 0 : index
    %c0_391 = arith.constant 0 : index
    %c16_392 = arith.constant 16 : index
    %437 = vector.load %arg8[%c0_390, %c0_391, %c16_392] : memref<1x4x64xf32, #tpu.memory_space<vmem>>, vector<1x4x4xf32>
    %438 = vector.shape_cast %437 : vector<1x4x4xf32> to vector<4x4xf32>
    %439 = vector.shape_cast %436 : vector<4x4xf32> to vector<1x4x4xf32>
    tpu.vector_store %arg8[%c0_390, %c0_391, %c16_392], %439 {strides = array<i32>} : memref<1x4x64xf32, #tpu.memory_space<vmem>>, vector<1x4x4xf32>,
    %c0_393 = arith.constant 0 : index
    %c42_394 = arith.constant 42 : index
    %440 = vector.load %arg11[%c0_393, %c42_394] : memref<4x256xf32, #tpu.memory_space<vmem>>, vector<4x4xf32>
    %c0_395 = arith.constant 0 : index
    %c0_396 = arith.constant 0 : index
    %c20_397 = arith.constant 20 : index
    %441 = vector.load %arg8[%c0_395, %c0_396, %c20_397] : memref<1x4x64xf32, #tpu.memory_space<vmem>>, vector<1x4x4xf32>
    %442 = vector.shape_cast %441 : vector<1x4x4xf32> to vector<4x4xf32>
    %443 = vector.shape_cast %440 : vector<4x4xf32> to vector<1x4x4xf32>
    tpu.vector_store %arg8[%c0_395, %c0_396, %c20_397], %443 {strides = array<i32>} : memref<1x4x64xf32, #tpu.memory_space<vmem>>, vector<1x4x4xf32>,
    %c0_398 = arith.constant 0 : index
    %c48_399 = arith.constant 48 : index
    %444 = vector.load %arg11[%c0_398, %c48_399] : memref<4x256xf32, #tpu.memory_space<vmem>>, vector<4x4xf32>
    %c0_400 = arith.constant 0 : index
    %c0_401 = arith.constant 0 : index
    %c24_402 = arith.constant 24 : index
    %445 = vector.load %arg8[%c0_400, %c0_401, %c24_402] : memref<1x4x64xf32, #tpu.memory_space<vmem>>, vector<1x4x4xf32>
    %446 = vector.shape_cast %445 : vector<1x4x4xf32> to vector<4x4xf32>
    %447 = vector.shape_cast %444 : vector<4x4xf32> to vector<1x4x4xf32>
    tpu.vector_store %arg8[%c0_400, %c0_401, %c24_402], %447 {strides = array<i32>} : memref<1x4x64xf32, #tpu.memory_space<vmem>>, vector<1x4x4xf32>,
    %c0_403 = arith.constant 0 : index
    %c54 = arith.constant 54 : index
    %448 = vector.load %arg11[%c0_403, %c54] : memref<4x256xf32, #tpu.memory_space<vmem>>, vector<4x4xf32>
    %c0_404 = arith.constant 0 : index
    %c0_405 = arith.constant 0 : index
    %c28 = arith.constant 28 : index
    %449 = vector.load %arg8[%c0_404, %c0_405, %c28] : memref<1x4x64xf32, #tpu.memory_space<vmem>>, vector<1x4x4xf32>
    %450 = vector.shape_cast %449 : vector<1x4x4xf32> to vector<4x4xf32>
    %451 = vector.shape_cast %448 : vector<4x4xf32> to vector<1x4x4xf32>
    tpu.vector_store %arg8[%c0_404, %c0_405, %c28], %451 {strides = array<i32>} : memref<1x4x64xf32, #tpu.memory_space<vmem>>, vector<1x4x4xf32>,
    %c0_406 = arith.constant 0 : index
    %c72_407 = arith.constant 72 : index
    %452 = vector.load %arg11[%c0_406, %c72_407] : memref<4x256xf32, #tpu.memory_space<vmem>>, vector<4x4xf32>
    %c0_408 = arith.constant 0 : index
    %c0_409 = arith.constant 0 : index
    %c32 = arith.constant 32 : index
    %453 = vector.load %arg8[%c0_408, %c0_409, %c32] : memref<1x4x64xf32, #tpu.memory_space<vmem>>, vector<1x4x4xf32>
    %454 = vector.shape_cast %453 : vector<1x4x4xf32> to vector<4x4xf32>
    %455 = vector.shape_cast %452 : vector<4x4xf32> to vector<1x4x4xf32>
    tpu.vector_store %arg8[%c0_408, %c0_409, %c32], %455 {strides = array<i32>} : memref<1x4x64xf32, #tpu.memory_space<vmem>>, vector<1x4x4xf32>,
    %c0_410 = arith.constant 0 : index
    %c78_411 = arith.constant 78 : index
    %456 = vector.load %arg11[%c0_410, %c78_411] : memref<4x256xf32, #tpu.memory_space<vmem>>, vector<4x4xf32>
    %c0_412 = arith.constant 0 : index
    %c0_413 = arith.constant 0 : index
    %c36_414 = arith.constant 36 : index
    %457 = vector.load %arg8[%c0_412, %c0_413, %c36_414] : memref<1x4x64xf32, #tpu.memory_space<vmem>>, vector<1x4x4xf32>
    %458 = vector.shape_cast %457 : vector<1x4x4xf32> to vector<4x4xf32>
    %459 = vector.shape_cast %456 : vector<4x4xf32> to vector<1x4x4xf32>
    tpu.vector_store %arg8[%c0_412, %c0_413, %c36_414], %459 {strides = array<i32>} : memref<1x4x64xf32, #tpu.memory_space<vmem>>, vector<1x4x4xf32>,
    %c0_415 = arith.constant 0 : index
    %c84_416 = arith.constant 84 : index
    %460 = vector.load %arg11[%c0_415, %c84_416] : memref<4x256xf32, #tpu.memory_space<vmem>>, vector<4x4xf32>
    %c0_417 = arith.constant 0 : index
    %c0_418 = arith.constant 0 : index
    %c40 = arith.constant 40 : index
    %461 = vector.load %arg8[%c0_417, %c0_418, %c40] : memref<1x4x64xf32, #tpu.memory_space<vmem>>, vector<1x4x4xf32>
    %462 = vector.shape_cast %461 : vector<1x4x4xf32> to vector<4x4xf32>
    %463 = vector.shape_cast %460 : vector<4x4xf32> to vector<1x4x4xf32>
    tpu.vector_store %arg8[%c0_417, %c0_418, %c40], %463 {strides = array<i32>} : memref<1x4x64xf32, #tpu.memory_space<vmem>>, vector<1x4x4xf32>,
    %c0_419 = arith.constant 0 : index
    %c90 = arith.constant 90 : index
    %464 = vector.load %arg11[%c0_419, %c90] : memref<4x256xf32, #tpu.memory_space<vmem>>, vector<4x4xf32>
    %c0_420 = arith.constant 0 : index
    %c0_421 = arith.constant 0 : index
    %c44_422 = arith.constant 44 : index
    %465 = vector.load %arg8[%c0_420, %c0_421, %c44_422] : memref<1x4x64xf32, #tpu.memory_space<vmem>>, vector<1x4x4xf32>
    %466 = vector.shape_cast %465 : vector<1x4x4xf32> to vector<4x4xf32>
    %467 = vector.shape_cast %464 : vector<4x4xf32> to vector<1x4x4xf32>
    tpu.vector_store %arg8[%c0_420, %c0_421, %c44_422], %467 {strides = array<i32>} : memref<1x4x64xf32, #tpu.memory_space<vmem>>, vector<1x4x4xf32>,
    %c0_423 = arith.constant 0 : index
    %c108 = arith.constant 108 : index
    %468 = vector.load %arg11[%c0_423, %c108] : memref<4x256xf32, #tpu.memory_space<vmem>>, vector<4x4xf32>
    %c0_424 = arith.constant 0 : index
    %c0_425 = arith.constant 0 : index
    %c48_426 = arith.constant 48 : index
    %469 = vector.load %arg8[%c0_424, %c0_425, %c48_426] : memref<1x4x64xf32, #tpu.memory_space<vmem>>, vector<1x4x4xf32>
    %470 = vector.shape_cast %469 : vector<1x4x4xf32> to vector<4x4xf32>
    %471 = vector.shape_cast %468 : vector<4x4xf32> to vector<1x4x4xf32>
    tpu.vector_store %arg8[%c0_424, %c0_425, %c48_426], %471 {strides = array<i32>} : memref<1x4x64xf32, #tpu.memory_space<vmem>>, vector<1x4x4xf32>,
    %c0_427 = arith.constant 0 : index
    %c114 = arith.constant 114 : index
    %472 = vector.load %arg11[%c0_427, %c114] : memref<4x256xf32, #tpu.memory_space<vmem>>, vector<4x4xf32>
    %c0_428 = arith.constant 0 : index
    %c0_429 = arith.constant 0 : index
    %c52 = arith.constant 52 : index
    %473 = vector.load %arg8[%c0_428, %c0_429, %c52] : memref<1x4x64xf32, #tpu.memory_space<vmem>>, vector<1x4x4xf32>
    %474 = vector.shape_cast %473 : vector<1x4x4xf32> to vector<4x4xf32>
    %475 = vector.shape_cast %472 : vector<4x4xf32> to vector<1x4x4xf32>
    tpu.vector_store %arg8[%c0_428, %c0_429, %c52], %475 {strides = array<i32>} : memref<1x4x64xf32, #tpu.memory_space<vmem>>, vector<1x4x4xf32>,
    %c0_430 = arith.constant 0 : index
    %c120_431 = arith.constant 120 : index
    %476 = vector.load %arg11[%c0_430, %c120_431] : memref<4x256xf32, #tpu.memory_space<vmem>>, vector<4x4xf32>
    %c0_432 = arith.constant 0 : index
    %c0_433 = arith.constant 0 : index
    %c56_434 = arith.constant 56 : index
    %477 = vector.load %arg8[%c0_432, %c0_433, %c56_434] : memref<1x4x64xf32, #tpu.memory_space<vmem>>, vector<1x4x4xf32>
    %478 = vector.shape_cast %477 : vector<1x4x4xf32> to vector<4x4xf32>
    %479 = vector.shape_cast %476 : vector<4x4xf32> to vector<1x4x4xf32>
    tpu.vector_store %arg8[%c0_432, %c0_433, %c56_434], %479 {strides = array<i32>} : memref<1x4x64xf32, #tpu.memory_space<vmem>>, vector<1x4x4xf32>,
    %c0_435 = arith.constant 0 : index
    %c126 = arith.constant 126 : index
    %480 = vector.load %arg11[%c0_435, %c126] : memref<4x256xf32, #tpu.memory_space<vmem>>, vector<4x4xf32>
    %c0_436 = arith.constant 0 : index
    %c0_437 = arith.constant 0 : index
    %c60_438 = arith.constant 60 : index
    %481 = vector.load %arg8[%c0_436, %c0_437, %c60_438] : memref<1x4x64xf32, #tpu.memory_space<vmem>>, vector<1x4x4xf32>
    %482 = vector.shape_cast %481 : vector<1x4x4xf32> to vector<4x4xf32>
    %483 = vector.shape_cast %480 : vector<4x4xf32> to vector<1x4x4xf32>
    tpu.vector_store %arg8[%c0_436, %c0_437, %c60_438], %483 {strides = array<i32>} : memref<1x4x64xf32, #tpu.memory_space<vmem>>, vector<1x4x4xf32>,
    return
  }
  func.func @transform_0(%arg0: i32) -> (i32, i32, i32) {
    %c0_i32 = arith.constant 0 : i32
    %c0_i32_0 = arith.constant 0 : i32
    %c0_i32_1 = arith.constant 0 : i32
    return %arg0, %c0_i32, %c0_i32_0 : i32, i32, i32
  }
  func.func @transform_1(%arg0: i32) -> (i32, i32, i32) {
    %c0_i32 = arith.constant 0 : i32
    %c0_i32_0 = arith.constant 0 : i32
    %c0_i32_1 = arith.constant 0 : i32
    %c0_i32_2 = arith.constant 0 : i32
    return %c0_i32, %c0_i32_0, %c0_i32_1 : i32, i32, i32
  }
  func.func @transform_2(%arg0: i32) -> (i32, i32) {
    %c0_i32 = arith.constant 0 : i32
    %c0_i32_0 = arith.constant 0 : i32
    %c0_i32_1 = arith.constant 0 : i32
    return %c0_i32, %c0_i32_0 : i32, i32
  }
  func.func @transform_3(%arg0: i32) -> (i32, i32, i32) {
    %c0_i32 = arith.constant 0 : i32
    %c0_i32_0 = arith.constant 0 : i32
    %c0_i32_1 = arith.constant 0 : i32
    %c0_i32_2 = arith.constant 0 : i32
    return %c0_i32, %c0_i32_0, %c0_i32_1 : i32, i32, i32
  }
  func.func @transform_4(%arg0: i32) -> (i32, i32) {
    %c0_i32 = arith.constant 0 : i32
    %c0_i32_0 = arith.constant 0 : i32
    %c0_i32_1 = arith.constant 0 : i32
    return %c0_i32, %c0_i32_0 : i32, i32
  }
  func.func @transform_5(%arg0: i32) -> (i32, i32) {
    %c0_i32 = arith.constant 0 : i32
    %c0_i32_0 = arith.constant 0 : i32
    %c0_i32_1 = arith.constant 0 : i32
    return %c0_i32, %c0_i32_0 : i32, i32
  }
  func.func @transform_6(%arg0: i32) -> (i32, i32) {
    %c0_i32 = arith.constant 0 : i32
    %c0_i32_0 = arith.constant 0 : i32
    %c0_i32_1 = arith.constant 0 : i32
    return %c0_i32, %c0_i32_0 : i32, i32
  }
  func.func @transform_7(%arg0: i32) -> (i32, i32, i32) {
    %c0_i32 = arith.constant 0 : i32
    %c0_i32_0 = arith.constant 0 : i32
    %c0_i32_1 = arith.constant 0 : i32
    return %arg0, %c0_i32, %c0_i32_0 : i32, i32, i32
  }
}

</mosaic_0001>

<bundles_post_ra>
// kernel: unet_upscale3d.1
= control target key start
LH: loop header
LB: loop body
LE: loop exit
PB: predicated region body
PF: predicated region fallthrough
CT: control target
= control target key end

     0   :  { %s6312_s24 = smov 0   ;;  %s7395_s0 = inlined_call_operand.vmem [shape: bf16[2,24,512], index: 0, kind: input, shape index: {}]   ;;  %s7396_s1 = inlined_call_operand.vmem [shape: bf16[27,4,12], index: 1, kind: input, shape index: {}]   ;;  %s7397_s2 = inlined_call_operand.vmem [shape: f32[4,1], index: 2, kind: input, shape index: {}]   ;;  %s7398_s3 = inlined_call_operand.vmem [shape: bf16[27,4,4], index: 3, kind: input, shape index: {}]   ;;  %s7399_s4 = inlined_call_operand.vmem [shape: f32[4,1], index: 4, kind: input, shape index: {}]   ;;  %s7400_s5 = inlined_call_operand.vmem [shape: f32[1,384], index: 5, kind: input, shape index: {}]   ;;  %s7401_s6 = inlined_call_operand.vmem [shape: f32[1,256], index: 6, kind: input, shape index: {}]   ;;  %s7402_s7 = inlined_call_operand.vmem [shape: f32[2,4,64], index: 7, kind: output, shape index: {}]  }
   0x1 LB: > { %s5685_s25 = sadd.s32 4294967295, %s6210_s24   ;;  %p5689_p0 = scmp.ge.s32.totalorder %s6210_s24, 1  ;;  %s6210_s24 = sphi %s6312_s24, %s17_s24  }
   0x2   : > { %p237_p1 = scmp.lt.s32.totalorder %s6210_s24, 3 }
   0x4   : > { %p238_p2 = pnand %p5689_p0, %p237_p1 }
   0x5   : > { %p268_p3 = scmp.lt.s32.totalorder (!%p238_p2), %s5685_s25, 1  ;;  %v6212_v0 = vmov (!%p238_p2), 0   ;;  %v6213_v1 = vmov (!%p238_p2), 0.0   ;;  %vm6214_vm0 = vmmov (!%p238_p2), 0   ;;  %s6215_s30 = smov (!%p238_p2), 127   ;;  %vm309_vm1 = vcmask (!%p238_p2), 1045504  }
   0x6   : > { %241 = sbr.rel (%p238_p2) target bundleno = 1987 (0x7c3), region = 48  ;;  %351 = vmatprep.mubr.bf16.mxu0 (!%p238_p2), %v6212_v0  ;;  %6180 = vset.pattern.permute.xlu0 (!%p238_p2), %v6212_v0  ;;  %3367 = vst [vmem:[#allocation3] sm:$0xff] (!%p238_p2), %v6213_v1  ;;  %3368 = vst [vmem:[#allocation3 + $0x8] sm:$0xf] (!%p238_p2), %v6213_v1  ;;  %v5692_v21 = vld [vmem:[%s7396_s1 + $0x2] sm:$0x3] (!%p238_p2) }
   0x7   : > { %5949 = vmatprep.subr.bf16.mxu1 (!%p238_p2), %v6213_v1  ;;  %5951 = vmatprep.mubr.msk.bf16.mxu1 (!%p238_p2), %vm6214_vm0, %v6213_v1  ;;  %vm305_vm2 = vcmask (!%p238_p2), 97280   ;;  %s6216_s10 = smov (!%p238_p2), 123   ;;  %v282_v32 = vld [vmem:[%s7396_s1] sm:$0x3] (!%p238_p2)  ;;  %s6217_s13 = smov (!%p238_p2), 122   ;;  %vm536_vm3 = vcmask (!%p238_p2), 1039360  }
   0x8   : > { %s6218_s14 = smov (!%p238_p2), 118   ;;  %s6219_s15 = smov (!%p238_p2), 117   ;;  %v5705_v43 = vld [vmem:[%s7396_s1 + $0x4] sm:$0x3] (!%p238_p2)  ;;  %vm646_vm4 = vcmask (!%p238_p2), 1006592   ;;  %vm889_vm5 = vcmask (!%p238_p2), 998400  }
   0x9   : > { %s6220_s16 = smov (!%p238_p2), 78   ;;  %s6221_s17 = smov (!%p238_p2), 77   ;;  %v5713_v55 = vld [vmem:[%s7396_s1 + $0x6] sm:$0x3] (!%p238_p2)  ;;  %vm999_vm6 = vcmask (!%p238_p2), 965632   ;;  %vm1218_vm7 = vcmask (!%p238_p2), 957440  }
   0xa   : > { %s6222_s18 = smov (!%p238_p2), 73   ;;  %s6223_s19 = smov (!%p238_p2), 72   ;;  %vm1328_vm8 = vcmask (!%p238_p2), 637952   ;;  %vm1547_vm9 = vcmask (!%p238_p2), 629760   ;;  %vm1657_vm10 = vcmask (!%p238_p2), 596992   ;;  %vm1876_vm11 = vcmask (!%p238_p2), 588800  }
   0xb   : > { %s6224_s20 = smov (!%p238_p2), 68   ;;  %s6225_s21 = smov (!%p238_p2), 67   ;;  %vm1986_vm12 = vcmask (!%p238_p2), 556032   ;;  %vm2205_vm13 = vcmask (!%p238_p2), 547840   ;;  %vm2315_vm14 = vcmask (!%p238_p2), 228352   ;;  %vm2534_vm15 = vcmask (!%p238_p2), 220160  }
   0xc   : > { %s6227_s9 = smov (!%p238_p2), 27   ;;  %s6228_s12 = smov (!%p238_p2), 23  }
   0xd   : > { %s7404_s25 = smov (!%p268_p3, %s5685_s25), 1  ;;  %s6230_s23 = smov 18  }
   0xe   : > { %s6111_s26 = smul.u32 48, %s7404_s25  ;;  %s6231_s8 = smov 17  }
   0xf   : > { %s6232_s11 = smov 39   ;;  %s6240_s22 = smov 126  }
  0x10   : > { %s6333_s29 = scalar_lea.vmem %s7395_s0, %s6111_s26  ;;  %s6226_s26 = smov 28  }
  0x11   : > { %v6336_v2 = vld [vmem:[%s6333_s29 + $0x8] ss:$16 sps:$4 sm:$0x3f]   ;;  %v506_v3 = vld [vmem:[%s6333_s29] sm:$0xff]  ;;  %v508_v4 = vld [vmem:[%s6333_s29 + $0x10] sm:$0x33] }
  0x12   : > { %532 = vrot.lane.b32.xlu1 %v6336_v2, %s6215_s30  ;;  %v6342_v5 = vcombine.low %v506_v3, %v508_v4  ;;  %v6345_v6 = vld [vmem:[%s6333_s29 + $0xc] ss:$16 sps:$4 sm:$0x3f]   ;;  %v748_v7 = vld [vmem:[%s6333_s29 + $0x20] sm:$0xff]  ;;  %v283_v8 = vld [vmem:[%s6333_s29 + $0x10] sm:$0xcc]  ;;  %v6351_v9 = vcombine.high %v506_v3, %v508_v4 }
  0x13   : > { %v5694_v10 = vcombine.high %v283_v8, %v748_v7  ;;  %v5693_v11 = vcombine.low %v283_v8, %v748_v7  ;;  %v746_v12 = vld [vmem:[%s6333_s29 + $0x10] sm:$0xcc]  ;;  %v6193_v15 = vld [vmem:[%s6333_s29 + $0x18] ss:$16 sps:$4 sm:$0xfc]   ;;  %s6243_s27 = smov 115  }
  0x14   : > { %528 = vrot.lane.b32.xlu0 %v6342_v5, %s6215_s30  ;;  %v280_v16 = vld [vmem:[%s6333_s29 + $0x10] sm:$0x33]  ;;  %v304_v18 = vrot.slane %v6193_v15, 2  ;;  %v6196_v22 = vld [vmem:[%s6333_s29 + $0x8] ss:$16 sps:$4 sm:$0x3f]   ;;  %v5719_v23 = vcombine.high %v746_v12, %v748_v7  ;;  %v5718_v26 = vcombine.low %v746_v12, %v748_v7 }
  0x15   : > { %v303_v13 = vrot.slane %v5694_v10, 2  ;;  %v302_v14 = vrot.slane %v5693_v11, 2  ;;  %v5700_v19 = vcombine.high %v506_v3, %v280_v16  ;;  %v5699_v20 = vcombine.low %v506_v3, %v280_v16  ;;  %v6188_v29 = vld [vmem:[%s6333_s29 + $0x1c] ss:$16 sps:$4 sm:$0xfc]   ;;  %s6244_s28 = smov 116  }
  0x16   : > { %534 = vrot.lane.b32.xlu1 %v6345_v6, %s6215_s30  ;;  %v317_v24 = vsel %vm309_vm1, %v304_v18, 0  ;;  %v423_v27 = vsel %vm309_vm1, %v6196_v22, 0  ;;  %v6378_v28 = vrot.slane %v5719_v23, 2  ;;  %v6387_v30 = vrot.slane %v5718_v26, 2  ;;  %v5717_v4 = vld [vmem:[%s7396_s1 + $0x8] sm:$0x3] }
  0x17   : > { %5696 = vmatprep.subr.msk.bf16.mxu0 %vm309_vm1, %v303_v13  ;;  %v311_v17 = vsel %vm309_vm1, %v302_v14, 0  ;;  %v417_v25 = vsel %vm309_vm1, %v5699_v20, 0  ;;  %5950 = vmatpush3.bf16.msra.mxu1 %v317_v24  ;;  %v6190_v31 = vld [vmem:[%s6333_s29 + $0x18] ss:$16 sps:$4 sm:$0xfc]   ;;  %v6396_v33 = vrot.slane %v6188_v29, 2 }
  0x18   : > { %530 = vrot.lane.b32.xlu0 %v6351_v9, %s6215_s30  ;;  %320 = vmatpush1.bf16.msra.mxu0 %v311_v17  ;;  %v6400_v34 = vrot.slane %v6190_v31, 2  ;;  %v5725_v17 = vld [vmem:[%s7396_s1 + $0xa] sm:$0x3]  ;;  %s6245_s29 = smov 92  }
  0x19   : > { %5702 = vmatprep.subr.msk.bf16.mxu0 %vm309_vm1, %v5700_v19  ;;  %5955 = vmatprep.subr.bf16.mxu1 %v6213_v1 }
  0x1a   : > { %640 = vrot.lane.b32.xlu1 %v6351_v9, %s6216_s10  ;;  %5952 = vmatmul.mubr.msk.bf16.vlgmr.msra.gmra.mrb[0].mxu1 %vm305_vm2, %v5692_v21 }
  0x1b   : > { %5697 = vmatmul.mubr.msk.bf16.vlgmr.msra.gmra.mrb[0].mxu0 %vm305_vm2, %v5692_v21  ;;  %5957 = vmatprep.mubr.msk.bf16.mxu1 %vm6214_vm0, %v6213_v1 }
  0x1c   : > { %638 = vrot.lane.b32.xlu0 %v6342_v5, %s6216_s10  ;;  %426 = vmatpush1.bf16.msra.mxu0 %v417_v25 }
  0x1d   : > { %457 = vmatprep.mubr.bf16.mxu0 %v6212_v0  ;;  %5956 = vmatpush3.bf16.msra.mxu1 %v423_v27  ;;  %v5729_v27 = vld [vmem:[%s7396_s1 + $0xc] sm:$0x3] }
  0x1e   : > { %644 = vrot.lane.b32.xlu1 %v6345_v6, %s6216_s10  ;;  %5961 = vmatprep.subr.bf16.mxu1 %v6213_v1 }
  0x20   : > { %642 = vrot.lane.b32.xlu0 %v6336_v2, %s6216_s10 }
  0x22   : > { %774 = vrot.lane.b32.xlu1 %v6378_v28, %s6216_s10  ;;  %5958 = vmatmul.mubr.msk.bf16.vlgmr.msra.gmra.mrb[4].mxu1 %vm305_vm2, %v282_v32 }
  0x23   : > { %5703 = vmatmul.mubr.msk.bf16.vlgmr.msra.gmra.mrb[4].mxu0 %vm305_vm2, %v282_v32  ;;  %5963 = vmatprep.mubr.msk.bf16.mxu1 %vm6214_vm0, %v6213_v1 }
  0x24   : > { %772 = vrot.lane.b32.xlu0 %v6387_v30, %s6216_s10  ;;  %584 = vmatprep.mubr.bf16.mxu0 %v6212_v0 }
  0x26   : > { %778 = vrot.lane.b32.xlu1 %v6396_v33, %s6216_s10 }
  0x28   : > { %776 = vrot.lane.b32.xlu0 %v6400_v34, %s6216_s10  ;;  %s6248_s10 = smov 91  }
  0x2a   : > { %883 = vrot.lane.b32.xlu1 %v6351_v9, %s6217_s13 }
  0x2c   : > { %881 = vrot.lane.b32.xlu0 %v6342_v5, %s6217_s13 }
  0x2e   : > { %887 = vrot.lane.b32.xlu1 %v6345_v6, %s6217_s13 }
  0x30   : > { %885 = vrot.lane.b32.xlu0 %v6336_v2, %s6217_s13 }
  0x32   : > { %993 = vrot.lane.b32.xlu1 %v6351_v9, %s6218_s14 }
  0x34   : > { %991 = vrot.lane.b32.xlu0 %v6342_v5, %s6218_s14 }
  0x36   : > { %997 = vrot.lane.b32.xlu1 %v6345_v6, %s6218_s14 }
  0x38   : > { %995 = vrot.lane.b32.xlu0 %v6336_v2, %s6218_s14 }
  0x3a   : > { %1103 = vrot.lane.b32.xlu1 %v6378_v28, %s6218_s14 }
  0x3c   : > { %1101 = vrot.lane.b32.xlu0 %v6387_v30, %s6218_s14 }
  0x3e   : > { %1107 = vrot.lane.b32.xlu1 %v6396_v33, %s6218_s14 }
  0x40   : > { %1105 = vrot.lane.b32.xlu0 %v6400_v34, %s6218_s14  ;;  %s6234_s14 = smov 107  }
  0x42   : > { %1212 = vrot.lane.b32.xlu1 %v6351_v9, %s6219_s15 }
  0x44   : > { %1210 = vrot.lane.b32.xlu0 %v6342_v5, %s6219_s15 }
  0x46   : > { %1216 = vrot.lane.b32.xlu1 %v6345_v6, %s6219_s15 }
  0x48   : > { %1214 = vrot.lane.b32.xlu0 %v6336_v2, %s6219_s15  ;;  %s6235_s15 = smov 35  }
  0x4a   : > { %1322 = vrot.lane.b32.xlu1 %v6351_v9, %s6220_s16 }
  0x4c   : > { %1320 = vrot.lane.b32.xlu0 %v6342_v5, %s6220_s16 }
  0x4e   : > { %1326 = vrot.lane.b32.xlu1 %v6345_v6, %s6220_s16 }
  0x50   : > { %1324 = vrot.lane.b32.xlu0 %v6336_v2, %s6220_s16 }
  0x52   : > { %1432 = vrot.lane.b32.xlu1 %v6378_v28, %s6220_s16 }
  0x54   : > { %1430 = vrot.lane.b32.xlu0 %v6387_v30, %s6220_s16 }
  0x56   : > { %1436 = vrot.lane.b32.xlu1 %v6396_v33, %s6220_s16 }
  0x58   : > { %1434 = vrot.lane.b32.xlu0 %v6400_v34, %s6220_s16 }
  0x5a   : > { %1541 = vrot.lane.b32.xlu1 %v6351_v9, %s6221_s17 }
  0x5c   : > { %1539 = vrot.lane.b32.xlu0 %v6342_v5, %s6221_s17 }
  0x5e   : > { %1545 = vrot.lane.b32.xlu1 %v6345_v6, %s6221_s17 }
  0x60   : > { %1543 = vrot.lane.b32.xlu0 %v6336_v2, %s6221_s17  ;;  %s6236_s17 = smov 99  }
  0x62   : > { %1651 = vrot.lane.b32.xlu1 %v6351_v9, %s6222_s18 }
  0x64   : > { %1649 = vrot.lane.b32.xlu0 %v6342_v5, %s6222_s18 }
  0x66   : > { %1655 = vrot.lane.b32.xlu1 %v6345_v6, %s6222_s18 }
  0x68   : > { %1653 = vrot.lane.b32.xlu0 %v6336_v2, %s6222_s18 }
  0x6a   : > { %1761 = vrot.lane.b32.xlu1 %v6378_v28, %s6222_s18 }
  0x6c   : > { %1759 = vrot.lane.b32.xlu0 %v6387_v30, %s6222_s18 }
  0x6e   : > { %1765 = vrot.lane.b32.xlu1 %v6396_v33, %s6222_s18 }
  0x70   : > { %1763 = vrot.lane.b32.xlu0 %v6400_v34, %s6222_s18  ;;  %s6237_s18 = smov 31  }
  0x72   : > { %1870 = vrot.lane.b32.xlu1 %v6351_v9, %s6223_s19 }
  0x74   : > { %1868 = vrot.lane.b32.xlu0 %v6342_v5, %s6223_s19 }
  0x76   : > { %1874 = vrot.lane.b32.xlu1 %v6345_v6, %s6223_s19 }
  0x78   : > { %1872 = vrot.lane.b32.xlu0 %v6336_v2, %s6223_s19  ;;  %s6229_s19 = smov 22  }
  0x7a   : > { %1980 = vrot.lane.b32.xlu1 %v6351_v9, %s6224_s20 }
  0x7c   : > { %1978 = vrot.lane.b32.xlu0 %v6342_v5, %s6224_s20 }
  0x7e   : > { %1984 = vrot.lane.b32.xlu1 %v6345_v6, %s6224_s20 }
  0x80   : > { %1982 = vrot.lane.b32.xlu0 %v6336_v2, %s6224_s20 }
  0x82   : > { %2090 = vrot.lane.b32.xlu1 %v6378_v28, %s6224_s20 }
  0x84   : > { %2088 = vrot.lane.b32.xlu0 %v6387_v30, %s6224_s20  ;;  %v533_v35 = vpop.permute.xlu1 %532 }
  0x86   : > { %v529_v36 = vpop.permute.xlu0 %528  ;;  %2094 = vrot.lane.b32.xlu1 %v6396_v33, %s6224_s20 }
  0x88   : > { %2092 = vrot.lane.b32.xlu0 %v6400_v34, %s6224_s20  ;;  %v535_v37 = vpop.permute.xlu1 %534 }
  0x89   : > { %v539_v38 = vsel %vm536_vm3, %v533_v35, %v535_v37 }
  0x8a   : > { %v550_v39 = vsel %vm309_vm1, %v539_v38, 0  ;;  %v531_v40 = vpop.permute.xlu0 %530  ;;  %2199 = vrot.lane.b32.xlu1 %v6351_v9, %s6225_s21 }
  0x8b   : > { %v537_v41 = vsel %vm536_vm3, %v529_v36, %v531_v40  ;;  %v538_v42 = vsel %vm536_vm3, %v531_v40, %v533_v35  ;;  %5962 = vmatpush3.bf16.msra.mxu1 %v550_v39 }
  0x8c   : > { %2197 = vrot.lane.b32.xlu0 %v6342_v5, %s6225_s21  ;;  %5710 = vmatprep.subr.msk.bf16.mxu0 %vm309_vm1, %v538_v42  ;;  %v544_v44 = vsel %vm309_vm1, %v537_v41, 0  ;;  %v641_v45 = vpop.permute.xlu1 %640  ;;  %v5733_v41 = vld [vmem:[%s7396_s1 + $0xe] sm:$0x3] }
  0x8d   : > { %553 = vmatpush1.bf16.msra.mxu0 %v544_v44  ;;  %5967 = vmatprep.subr.bf16.mxu1 %v6213_v1 }
  0x8e   : > { %v639_v46 = vpop.permute.xlu0 %638  ;;  %2203 = vrot.lane.b32.xlu1 %v6345_v6, %s6225_s21  ;;  %5964 = vmatmul.mubr.msk.bf16.vlgmr.msra.gmra.mrb[8].mxu1 %vm305_vm2, %v5705_v43 }
  0x8f   : > { %5969 = vmatprep.mubr.msk.bf16.mxu1 %vm6214_vm0, %v6213_v1  ;;  %v647_v48 = vsel %vm646_vm4, %v639_v46, %v641_v45 }
  0x90   : > { %2201 = vrot.lane.b32.xlu0 %v6336_v2, %s6225_s21  ;;  %5711 = vmatmul.mubr.msk.bf16.vlgmr.msra.gmra.mrb[8].mxu0 %vm305_vm2, %v5705_v43  ;;  %v645_v47 = vpop.permute.xlu1 %644  ;;  %v654_v52 = vsel %vm309_vm1, %v647_v48, 0  ;;  %s6239_s21 = smov 95  }
  0x91   : > { %694 = vmatprep.mubr.bf16.mxu0 %v6212_v0 }
  0x92   : > { %v643_v49 = vpop.permute.xlu0 %642  ;;  %2309 = vrot.lane.b32.xlu1 %v6351_v9, %s6226_s26 }
  0x93   : > { %v649_v50 = vsel %vm646_vm4, %v643_v49, %v645_v47  ;;  %v648_v51 = vsel %vm646_vm4, %v641_v45, %v643_v49 }
  0x94   : > { %2307 = vrot.lane.b32.xlu0 %v6342_v5, %s6226_s26  ;;  %5714 = vmatprep.subr.msk.bf16.mxu0 %vm309_vm1, %v648_v51  ;;  %v660_v53 = vsel %vm309_vm1, %v649_v50, 0  ;;  %v775_v54 = vpop.permute.xlu1 %774  ;;  %v5737_v51 = vld [vmem:[%s7396_s1 + $0x10] sm:$0x3] }
  0x95   : > { %663 = vmatpush1.bf16.msra.mxu0 %v654_v52  ;;  %5968 = vmatpush3.bf16.msra.mxu1 %v660_v53 }
  0x96   : > { %v773_v56 = vpop.permute.xlu0 %772  ;;  %2313 = vrot.lane.b32.xlu1 %v6345_v6, %s6226_s26  ;;  %5973 = vmatprep.subr.bf16.mxu1 %v6213_v1 }
  0x97   : > { %v780_v58 = vsel %vm646_vm4, %v773_v56, %v775_v54 }
  0x98   : > { %2311 = vrot.lane.b32.xlu0 %v6336_v2, %s6226_s26  ;;  %5715 = vmatmul.mubr.msk.bf16.vlgmr.msra.gmra.mrb[12].mxu0 %vm305_vm2, %v5713_v55  ;;  %v779_v57 = vpop.permute.xlu1 %778  ;;  %v787_v62 = vsel %vm309_vm1, %v780_v58, 0 }
  0x99   : > { %5970 = vmatmul.mubr.msk.bf16.vlgmr.msra.gmra.mrb[12].mxu1 %vm305_vm2, %v5713_v55  ;;  %827 = vmatprep.mubr.bf16.mxu0 %v6212_v0 }
  0x9a   : > { %v777_v59 = vpop.permute.xlu0 %776  ;;  %2419 = vrot.lane.b32.xlu1 %v6378_v28, %s6226_s26  ;;  %5975 = vmatprep.mubr.msk.bf16.mxu1 %vm6214_vm0, %v6213_v1 }
  0x9b   : > { %v782_v60 = vsel %vm646_vm4, %v777_v59, %v779_v57  ;;  %v781_v61 = vsel %vm646_vm4, %v775_v54, %v777_v59  ;;  %vm2644_vm4 = vcmask 187392  }
  0x9c   : > { %2417 = vrot.lane.b32.xlu0 %v6387_v30, %s6226_s26  ;;  %5722 = vmatprep.subr.msk.bf16.mxu0 %vm309_vm1, %v781_v61  ;;  %v793_v63 = vsel %vm309_vm1, %v782_v60, 0  ;;  %v884_v3 = vpop.permute.xlu1 %883  ;;  %v5741_v61 = vld [vmem:[%s7396_s1 + $0x12] sm:$0x3] }
  0x9d   : > { %796 = vmatpush1.bf16.msra.mxu0 %v787_v62  ;;  %5974 = vmatpush3.bf16.msra.mxu1 %v793_v63 }
  0x9e   : > { %v882_v7 = vpop.permute.xlu0 %881  ;;  %2423 = vrot.lane.b32.xlu1 %v6396_v33, %s6226_s26  ;;  %5979 = vmatprep.subr.bf16.mxu1 %v6213_v1 }
  0x9f   : > { %v890_v10 = vsel %vm889_vm5, %v882_v7, %v884_v3 }
  0xa0   : > { %2421 = vrot.lane.b32.xlu0 %v6400_v34, %s6226_s26  ;;  %5723 = vmatmul.mubr.msk.bf16.vlgmr.msra.gmra.mrb[16].mxu0 %vm305_vm2, %v5717_v4  ;;  %v888_v8 = vpop.permute.xlu1 %887  ;;  %v897_v14 = vsel %vm309_vm1, %v890_v10, 0  ;;  %s6242_s26 = smov 121  }
  0xa1   : > { %5976 = vmatmul.mubr.msk.bf16.vlgmr.msra.gmra.mrb[16].mxu1 %vm305_vm2, %v5717_v4  ;;  %937 = vmatprep.mubr.bf16.mxu0 %v6212_v0 }
  0xa2   : > { %v886_v11 = vpop.permute.xlu0 %885  ;;  %2528 = vrot.lane.b32.xlu1 %v6351_v9, %s6227_s9  ;;  %5981 = vmatprep.mubr.msk.bf16.mxu1 %vm6214_vm0, %v6213_v1 }
  0xa3   : > { %v892_v12 = vsel %vm889_vm5, %v886_v11, %v888_v8  ;;  %v891_v13 = vsel %vm889_vm5, %v884_v3, %v886_v11 }
  0xa4   : > { %2526 = vrot.lane.b32.xlu0 %v6342_v5, %s6227_s9  ;;  %5726 = vmatprep.subr.msk.bf16.mxu0 %vm309_vm1, %v891_v13  ;;  %v903_v15 = vsel %vm309_vm1, %v892_v12, 0  ;;  %v994_v16 = vpop.permute.xlu1 %993 }
  0xa5   : > { %906 = vmatpush1.bf16.msra.mxu0 %v897_v14  ;;  %5980 = vmatpush3.bf16.msra.mxu1 %v903_v15 }
  0xa6   : > { %v992_v18 = vpop.permute.xlu0 %991  ;;  %2532 = vrot.lane.b32.xlu1 %v6345_v6, %s6227_s9  ;;  %5985 = vmatprep.subr.bf16.mxu1 %v6213_v1 }
  0xa7   : > { %v1000_v20 = vsel %vm999_vm6, %v992_v18, %v994_v16 }
  0xa8   : > { %2530 = vrot.lane.b32.xlu0 %v6336_v2, %s6227_s9  ;;  %5727 = vmatmul.mubr.msk.bf16.vlgmr.msra.gmra.mrb[20].mxu0 %vm305_vm2, %v5725_v17  ;;  %v998_v19 = vpop.permute.xlu1 %997  ;;  %v1007_v24 = vsel %vm309_vm1, %v1000_v20, 0  ;;  %s6247_s9 = smov 90  }
  0xa9   : > { %5982 = vmatmul.mubr.msk.bf16.vlgmr.msra.gmra.mrb[20].mxu1 %vm305_vm2, %v5725_v17  ;;  %1047 = vmatprep.mubr.bf16.mxu0 %v6212_v0 }
  0xaa   : > { %v996_v21 = vpop.permute.xlu0 %995  ;;  %2638 = vrot.lane.b32.xlu1 %v6351_v9, %s6228_s12  ;;  %5987 = vmatprep.mubr.msk.bf16.mxu1 %vm6214_vm0, %v6213_v1 }
  0xab   : > { %v1002_v22 = vsel %vm999_vm6, %v996_v21, %v998_v19  ;;  %v1001_v23 = vsel %vm999_vm6, %v994_v16, %v996_v21 }
  0xac   : > { %2636 = vrot.lane.b32.xlu0 %v6342_v5, %s6228_s12  ;;  %5730 = vmatprep.subr.msk.bf16.mxu0 %vm309_vm1, %v1001_v23  ;;  %v1013_v25 = vsel %vm309_vm1, %v1002_v22, 0  ;;  %v1104_v26 = vpop.permute.xlu1 %1103 }
  0xad   : > { %1016 = vmatpush1.bf16.msra.mxu0 %v1007_v24  ;;  %5986 = vmatpush3.bf16.msra.mxu1 %v1013_v25  ;;  %v5753_v25 = vld [vmem:[%s7396_s1 + $0x18] sm:$0x3] }
  0xae   : > { %v1102_v29 = vpop.permute.xlu0 %1101  ;;  %2642 = vrot.lane.b32.xlu1 %v6345_v6, %s6228_s12  ;;  %5991 = vmatprep.subr.bf16.mxu1 %v6213_v1 }
  0xaf   : > { %v1109_v32 = vsel %vm999_vm6, %v1102_v29, %v1104_v26 }
  0xb0   : > { %2640 = vrot.lane.b32.xlu0 %v6336_v2, %s6228_s12  ;;  %5731 = vmatmul.mubr.msk.bf16.vlgmr.msra.gmra.mrb[24].mxu0 %vm305_vm2, %v5729_v27  ;;  %v1108_v31 = vpop.permute.xlu1 %1107  ;;  %v1116_v38 = vsel %vm309_vm1, %v1109_v32, 0 }
  0xb1   : > { %5988 = vmatmul.mubr.msk.bf16.vlgmr.msra.gmra.mrb[24].mxu1 %vm305_vm2, %v5729_v27  ;;  %1156 = vmatprep.mubr.bf16.mxu0 %v6212_v0 }
  0xb2   : > { %v1106_v35 = vpop.permute.xlu0 %1105  ;;  %2748 = vrot.lane.b32.xlu1 %v6378_v28, %s6228_s12  ;;  %5993 = vmatprep.mubr.msk.bf16.mxu1 %vm6214_vm0, %v6213_v1 }
  0xb3   : > { %v1111_v36 = vsel %vm999_vm6, %v1106_v35, %v1108_v31  ;;  %v1110_v37 = vsel %vm999_vm6, %v1104_v26, %v1106_v35  ;;  %vm2863_vm6 = vcmask 179200  }
  0xb4   : > { %2746 = vrot.lane.b32.xlu0 %v6387_v30, %s6228_s12  ;;  %5734 = vmatprep.subr.msk.bf16.mxu0 %vm309_vm1, %v1110_v37  ;;  %v1122_v39 = vsel %vm309_vm1, %v1111_v36, 0  ;;  %v1213_v40 = vpop.permute.xlu1 %1212 }
  0xb5   : > { %1125 = vmatpush1.bf16.msra.mxu0 %v1116_v38  ;;  %5992 = vmatpush3.bf16.msra.mxu1 %v1122_v39  ;;  %v5757_v39 = vld [vmem:[%s7396_s1 + $0x1a] sm:$0x3] }
  0xb6   : > { %v1211_v42 = vpop.permute.xlu0 %1210  ;;  %2752 = vrot.lane.b32.xlu1 %v6396_v33, %s6228_s12  ;;  %5997 = vmatprep.subr.bf16.mxu1 %v6213_v1 }
  0xb7   : > { %v1219_v44 = vsel %vm1218_vm7, %v1211_v42, %v1213_v40 }
  0xb8   : > { %2750 = vrot.lane.b32.xlu0 %v6400_v34, %s6228_s12  ;;  %5735 = vmatmul.mubr.msk.bf16.vlgmr.msra.gmra.mrb[28].mxu0 %vm305_vm2, %v5733_v41  ;;  %v1217_v43 = vpop.permute.xlu1 %1216  ;;  %v1226_v48 = vsel %vm309_vm1, %v1219_v44, 0  ;;  %s6233_s12 = smov 43  }
  0xb9   : > { %5994 = vmatmul.mubr.msk.bf16.vlgmr.msra.gmra.mrb[28].mxu1 %vm305_vm2, %v5733_v41  ;;  %1266 = vmatprep.mubr.bf16.mxu0 %v6212_v0 }
  0xba   : > { %v1215_v45 = vpop.permute.xlu0 %1214  ;;  %2857 = vrot.lane.b32.xlu1 %v6351_v9, %s6229_s19  ;;  %5999 = vmatprep.mubr.msk.bf16.mxu1 %vm6214_vm0, %v6213_v1 }
  0xbb   : > { %v1221_v46 = vsel %vm1218_vm7, %v1215_v45, %v1217_v43  ;;  %v1220_v47 = vsel %vm1218_vm7, %v1213_v40, %v1215_v45  ;;  %vm2973_vm7 = vcmask 146432  }
  0xbc   : > { %2855 = vrot.lane.b32.xlu0 %v6342_v5, %s6229_s19  ;;  %5738 = vmatprep.subr.msk.bf16.mxu0 %vm309_vm1, %v1220_v47  ;;  %v1232_v49 = vsel %vm309_vm1, %v1221_v46, 0  ;;  %v1323_v50 = vpop.permute.xlu1 %1322 }
  0xbd   : > { %1235 = vmatpush1.bf16.msra.mxu0 %v1226_v48  ;;  %5998 = vmatpush3.bf16.msra.mxu1 %v1232_v49  ;;  %v5761_v49 = vld [vmem:[%s7396_s1 + $0x1c] sm:$0x3] }
  0xbe   : > { %v1321_v52 = vpop.permute.xlu0 %1320  ;;  %2861 = vrot.lane.b32.xlu1 %v6345_v6, %s6229_s19  ;;  %6003 = vmatprep.subr.bf16.mxu1 %v6213_v1 }
  0xbf   : > { %v1329_v54 = vsel %vm1328_vm8, %v1321_v52, %v1323_v50 }
  0xc0   : > { %2859 = vrot.lane.b32.xlu0 %v6336_v2, %s6229_s19  ;;  %5739 = vmatmul.mubr.msk.bf16.vlgmr.msra.gmra.mrb[32].mxu0 %vm305_vm2, %v5737_v51  ;;  %v1327_v53 = vpop.permute.xlu1 %1326  ;;  %v1336_v58 = vsel %vm309_vm1, %v1329_v54, 0  ;;  %s6238_s19 = smov 103  }
  0xc1   : > { %6000 = vmatmul.mubr.msk.bf16.vlgmr.msra.gmra.mrb[32].mxu1 %vm305_vm2, %v5737_v51  ;;  %1376 = vmatprep.mubr.bf16.mxu0 %v6212_v0 }
  0xc2   : > { %v1325_v55 = vpop.permute.xlu0 %1324  ;;  %2967 = vrot.lane.b32.xlu1 %v6351_v9, %s6230_s23  ;;  %6005 = vmatprep.mubr.msk.bf16.mxu1 %vm6214_vm0, %v6213_v1 }
  0xc3   : > { %v1331_v56 = vsel %vm1328_vm8, %v1325_v55, %v1327_v53  ;;  %v1330_v57 = vsel %vm1328_vm8, %v1323_v50, %v1325_v55 }
  0xc4   : > { %2965 = vrot.lane.b32.xlu0 %v6342_v5, %s6230_s23  ;;  %5742 = vmatprep.subr.msk.bf16.mxu0 %vm309_vm1, %v1330_v57  ;;  %v1342_v59 = vsel %vm309_vm1, %v1331_v56, 0  ;;  %v1433_v60 = vpop.permute.xlu1 %1432 }
  0xc5   : > { %1345 = vmatpush1.bf16.msra.mxu0 %v1336_v58  ;;  %6004 = vmatpush3.bf16.msra.mxu1 %v1342_v59 }
  0xc6   : > { %v1431_v62 = vpop.permute.xlu0 %1430  ;;  %2971 = vrot.lane.b32.xlu1 %v6345_v6, %s6230_s23  ;;  %6009 = vmatprep.subr.bf16.mxu1 %v6213_v1 }
  0xc7   : > { %v1438_v3 = vsel %vm1328_vm8, %v1431_v62, %v1433_v60 }
  0xc8   : > { %2969 = vrot.lane.b32.xlu0 %v6336_v2, %s6230_s23  ;;  %5743 = vmatmul.mubr.msk.bf16.vlgmr.msra.gmra.mrb[36].mxu0 %vm305_vm2, %v5741_v61  ;;  %v1437_v63 = vpop.permute.xlu1 %1436  ;;  %v1445_v10 = vsel %vm309_vm1, %v1438_v3, 0 }
  0xc9   : > { %6006 = vmatmul.mubr.msk.bf16.vlgmr.msra.gmra.mrb[36].mxu1 %vm305_vm2, %v5741_v61  ;;  %1485 = vmatprep.mubr.bf16.mxu0 %v6212_v0 }
  0xca   : > { %v1435_v4 = vpop.permute.xlu0 %1434  ;;  %3077 = vrot.lane.b32.xlu1 %v6378_v28, %s6230_s23  ;;  %6011 = vmatprep.mubr.msk.bf16.mxu1 %vm6214_vm0, %v6213_v1  ;;  %v5745_v28 = vld [vmem:[%s7396_s1 + $0x14] sm:$0x3] }
  0xcb   : > { %v1440_v7 = vsel %vm1328_vm8, %v1435_v4, %v1437_v63  ;;  %v1439_v8 = vsel %vm1328_vm8, %v1433_v60, %v1435_v4 }
  0xcc   : > { %3075 = vrot.lane.b32.xlu0 %v6387_v30, %s6230_s23  ;;  %5746 = vmatprep.subr.msk.bf16.mxu0 %vm309_vm1, %v1439_v8  ;;  %v1451_v11 = vsel %vm309_vm1, %v1440_v7, 0  ;;  %v1542_v12 = vpop.permute.xlu1 %1541  ;;  %v5765_v7 = vld [vmem:[%s7396_s1 + $0x1e] sm:$0x3] }
  0xcd   : > { %1454 = vmatpush1.bf16.msra.mxu0 %v1445_v10  ;;  %6010 = vmatpush3.bf16.msra.mxu1 %v1451_v11 }
  0xce   : > { %v1540_v13 = vpop.permute.xlu0 %1539  ;;  %3081 = vrot.lane.b32.xlu1 %v6396_v33, %s6230_s23  ;;  %6015 = vmatprep.subr.bf16.mxu1 %v6213_v1 }
  0xcf   : > { %v1548_v14 = vsel %vm1547_vm9, %v1540_v13, %v1542_v12 }
  0xd0   : > { %3079 = vrot.lane.b32.xlu0 %v6400_v34, %s6230_s23  ;;  %5747 = vmatmul.mubr.msk.bf16.vlgmr.msra.gmra.mrb[40].mxu0 %vm305_vm2, %v5745_v28  ;;  %v1546_v30 = vpop.permute.xlu1 %1545  ;;  %v1555_v17 = vsel %vm309_vm1, %v1548_v14, 0  ;;  %s6241_s23 = smov 120  }
  0xd1   : > { %6012 = vmatmul.mubr.msk.bf16.vlgmr.msra.gmra.mrb[40].mxu1 %vm305_vm2, %v5745_v28  ;;  %1595 = vmatprep.mubr.bf16.mxu0 %v6212_v0 }
  0xd2   : > { %v1544_v15 = vpop.permute.xlu0 %1543  ;;  %3186 = vrot.lane.b32.xlu1 %v6351_v9, %s6231_s8  ;;  %6017 = vmatprep.mubr.msk.bf16.mxu1 %vm6214_vm0, %v6213_v1  ;;  %v5749_v9 = vld [vmem:[%s7396_s1 + $0x16] sm:$0x3] }
  0xd3   : > { %v1550_v33 = vsel %vm1547_vm9, %v1544_v15, %v1546_v30  ;;  %v1549_v16 = vsel %vm1547_vm9, %v1542_v12, %v1544_v15  ;;  %vm3192_vm9 = vcmask 138240  }
  0xd4   : > { %3184 = vrot.lane.b32.xlu0 %v6342_v5, %s6231_s8  ;;  %5750 = vmatprep.subr.msk.bf16.mxu0 %vm309_vm1, %v1549_v16  ;;  %v1561_v34 = vsel %vm309_vm1, %v1550_v33, 0  ;;  %v1652_v18 = vpop.permute.xlu1 %1651 }
  0xd5   : > { %1564 = vmatpush1.bf16.msra.mxu0 %v1555_v17  ;;  %6016 = vmatpush3.bf16.msra.mxu1 %v1561_v34 }
  0xd6   : > { %v1650_v19 = vpop.permute.xlu0 %1649  ;;  %3190 = vrot.lane.b32.xlu1 %v6345_v6, %s6231_s8  ;;  %6021 = vmatprep.subr.bf16.mxu1 %v6213_v1 }
  0xd7   : > { %v1658_v20 = vsel %vm1657_vm10, %v1650_v19, %v1652_v18 }
  0xd8   : > { %3188 = vrot.lane.b32.xlu0 %v6336_v2, %s6231_s8  ;;  %5751 = vmatmul.mubr.msk.bf16.vlgmr.msra.gmra.mrb[44].mxu0 %vm305_vm2, %v5749_v9  ;;  %v1656_v5 = vpop.permute.xlu1 %1655  ;;  %v1665_v23 = vsel %vm309_vm1, %v1658_v20, 0  ;;  %s6246_s8 = smov 114  }
  0xd9   : > { %6018 = vmatmul.mubr.msk.bf16.vlgmr.msra.gmra.mrb[44].mxu1 %vm305_vm2, %v5749_v9  ;;  %1705 = vmatprep.mubr.bf16.mxu0 %v6212_v0 }
  0xda   : > { %v1654_v21 = vpop.permute.xlu0 %1653  ;;  %6023 = vmatprep.mubr.msk.bf16.mxu1 %vm6214_vm0, %v6213_v1 }
  0xdb   : > { %v1660_v22 = vsel %vm1657_vm10, %v1654_v21, %v1656_v5  ;;  %v1659_v6 = vsel %vm1657_vm10, %v1652_v18, %v1654_v21 }
  0xdc   : > { %5754 = vmatprep.subr.msk.bf16.mxu0 %vm309_vm1, %v1659_v6  ;;  %v1671_v2 = vsel %vm309_vm1, %v1660_v22, 0  ;;  %v1762_v24 = vpop.permute.xlu1 %1761  ;;  %v5769_v6 = vld [vmem:[%s7396_s1 + $0x20] sm:$0x3] }
  0xdd   : > { %1674 = vmatpush1.bf16.msra.mxu0 %v1665_v23  ;;  %6022 = vmatpush3.bf16.msra.mxu1 %v1671_v2 }
  0xde   : > { %v1760_v26 = vpop.permute.xlu0 %1759  ;;  %6027 = vmatprep.subr.bf16.mxu1 %v6213_v1 }
  0xdf   : > { %v1767_v29 = vsel %vm1657_vm10, %v1760_v26, %v1762_v24 }
  0xe0   : > { %5755 = vmatmul.mubr.msk.bf16.vlgmr.msra.gmra.mrb[48].mxu0 %vm305_vm2, %v5753_v25  ;;  %v1766_v27 = vpop.permute.xlu1 %1765  ;;  %v1774_v36 = vsel %vm309_vm1, %v1767_v29, 0 }
  0xe1   : > { %6024 = vmatmul.mubr.msk.bf16.vlgmr.msra.gmra.mrb[48].mxu1 %vm305_vm2, %v5753_v25  ;;  %1814 = vmatprep.mubr.bf16.mxu0 %v6212_v0 }
  0xe2   : > { %v1764_v31 = vpop.permute.xlu0 %1763  ;;  %6029 = vmatprep.mubr.msk.bf16.mxu1 %vm6214_vm0, %v6213_v1 }
  0xe3   : > { %v1769_v32 = vsel %vm1657_vm10, %v1764_v31, %v1766_v27  ;;  %v1768_v35 = vsel %vm1657_vm10, %v1762_v24, %v1764_v31 }
  0xe4   : > { %5758 = vmatprep.subr.msk.bf16.mxu0 %vm309_vm1, %v1768_v35  ;;  %v1780_v37 = vsel %vm309_vm1, %v1769_v32, 0  ;;  %v1871_v38 = vpop.permute.xlu1 %1870 }
  0xe5   : > { %1783 = vmatpush1.bf16.msra.mxu0 %v1774_v36  ;;  %6028 = vmatpush3.bf16.msra.mxu1 %v1780_v37  ;;  %v5773_v36 = vld [vmem:[%s7396_s1 + $0x22] sm:$0x3] }
  0xe6   : > { %v1869_v40 = vpop.permute.xlu0 %1868  ;;  %6033 = vmatprep.subr.bf16.mxu1 %v6213_v1 }
  0xe7   : > { %v1877_v42 = vsel %vm1876_vm11, %v1869_v40, %v1871_v38 }
  0xe8   : > { %5759 = vmatmul.mubr.msk.bf16.vlgmr.msra.gmra.mrb[52].mxu0 %vm305_vm2, %v5757_v39  ;;  %v1875_v41 = vpop.permute.xlu1 %1874  ;;  %v1884_v46 = vsel %vm309_vm1, %v1877_v42, 0 }
  0xe9   : > { %6030 = vmatmul.mubr.msk.bf16.vlgmr.msra.gmra.mrb[52].mxu1 %vm305_vm2, %v5757_v39  ;;  %1924 = vmatprep.mubr.bf16.mxu0 %v6212_v0 }
  0xea   : > { %v1873_v43 = vpop.permute.xlu0 %1872  ;;  %6035 = vmatprep.mubr.msk.bf16.mxu1 %vm6214_vm0, %v6213_v1 }
  0xeb   : > { %v1879_v44 = vsel %vm1876_vm11, %v1873_v43, %v1875_v41  ;;  %v1878_v45 = vsel %vm1876_vm11, %v1871_v38, %v1873_v43  ;;  %vm3374_vm11 = vcmask 380248  }
  0xec   : > { %5762 = vmatprep.subr.msk.bf16.mxu0 %vm309_vm1, %v1878_v45  ;;  %v1890_v47 = vsel %vm309_vm1, %v1879_v44, 0  ;;  %v1981_v48 = vpop.permute.xlu1 %1980 }
  0xed   : > { %1893 = vmatpush1.bf16.msra.mxu0 %v1884_v46  ;;  %6034 = vmatpush3.bf16.msra.mxu1 %v1890_v47  ;;  %v394_v56 = vpop.f32.mrb[0].mxu1  ;;  %v5777_v46 = vld [vmem:[%s7396_s1 + $0x24] sm:$0x3] }
  0xee   : > { %v1979_v50 = vpop.permute.xlu0 %1978  ;;  %6039 = vmatprep.subr.bf16.mxu1 %v6213_v1  ;;  %v353_v51 = vpop.f32.mrb[0].mxu0 }
  0xef   : > { %v355_v53 = vpop.f32.mrb[1].mxu0  ;;  %v1987_v54 = vsel %vm1986_vm12, %v1979_v50, %v1981_v48  ;;  %v5953_v61 = vpop.f32.mrb[1].mxu1 }
  0xf0   : > { %5763 = vmatmul.mubr.msk.bf16.vlgmr.msra.gmra.mrb[56].mxu0 %vm305_vm2, %v5761_v49  ;;  %v1985_v52 = vpop.permute.xlu1 %1984  ;;  %v357_v55 = vpop.f32.mrb[2].mxu0  ;;  %v1994_v62 = vsel %vm309_vm1, %v1987_v54, 0 }
  0xf1   : > { %6036 = vmatmul.mubr.msk.bf16.vlgmr.msra.gmra.mrb[56].mxu1 %vm305_vm2, %v5761_v49  ;;  %2034 = vmatprep.mubr.bf16.mxu0 %v6212_v0  ;;  %v358_v58 = vpop.f32.mrb[3].mxu0  ;;  %v397_v4 = vpop.f32.mrb[2].mxu1 }
  0xf2   : > { %v1983_v57 = vpop.permute.xlu0 %1982  ;;  %6041 = vmatprep.mubr.msk.bf16.mxu1 %vm6214_vm0, %v6213_v1  ;;  %v5954_v8 = vpop.f32.mrb[3].mxu1 }
  0xf3   : > { %v1989_v59 = vsel %vm1986_vm12, %v1983_v57, %v1985_v52  ;;  %v1988_v60 = vsel %vm1986_vm12, %v1981_v48, %v1983_v57  ;;  %v6786_v48 = vld [vmem:[#allocation3] sm:$0xff] }
  0xf4   : > { %5766 = vmatprep.subr.msk.bf16.mxu0 %vm309_vm1, %v1988_v60  ;;  %v2000_v63 = vsel %vm309_vm1, %v1989_v59, 0  ;;  %v2091_v3 = vpop.permute.xlu1 %2090 }
  0xf5   : > { %2003 = vmatpush1.bf16.msra.mxu0 %v1994_v62  ;;  %6040 = vmatpush3.bf16.msra.mxu1 %v2000_v63  ;;  %v500_v15 = vpop.f32.mrb[4].mxu1 }
  0xf6   : > { %v2089_v10 = vpop.permute.xlu0 %2088  ;;  %6045 = vmatprep.subr.bf16.mxu1 %v6213_v1  ;;  %v459_v11 = vpop.f32.mrb[4].mxu0  ;;  %v6749_v17 = vadd.f32 %v500_v15, %v394_v56  ;;  %v5781_v56 = vld [vmem:[%s7396_s1 + $0x26] sm:$0x3] }
  0xf7   : > { %v6740_v28 = vadd.f32 %v459_v11, %v353_v51  ;;  %v461_v13 = vpop.f32.mrb[5].mxu0  ;;  %v2096_v30 = vsel %vm1986_vm12, %v2089_v10, %v2091_v3  ;;  %v5959_v19 = vpop.f32.mrb[5].mxu1 }
  0xf8   : > { %5767 = vmatmul.mubr.msk.bf16.vlgmr.msra.gmra.mrb[60].mxu0 %vm305_vm2, %v5765_v7  ;;  %v2095_v12 = vpop.permute.xlu1 %2094  ;;  %v6745_v14 = vadd.f32 %v461_v13, %v355_v53  ;;  %v463_v33 = vpop.f32.mrb[6].mxu0  ;;  %v2103_v5 = vsel %vm309_vm1, %v2096_v30, 0 }
  0xf9   : > { %6042 = vmatmul.mubr.msk.bf16.vlgmr.msra.gmra.mrb[60].mxu1 %vm305_vm2, %v5765_v7  ;;  %2143 = vmatprep.mubr.bf16.mxu0 %v6212_v0  ;;  %v464_v34 = vpop.f32.mrb[7].mxu0  ;;  %v503_v22 = vpop.f32.mrb[6].mxu1  ;;  %v5785_v7 = vld [vmem:[%s7396_s1 + $0x28] sm:$0x3] }
  0xfa   : > { %v2093_v16 = vpop.permute.xlu0 %2092  ;;  %6047 = vmatprep.mubr.msk.bf16.mxu1 %vm6214_vm0, %v6213_v1  ;;  %v5960_v23 = vpop.f32.mrb[7].mxu1  ;;  %v5789_v34 = vld [vmem:[%s7396_s1 + $0x2a] sm:$0x3] }
  0xfb   : > { %v2098_v18 = vsel %vm1986_vm12, %v2093_v16, %v2095_v12  ;;  %v2097_v9 = vsel %vm1986_vm12, %v2091_v3, %v2093_v16  ;;  %vm3381_vm12 = vcmask 429448  }
  0xfc   : > { %5770 = vmatprep.subr.msk.bf16.mxu0 %vm309_vm1, %v2097_v9  ;;  %v2109_v20 = vsel %vm309_vm1, %v2098_v18, 0  ;;  %v2200_v21 = vpop.permute.xlu1 %2199  ;;  %v3292_v9 = vld [vmem:[%s7397_s2] sm:$0xf] }
  0xfd   : > { %2112 = vmatpush1.bf16.msra.mxu0 %v2103_v5  ;;  %6046 = vmatpush3.bf16.msra.mxu1 %v2109_v20 }
  0xfe   : > { %v2198_v2 = vpop.permute.xlu0 %2197  ;;  %6051 = vmatprep.subr.bf16.mxu1 %v6213_v1  ;;  %3295 = vperm.xlu0 %6180, %v3292_v9  }
  0xff   : > { %v2206_v25 = vsel %vm2205_vm13, %v2198_v2, %v2200_v21 }
 0x100   : > { %5771 = vmatmul.mubr.msk.bf16.vlgmr.msra.gmra.mrb[64].mxu0 %vm305_vm2, %v5769_v6  ;;  %v2204_v24 = vpop.permute.xlu1 %2203  ;;  %v2213_v31 = vsel %vm309_vm1, %v2206_v25, 0 }
 0x101   : > { %6048 = vmatmul.mubr.msk.bf16.vlgmr.msra.gmra.mrb[64].mxu1 %vm305_vm2, %v5769_v6  ;;  %2253 = vmatprep.mubr.bf16.mxu0 %v6212_v0 }
 0x102   : > { %v2202_v26 = vpop.permute.xlu0 %2201  ;;  %6053 = vmatprep.mubr.msk.bf16.mxu1 %vm6214_vm0, %v6213_v1 }
 0x103   : > { %v2208_v27 = vsel %vm2205_vm13, %v2202_v26, %v2204_v24  ;;  %v2207_v29 = vsel %vm2205_vm13, %v2200_v21, %v2202_v26  ;;  %v5793_v24 = vld [vmem:[%s7396_s1 + $0x2c] sm:$0x3]  ;;  %vm3388_vm13 = vcmask 478648  }
 0x104   : > { %5774 = vmatprep.subr.msk.bf16.mxu0 %vm309_vm1, %v2207_v29  ;;  %v2219_v32 = vsel %vm309_vm1, %v2208_v27, 0  ;;  %v2310_v35 = vpop.permute.xlu1 %2309 }
 0x105   : > { %2222 = vmatpush1.bf16.msra.mxu0 %v2213_v31  ;;  %6052 = vmatpush3.bf16.msra.mxu1 %v2219_v32 }
 0x106   : > { %v2308_v37 = vpop.permute.xlu0 %2307  ;;  %6057 = vmatprep.subr.bf16.mxu1 %v6213_v1 }
 0x107   : > { %v2316_v39 = vsel %vm2315_vm14, %v2308_v37, %v2310_v35 }
 0x108   : > { %5775 = vmatmul.mubr.msk.bf16.vlgmr.msra.gmra.mrb[68].mxu0 %vm305_vm2, %v5773_v36  ;;  %v2314_v38 = vpop.permute.xlu1 %2313  ;;  %v2323_v43 = vsel %vm309_vm1, %v2316_v39, 0 }
 0x109   : > { %6054 = vmatmul.mubr.msk.bf16.vlgmr.msra.gmra.mrb[68].mxu1 %vm305_vm2, %v5773_v36  ;;  %2363 = vmatprep.mubr.bf16.mxu0 %v6212_v0 }
 0x10a   : > { %v2312_v40 = vpop.permute.xlu0 %2311  ;;  %6059 = vmatprep.mubr.msk.bf16.mxu1 %vm6214_vm0, %v6213_v1 }
 0x10b   : > { %v2318_v41 = vsel %vm2315_vm14, %v2312_v40, %v2314_v38  ;;  %v2317_v42 = vsel %vm2315_vm14, %v2310_v35, %v2312_v40  ;;  %v5797_v38 = vld [vmem:[%s7396_s1 + $0x2e] sm:$0x3] }
 0x10c   : > { %5778 = vmatprep.subr.msk.bf16.mxu0 %vm309_vm1, %v2317_v42  ;;  %v2329_v44 = vsel %vm309_vm1, %v2318_v41, 0  ;;  %v2420_v45 = vpop.permute.xlu1 %2419 }
 0x10d   : > { %2332 = vmatpush1.bf16.msra.mxu0 %v2323_v43  ;;  %6058 = vmatpush3.bf16.msra.mxu1 %v2329_v44 }
 0x10e   : > { %v2418_v47 = vpop.permute.xlu0 %2417  ;;  %6063 = vmatprep.subr.bf16.mxu1 %v6786_v48 }
 0x10f   : > { %v2425_v49 = vsel %vm2315_vm14, %v2418_v47, %v2420_v45 }
 0x110   : > { %5779 = vmatmul.mubr.msk.bf16.vlgmr.msra.gmra.mrb[72].mxu0 %vm305_vm2, %v5777_v46  ;;  %v2424_v1 = vpop.permute.xlu1 %2423  ;;  %v2432_v53 = vsel %vm309_vm1, %v2425_v49, 0 }
 0x111   : > { %6060 = vmatmul.mubr.msk.bf16.vlgmr.msra.gmra.mrb[72].mxu1 %vm305_vm2, %v5777_v46  ;;  %2472 = vmatprep.mubr.bf16.mxu0 %v6212_v0 }
 0x112   : > { %v2422_v50 = vpop.permute.xlu0 %2421  ;;  %6065 = vmatprep.mubr.msk.bf16.mxu1 %vm6214_vm0, %v6786_v48 }
 0x113   : > { %v2427_v51 = vsel %vm2315_vm14, %v2422_v50, %v2424_v1  ;;  %v2426_v52 = vsel %vm2315_vm14, %v2420_v45, %v2422_v50  ;;  %v5801_v1 = vld [vmem:[%s7396_s1 + $0x30] sm:$0x3]  ;;  %vm3395_vm14 = vcmask 527848  }
 0x114   : > { %5782 = vmatprep.subr.msk.bf16.mxu0 %vm309_vm1, %v2426_v52  ;;  %v2438_v54 = vsel %vm309_vm1, %v2427_v51, 0  ;;  %v2529_v55 = vpop.permute.xlu1 %2528 }
 0x115   : > { %2441 = vmatpush1.bf16.msra.mxu0 %v2432_v53  ;;  %6064 = vmatpush3.bf16.msra.mxu1 %v2438_v54 }
 0x116   : > { %v2527_v57 = vpop.permute.xlu0 %2526  ;;  %6069 = vmatprep.subr.bf16.mxu1 %v6786_v48 }
 0x117   : > { %v2535_v59 = vsel %vm2534_vm15, %v2527_v57, %v2529_v55 }
 0x118   : > { %5783 = vmatmul.mubr.msk.bf16.vlgmr.msra.gmra.mrb[76].mxu0 %vm305_vm2, %v5781_v56  ;;  %v2533_v58 = vpop.permute.xlu1 %2532  ;;  %v2542_v63 = vsel %vm309_vm1, %v2535_v59, 0 }
 0x119   : > { %6066 = vmatmul.mubr.msk.bf16.vlgmr.msra.gmra.mrb[76].mxu1 %vm305_vm2, %v5781_v56  ;;  %2582 = vmatprep.mubr.bf16.mxu0 %v6212_v0 }
 0x11a   : > { %v2531_v60 = vpop.permute.xlu0 %2530  ;;  %6071 = vmatprep.mubr.msk.bf16.mxu1 %vm6214_vm0, %v6786_v48 }
 0x11b   : > { %v2537_v61 = vsel %vm2534_vm15, %v2531_v60, %v2533_v58  ;;  %v2536_v62 = vsel %vm2534_vm15, %v2529_v55, %v2531_v60  ;;  %v5805_v58 = vld [vmem:[%s7396_s1 + $0x32] sm:$0x3]  ;;  %vm3402_vm15 = vcmask 675448  }
 0x11c   : > { %5786 = vmatprep.subr.msk.bf16.mxu0 %vm309_vm1, %v2536_v62  ;;  %v2548_v3 = vsel %vm309_vm1, %v2537_v61, 0  ;;  %v2639_v4 = vpop.permute.xlu1 %2638 }
 0x11d   : > { %2551 = vmatpush1.bf16.msra.mxu0 %v2542_v63  ;;  %6070 = vmatpush3.bf16.msra.mxu1 %v2548_v3 }
 0x11e   : > { %v2637_v8 = vpop.permute.xlu0 %2636  ;;  %6075 = vmatprep.subr.bf16.mxu1 %v6786_v48 }
 0x11f   : > { %v2645_v11 = vsel %vm2644_vm4, %v2637_v8, %v2639_v4  ;;  %v5809_v8 = vld [vmem:[%s7396_s1 + $0x34] sm:$0x3] }
 0x120   : > { %5787 = vmatmul.mubr.msk.bf16.vlgmr.msra.gmra.mrb[80].mxu0 %vm305_vm2, %v5785_v7  ;;  %v2643_v10 = vpop.permute.xlu1 %2642  ;;  %v2652_v15 = vsel %vm309_vm1, %v2645_v11, 0 }
 0x121   : > { %6072 = vmatmul.mubr.msk.bf16.vlgmr.msra.gmra.mrb[80].mxu1 %vm305_vm2, %v5785_v7  ;;  %2692 = vmatprep.mubr.bf16.mxu0 %v6212_v0 }
 0x122   : > { %v2641_v12 = vpop.permute.xlu0 %2640  ;;  %6077 = vmatprep.mubr.msk.bf16.mxu1 %vm6214_vm0, %v6786_v48 }
 0x123   : > { %v2647_v13 = vsel %vm2644_vm4, %v2641_v12, %v2643_v10  ;;  %v2646_v30 = vsel %vm2644_vm4, %v2639_v4, %v2641_v12 }
 0x124   : > { %5790 = vmatprep.subr.msk.bf16.mxu0 %vm309_vm1, %v2646_v30  ;;  %v2658_v33 = vsel %vm309_vm1, %v2647_v13, 0  ;;  %v2749_v16 = vpop.permute.xlu1 %2748 }
 0x125   : > { %2661 = vmatpush1.bf16.msra.mxu0 %v2652_v15  ;;  %6076 = vmatpush3.bf16.msra.mxu1 %v2658_v33 }
 0x126   : > { %v2747_v18 = vpop.permute.xlu0 %2746  ;;  %6081 = vmatprep.subr.bf16.mxu1 %v6786_v48 }
 0x127   : > { %v2754_v5 = vsel %vm2644_vm4, %v2747_v18, %v2749_v16 }
 0x128   : > { %5791 = vmatmul.mubr.msk.bf16.vlgmr.msra.gmra.mrb[84].mxu0 %vm305_vm2, %v5789_v34  ;;  %v2753_v19 = vpop.permute.xlu1 %2752  ;;  %v2761_v6 = vsel %vm309_vm1, %v2754_v5, 0 }
 0x129   : > { %6078 = vmatmul.mubr.msk.bf16.vlgmr.msra.gmra.mrb[84].mxu1 %vm305_vm2, %v5789_v34  ;;  %2801 = vmatprep.mubr.bf16.mxu0 %v6212_v0 }
 0x12a   : > { %v2751_v20 = vpop.permute.xlu0 %2750  ;;  %6083 = vmatprep.mubr.msk.bf16.mxu1 %vm6214_vm0, %v6786_v48 }
 0x12b   : > { %v2756_v21 = vsel %vm2644_vm4, %v2751_v20, %v2753_v19  ;;  %v2755_v22 = vsel %vm2644_vm4, %v2749_v16, %v2751_v20  ;;  %vm3409_vm4 = vcmask 724648  }
 0x12c   : > { %5794 = vmatprep.subr.msk.bf16.mxu0 %vm309_vm1, %v2755_v22  ;;  %v2767_v23 = vsel %vm309_vm1, %v2756_v21, 0  ;;  %v2858_v2 = vpop.permute.xlu1 %2857 }
 0x12d   : > { %2770 = vmatpush1.bf16.msra.mxu0 %v2761_v6  ;;  %6082 = vmatpush3.bf16.msra.mxu1 %v2767_v23 }
 0x12e   : > { %v2856_v25 = vpop.permute.xlu0 %2855  ;;  %6087 = vmatprep.subr.bf16.mxu1 %v6786_v48 }
 0x12f   : > { %v2864_v27 = vsel %vm2863_vm6, %v2856_v25, %v2858_v2 }
 0x130   : > { %5795 = vmatmul.mubr.msk.bf16.vlgmr.msra.gmra.mrb[88].mxu0 %vm305_vm2, %v5793_v24  ;;  %v2862_v26 = vpop.permute.xlu1 %2861  ;;  %v2871_v35 = vsel %vm309_vm1, %v2864_v27, 0 }
 0x131   : > { %6084 = vmatmul.mubr.msk.bf16.vlgmr.msra.gmra.mrb[88].mxu1 %vm305_vm2, %v5793_v24  ;;  %2911 = vmatprep.mubr.bf16.mxu0 %v6212_v0 }
 0x132   : > { %v2860_v29 = vpop.permute.xlu0 %2859  ;;  %6089 = vmatprep.mubr.msk.bf16.mxu1 %vm6214_vm0, %v6786_v48 }
 0x133   : > { %v2866_v31 = vsel %vm2863_vm6, %v2860_v29, %v2862_v26  ;;  %v2865_v32 = vsel %vm2863_vm6, %v2858_v2, %v2860_v29  ;;  %vm3416_vm6 = vcmask 773848  }
 0x134   : > { %5798 = vmatprep.subr.msk.bf16.mxu0 %vm309_vm1, %v2865_v32  ;;  %v2877_v36 = vsel %vm309_vm1, %v2866_v31, 0  ;;  %v2968_v37 = vpop.permute.xlu1 %2967 }
 0x135   : > { %2880 = vmatpush1.bf16.msra.mxu0 %v2871_v35  ;;  %6088 = vmatpush3.bf16.msra.mxu1 %v2877_v36 }
 0x136   : > { %v2966_v39 = vpop.permute.xlu0 %2965  ;;  %6093 = vmatprep.subr.bf16.mxu1 %v6786_v48 }
 0x137   : > { %v2974_v41 = vsel %vm2973_vm7, %v2966_v39, %v2968_v37 }
 0x138   : > { %5799 = vmatmul.mubr.msk.bf16.vlgmr.msra.gmra.mrb[92].mxu0 %vm305_vm2, %v5797_v38  ;;  %v2972_v40 = vpop.permute.xlu1 %2971  ;;  %v2981_v45 = vsel %vm309_vm1, %v2974_v41, 0 }
 0x139   : > { %6090 = vmatmul.mubr.msk.bf16.vlgmr.msra.gmra.mrb[92].mxu1 %vm305_vm2, %v5797_v38  ;;  %3021 = vmatprep.mubr.bf16.mxu0 %v6212_v0 }
 0x13a   : > { %v2970_v42 = vpop.permute.xlu0 %2969  ;;  %6095 = vmatprep.mubr.msk.bf16.mxu1 %vm6214_vm0, %v6786_v48 }
 0x13b   : > { %v2976_v43 = vsel %vm2973_vm7, %v2970_v42, %v2972_v40  ;;  %v2975_v44 = vsel %vm2973_vm7, %v2968_v37, %v2970_v42 }
 0x13c   : > { %5802 = vmatprep.subr.msk.bf16.mxu0 %vm309_vm1, %v2975_v44  ;;  %v2987_v46 = vsel %vm309_vm1, %v2976_v43, 0  ;;  %v3078_v47 = vpop.permute.xlu1 %3077 }
 0x13d   : > { %2990 = vmatpush1.bf16.msra.mxu0 %v2981_v45  ;;  %6094 = vmatpush3.bf16.msra.mxu1 %v2987_v46 }
 0x13e   : > { %v3076_v49 = vpop.permute.xlu0 %3075  ;;  %6099 = vmatprep.subr.bf16.mxu1 %v6786_v48 }
 0x13f   : > { %v3083_v51 = vsel %vm2973_vm7, %v3076_v49, %v3078_v47 }
 0x140   : > { %5803 = vmatmul.mubr.msk.bf16.vlgmr.msra.gmra.mrb[96].mxu0 %vm305_vm2, %v5801_v1  ;;  %v3082_v50 = vpop.permute.xlu1 %3081  ;;  %v3090_v55 = vsel %vm309_vm1, %v3083_v51, 0 }
 0x141   : > { %6096 = vmatmul.mubr.msk.bf16.vlgmr.msra.gmra.mrb[96].mxu1 %vm305_vm2, %v5801_v1  ;;  %3130 = vmatprep.mubr.bf16.mxu0 %v6212_v0 }
 0x142   : > { %v3080_v52 = vpop.permute.xlu0 %3079  ;;  %6101 = vmatprep.mubr.msk.bf16.mxu1 %vm6214_vm0, %v6786_v48 }
 0x143   : > { %v3085_v53 = vsel %vm2973_vm7, %v3080_v52, %v3082_v50  ;;  %v3084_v54 = vsel %vm2973_vm7, %v3078_v47, %v3080_v52  ;;  %vm3423_vm7 = vcmask 823048  }
 0x144   : > { %5806 = vmatprep.subr.msk.bf16.mxu0 %vm309_vm1, %v3084_v54  ;;  %v3096_v56 = vsel %vm309_vm1, %v3085_v53, 0  ;;  %v3187_v57 = vpop.permute.xlu1 %3186 }
 0x145   : > { %3099 = vmatpush1.bf16.msra.mxu0 %v3090_v55  ;;  %6100 = vmatpush3.bf16.msra.mxu1 %v3096_v56 }
 0x146   : > { %v3185_v59 = vpop.permute.xlu0 %3184  ;;  %6105 = vmatprep.subr.bf16.mxu1 %v6786_v48 }
 0x147   : > { %v3193_v61 = vsel %vm3192_vm9, %v3185_v59, %v3187_v57 }
 0x148   : > { %5807 = vmatmul.mubr.msk.bf16.vlgmr.msra.gmra.mrb[100].mxu0 %vm305_vm2, %v5805_v58  ;;  %v3191_v60 = vpop.permute.xlu1 %3190  ;;  %v3200_v4 = vsel %vm309_vm1, %v3193_v61, 0 }
 0x149   : > { %6102 = vmatmul.mubr.msk.bf16.vlgmr.msra.gmra.mrb[100].mxu1 %vm305_vm2, %v5805_v58  ;;  %3240 = vmatprep.mubr.bf16.mxu0 %v6212_v0 }
 0x14a   : > { %v3189_v62 = vpop.permute.xlu0 %3188  ;;  %6107 = vmatprep.mubr.msk.bf16.mxu1 %vm6214_vm0, %v6786_v48  ;;  %vm3321_vm0 = vcmask 1043456  }
 0x14b   : > { %v3195_v63 = vsel %vm3192_vm9, %v3189_v62, %v3191_v60  ;;  %v3194_v3 = vsel %vm3192_vm9, %v3187_v57, %v3189_v62  ;;  %vm3447_vm9 = vcmask 1044472  }
 0x14c   : > { %5810 = vmatprep.subr.msk.bf16.mxu0 %vm309_vm1, %v3194_v3  ;;  %v3206_v7 = vsel %vm309_vm1, %v3195_v63, 0 }
 0x14d   : > { %3209 = vmatpush1.bf16.msra.mxu0 %v3200_v4  ;;  %6106 = vmatpush3.bf16.msra.mxu1 %v3206_v7 }
 0x150   : > { %5811 = vmatmul.mubr.msk.bf16.vlgmr.msra.gmra.mrb[104].mxu0 %vm305_vm2, %v5809_v8 }
 0x151   : > { %6108 = vmatmul.mubr.msk.bf16.vlgmr.msra.gmra.mrb[104].mxu1 %vm305_vm2, %v5809_v8  ;;  %3557 = vmatprep.mubr.bf16.mxu0 %v6212_v0 }
 0x152   : > { %3607 = vmatprep.mubr.bf16.mxu1 %v6212_v0 }
 0x161   : > { %v627_v48 = vpop.f32.mrb[8].mxu1 }
 0x162   : > { %v635_v10 = vadd.f32 %v627_v48, %v6749_v17  ;;  %v5965_v11 = vpop.f32.mrb[9].mxu1 }
 0x163   : > { %v586_v12 = vpop.f32.mrb[8].mxu0  ;;  %v630_v13 = vpop.f32.mrb[10].mxu1 }
 0x164   : > { %v633_v30 = vadd.f32 %v586_v12, %v6740_v28  ;;  %v588_v15 = vpop.f32.mrb[9].mxu0  ;;  %v5966_v33 = vpop.f32.mrb[11].mxu1 }
 0x165   : > { %v634_v16 = vadd.f32 %v588_v15, %v6745_v14  ;;  %v590_v34 = vpop.f32.mrb[10].mxu0 }
 0x166   : > { %v591_v18 = vpop.f32.mrb[11].mxu0 }
 0x16b   : > { %v696_v9 = vpop.f32.mrb[12].mxu0 }
 0x16c   : > { %v743_v19 = vadd.f32 %v696_v9, %v633_v30  ;;  %v737_v5 = vpop.f32.mrb[12].mxu1  ;;  %v698_v20 = vpop.f32.mrb[13].mxu0 }
 0x16d   : > { %v745_v21 = vadd.f32 %v737_v5, %v635_v10  ;;  %v744_v22 = vadd.f32 %v698_v20, %v634_v16  ;;  %v5971_v6 = vpop.f32.mrb[13].mxu1  ;;  %v700_v23 = vpop.f32.mrb[14].mxu0 }
 0x16e   : > { %v740_v17 = vpop.f32.mrb[14].mxu1  ;;  %v701_v2 = vpop.f32.mrb[15].mxu0 }
 0x16f   : > { %v5972_v24 = vpop.f32.mrb[15].mxu1 }
 0x173   : > { %v829_v25 = vpop.f32.mrb[16].mxu0 }
 0x174   : > { %v876_v26 = vadd.f32 %v829_v25, %v743_v19  ;;  %v870_v28 = vpop.f32.mrb[16].mxu1  ;;  %v831_v27 = vpop.f32.mrb[17].mxu0 }
 0x175   : > { %v878_v29 = vadd.f32 %v870_v28, %v745_v21  ;;  %v877_v31 = vadd.f32 %v831_v27, %v744_v22  ;;  %v5977_v14 = vpop.f32.mrb[17].mxu1  ;;  %v833_v32 = vpop.f32.mrb[18].mxu0 }
 0x176   : > { %v873_v35 = vpop.f32.mrb[18].mxu1  ;;  %v834_v36 = vpop.f32.mrb[19].mxu0 }
 0x177   : > { %v5978_v37 = vpop.f32.mrb[19].mxu1 }
 0x17b   : > { %v939_v38 = vpop.f32.mrb[20].mxu0 }
 0x17c   : > { %v986_v39 = vadd.f32 %v939_v38, %v876_v26  ;;  %v980_v40 = vpop.f32.mrb[20].mxu1  ;;  %v941_v41 = vpop.f32.mrb[21].mxu0 }
 0x17d   : > { %v988_v42 = vadd.f32 %v980_v40, %v878_v29  ;;  %v987_v43 = vadd.f32 %v941_v41, %v877_v31  ;;  %v5983_v44 = vpop.f32.mrb[21].mxu1  ;;  %v943_v45 = vpop.f32.mrb[22].mxu0 }
 0x17e   : > { %v983_v46 = vpop.f32.mrb[22].mxu1  ;;  %v944_v47 = vpop.f32.mrb[23].mxu0 }
 0x17f   : > { %v5984_v1 = vpop.f32.mrb[23].mxu1 }
 0x183   : > { %v1049_v49 = vpop.f32.mrb[24].mxu0 }
 0x184   : > { %v1096_v50 = vadd.f32 %v1049_v49, %v986_v39  ;;  %v1090_v51 = vpop.f32.mrb[24].mxu1  ;;  %v1051_v52 = vpop.f32.mrb[25].mxu0 }
 0x185   : > { %v1098_v53 = vadd.f32 %v1090_v51, %v988_v42  ;;  %v1097_v54 = vadd.f32 %v1051_v52, %v987_v43  ;;  %v5989_v55 = vpop.f32.mrb[25].mxu1  ;;  %v1053_v56 = vpop.f32.mrb[26].mxu0 }
 0x186   : > { %v1093_v57 = vpop.f32.mrb[26].mxu1  ;;  %v1054_v58 = vpop.f32.mrb[27].mxu0 }
 0x187   : > { %v5990_v59 = vpop.f32.mrb[27].mxu1 }
 0x18b   : > { %v1158_v60 = vpop.f32.mrb[28].mxu0 }
 0x18c   : > { %v1205_v61 = vadd.f32 %v1158_v60, %v1096_v50  ;;  %v1199_v62 = vpop.f32.mrb[28].mxu1  ;;  %v1160_v63 = vpop.f32.mrb[29].mxu0 }
 0x18d   : > { %v1207_v3 = vadd.f32 %v1199_v62, %v1098_v53  ;;  %v1206_v4 = vadd.f32 %v1160_v63, %v1097_v54  ;;  %v5995_v7 = vpop.f32.mrb[29].mxu1  ;;  %v1162_v8 = vpop.f32.mrb[30].mxu0 }
 0x18e   : > { %v1202_v48 = vpop.f32.mrb[30].mxu1  ;;  %v1163_v10 = vpop.f32.mrb[31].mxu0 }
 0x18f   : > { %v5996_v11 = vpop.f32.mrb[31].mxu1 }
 0x193   : > { %v1268_v12 = vpop.f32.mrb[32].mxu0 }
 0x194   : > { %v1315_v13 = vadd.f32 %v1268_v12, %v1205_v61  ;;  %v1309_v30 = vpop.f32.mrb[32].mxu1  ;;  %v1270_v15 = vpop.f32.mrb[33].mxu0 }
 0x195   : > { %v1317_v33 = vadd.f32 %v1309_v30, %v1207_v3  ;;  %v1316_v16 = vadd.f32 %v1270_v15, %v1206_v4  ;;  %v6001_v34 = vpop.f32.mrb[33].mxu1  ;;  %v1272_v18 = vpop.f32.mrb[34].mxu0 }
 0x196   : > { %v1312_v9 = vpop.f32.mrb[34].mxu1  ;;  %v1273_v19 = vpop.f32.mrb[35].mxu0 }
 0x197   : > { %v6002_v5 = vpop.f32.mrb[35].mxu1 }
 0x19b   : > { %v1378_v20 = vpop.f32.mrb[36].mxu0 }
 0x19c   : > { %v1425_v21 = vadd.f32 %v1378_v20, %v1315_v13  ;;  %v1419_v22 = vpop.f32.mrb[36].mxu1  ;;  %v1380_v6 = vpop.f32.mrb[37].mxu0 }
 0x19d   : > { %v1427_v23 = vadd.f32 %v1419_v22, %v1317_v33  ;;  %v1426_v17 = vadd.f32 %v1380_v6, %v1316_v16  ;;  %v6007_v2 = vpop.f32.mrb[37].mxu1  ;;  %v1382_v24 = vpop.f32.mrb[38].mxu0 }
 0x19e   : > { %v1422_v25 = vpop.f32.mrb[38].mxu1  ;;  %v1383_v26 = vpop.f32.mrb[39].mxu0 }
 0x19f   : > { %v6008_v28 = vpop.f32.mrb[39].mxu1 }
 0x1a3   : > { %v1487_v27 = vpop.f32.mrb[40].mxu0 }
 0x1a4   : > { %v1534_v29 = vadd.f32 %v1487_v27, %v1425_v21  ;;  %v1528_v31 = vpop.f32.mrb[40].mxu1  ;;  %v1489_v14 = vpop.f32.mrb[41].mxu0 }
 0x1a5   : > { %v1536_v32 = vadd.f32 %v1528_v31, %v1427_v23  ;;  %v1535_v35 = vadd.f32 %v1489_v14, %v1426_v17  ;;  %v6013_v36 = vpop.f32.mrb[41].mxu1  ;;  %v1491_v37 = vpop.f32.mrb[42].mxu0 }
 0x1a6   : > { %v1531_v38 = vpop.f32.mrb[42].mxu1  ;;  %v1492_v39 = vpop.f32.mrb[43].mxu0 }
 0x1a7   : > { %v6014_v40 = vpop.f32.mrb[43].mxu1 }
 0x1ab   : > { %v1597_v41 = vpop.f32.mrb[44].mxu0 }
 0x1ac   : > { %v1644_v42 = vadd.f32 %v1597_v41, %v1534_v29  ;;  %v1638_v43 = vpop.f32.mrb[44].mxu1  ;;  %v1599_v44 = vpop.f32.mrb[45].mxu0 }
 0x1ad   : > { %v1646_v45 = vadd.f32 %v1638_v43, %v1536_v32  ;;  %v1645_v46 = vadd.f32 %v1599_v44, %v1535_v35  ;;  %v6019_v47 = vpop.f32.mrb[45].mxu1  ;;  %v1601_v1 = vpop.f32.mrb[46].mxu0 }
 0x1ae   : > { %v1641_v49 = vpop.f32.mrb[46].mxu1  ;;  %v1602_v50 = vpop.f32.mrb[47].mxu0 }
 0x1af   : > { %v6020_v51 = vpop.f32.mrb[47].mxu1 }
 0x1b3   : > { %v1707_v52 = vpop.f32.mrb[48].mxu0 }
 0x1b4   : > { %v1754_v53 = vadd.f32 %v1707_v52, %v1644_v42  ;;  %v1748_v54 = vpop.f32.mrb[48].mxu1  ;;  %v1709_v55 = vpop.f32.mrb[49].mxu0 }
 0x1b5   : > { %v1756_v56 = vadd.f32 %v1748_v54, %v1646_v45  ;;  %v1755_v57 = vadd.f32 %v1709_v55, %v1645_v46  ;;  %v6025_v58 = vpop.f32.mrb[49].mxu1  ;;  %v1711_v59 = vpop.f32.mrb[50].mxu0 }
 0x1b6   : > { %v1751_v60 = vpop.f32.mrb[50].mxu1  ;;  %v1712_v61 = vpop.f32.mrb[51].mxu0 }
 0x1b7   : > { %v6026_v62 = vpop.f32.mrb[51].mxu1 }
 0x1bb   : > { %v1816_v63 = vpop.f32.mrb[52].mxu0 }
 0x1bc   : > { %v1863_v3 = vadd.f32 %v1816_v63, %v1754_v53  ;;  %v1857_v4 = vpop.f32.mrb[52].mxu1  ;;  %v1818_v7 = vpop.f32.mrb[53].mxu0 }
 0x1bd   : > { %v1865_v8 = vadd.f32 %v1857_v4, %v1756_v56  ;;  %v1864_v48 = vadd.f32 %v1818_v7, %v1755_v57  ;;  %v6031_v10 = vpop.f32.mrb[53].mxu1  ;;  %v1820_v11 = vpop.f32.mrb[54].mxu0 }
 0x1be   : > { %v1860_v12 = vpop.f32.mrb[54].mxu1  ;;  %v1821_v13 = vpop.f32.mrb[55].mxu0 }
 0x1bf   : > { %v6032_v30 = vpop.f32.mrb[55].mxu1 }
 0x1c3   : > { %v1926_v15 = vpop.f32.mrb[56].mxu0 }
 0x1c4   : > { %v1973_v33 = vadd.f32 %v1926_v15, %v1863_v3  ;;  %v1967_v16 = vpop.f32.mrb[56].mxu1  ;;  %v1928_v34 = vpop.f32.mrb[57].mxu0 }
 0x1c5   : > { %v1975_v18 = vadd.f32 %v1967_v16, %v1865_v8  ;;  %v1974_v9 = vadd.f32 %v1928_v34, %v1864_v48  ;;  %v6037_v19 = vpop.f32.mrb[57].mxu1  ;;  %v1930_v5 = vpop.f32.mrb[58].mxu0 }
 0x1c6   : > { %v1970_v20 = vpop.f32.mrb[58].mxu1  ;;  %v1931_v21 = vpop.f32.mrb[59].mxu0 }
 0x1c7   : > { %v6038_v22 = vpop.f32.mrb[59].mxu1 }
 0x1cb   : > { %v2036_v6 = vpop.f32.mrb[60].mxu0 }
 0x1cc   : > { %v2083_v23 = vadd.f32 %v2036_v6, %v1973_v33  ;;  %v2077_v17 = vpop.f32.mrb[60].mxu1  ;;  %v2038_v2 = vpop.f32.mrb[61].mxu0 }
 0x1cd   : > { %v2085_v24 = vadd.f32 %v2077_v17, %v1975_v18  ;;  %v2084_v25 = vadd.f32 %v2038_v2, %v1974_v9  ;;  %v6043_v26 = vpop.f32.mrb[61].mxu1  ;;  %v2040_v28 = vpop.f32.mrb[62].mxu0 }
 0x1ce   : > { %v2080_v27 = vpop.f32.mrb[62].mxu1  ;;  %v2041_v29 = vpop.f32.mrb[63].mxu0 }
 0x1cf   : > { %v6044_v31 = vpop.f32.mrb[63].mxu1 }
 0x1d3   : > { %v2145_v14 = vpop.f32.mrb[64].mxu0 }
 0x1d4   : > { %v2192_v32 = vadd.f32 %v2145_v14, %v2083_v23  ;;  %v2186_v35 = vpop.f32.mrb[64].mxu1  ;;  %v2147_v36 = vpop.f32.mrb[65].mxu0 }
 0x1d5   : > { %v2194_v37 = vadd.f32 %v2186_v35, %v2085_v24  ;;  %v2193_v38 = vadd.f32 %v2147_v36, %v2084_v25  ;;  %v6049_v39 = vpop.f32.mrb[65].mxu1  ;;  %v2149_v40 = vpop.f32.mrb[66].mxu0 }
 0x1d6   : > { %v2189_v41 = vpop.f32.mrb[66].mxu1  ;;  %v2150_v42 = vpop.f32.mrb[67].mxu0 }
 0x1d7   : > { %v6050_v43 = vpop.f32.mrb[67].mxu1 }
 0x1db   : > { %v2255_v44 = vpop.f32.mrb[68].mxu0 }
 0x1dc   : > { %v2302_v45 = vadd.f32 %v2255_v44, %v2192_v32  ;;  %v2296_v46 = vpop.f32.mrb[68].mxu1  ;;  %v2257_v47 = vpop.f32.mrb[69].mxu0 }
 0x1dd   : > { %v2304_v1 = vadd.f32 %v2296_v46, %v2194_v37  ;;  %v2303_v49 = vadd.f32 %v2257_v47, %v2193_v38  ;;  %v6055_v50 = vpop.f32.mrb[69].mxu1  ;;  %v2259_v51 = vpop.f32.mrb[70].mxu0 }
 0x1de   : > { %v2299_v52 = vpop.f32.mrb[70].mxu1  ;;  %v2260_v53 = vpop.f32.mrb[71].mxu0 }
 0x1df   : > { %v6056_v54 = vpop.f32.mrb[71].mxu1 }
 0x1e3   : > { %v2365_v55 = vpop.f32.mrb[72].mxu0 }
 0x1e4   : > { %v2412_v56 = vadd.f32 %v2365_v55, %v2302_v45  ;;  %v2406_v57 = vpop.f32.mrb[72].mxu1  ;;  %v2367_v58 = vpop.f32.mrb[73].mxu0 }
 0x1e5   : > { %v2414_v59 = vadd.f32 %v2406_v57, %v2304_v1  ;;  %v2413_v60 = vadd.f32 %v2367_v58, %v2303_v49  ;;  %v6061_v61 = vpop.f32.mrb[73].mxu1  ;;  %v2369_v62 = vpop.f32.mrb[74].mxu0 }
 0x1e6   : > { %v2409_v63 = vpop.f32.mrb[74].mxu1  ;;  %v2370_v3 = vpop.f32.mrb[75].mxu0 }
 0x1e7   : > { %v6062_v4 = vpop.f32.mrb[75].mxu1 }
 0x1eb   : > { %v2474_v7 = vpop.f32.mrb[76].mxu0 }
 0x1ec   : > { %v2521_v8 = vadd.f32 %v2474_v7, %v2412_v56  ;;  %v2515_v48 = vpop.f32.mrb[76].mxu1  ;;  %v2476_v10 = vpop.f32.mrb[77].mxu0 }
 0x1ed   : > { %v2523_v11 = vadd.f32 %v2515_v48, %v2414_v59  ;;  %v2522_v12 = vadd.f32 %v2476_v10, %v2413_v60  ;;  %v6067_v13 = vpop.f32.mrb[77].mxu1  ;;  %v2478_v30 = vpop.f32.mrb[78].mxu0  ;;  %v3303_v10 = vlaneseq }
 0x1ee   : > { %v2518_v15 = vpop.f32.mrb[78].mxu1  ;;  %v2479_v33 = vpop.f32.mrb[79].mxu0 }
 0x1ef   : > { %v6068_v16 = vpop.f32.mrb[79].mxu1  ;;  %v6909_v15 = vshrl.u32 %v3303_v10, 7 }
 0x1f3   : > { %v2584_v34 = vpop.f32.mrb[80].mxu0 }
 0x1f4   : > { %v2631_v18 = vadd.f32 %v2584_v34, %v2521_v8  ;;  %v2625_v9 = vpop.f32.mrb[80].mxu1  ;;  %v2586_v19 = vpop.f32.mrb[81].mxu0 }
 0x1f5   : > { %v2633_v5 = vadd.f32 %v2625_v9, %v2523_v11  ;;  %v2632_v20 = vadd.f32 %v2586_v19, %v2522_v12  ;;  %v6073_v21 = vpop.f32.mrb[81].mxu1  ;;  %v2588_v22 = vpop.f32.mrb[82].mxu0 }
 0x1f6   : > { %v2628_v6 = vpop.f32.mrb[82].mxu1  ;;  %v2589_v23 = vpop.f32.mrb[83].mxu0  ;;  %v3301_v21 = vld [vmem:[%s7400_s5] sm:$0x7]  ;;  %v3309_v22 = vsub.s32 1, %v6909_v15 }
 0x1f7   : > { %v6074_v17 = vpop.f32.mrb[83].mxu1  ;;  %v3313_v6 = vsub.s32 2, %v6909_v15 }
 0x1f8   : > { %v3296_v17 = vpop.permute.xlu0 %3295 }
 0x1fb   : > { %v2694_v2 = vpop.f32.mrb[84].mxu0 }
 0x1fc   : > { %v2741_v24 = vadd.f32 %v2694_v2, %v2631_v18  ;;  %v2735_v25 = vpop.f32.mrb[84].mxu1  ;;  %v2696_v26 = vpop.f32.mrb[85].mxu0 }
 0x1fd   : > { %v2743_v28 = vadd.f32 %v2735_v25, %v2633_v5  ;;  %v2742_v27 = vadd.f32 %v2696_v26, %v2632_v20  ;;  %v6079_v29 = vpop.f32.mrb[85].mxu1  ;;  %v2698_v31 = vpop.f32.mrb[86].mxu0  ;;  %v3305_v20 = vsub.s32 0, %v6909_v15 }
 0x1fe   : > { %v2738_v14 = vpop.f32.mrb[86].mxu1  ;;  %v2699_v32 = vpop.f32.mrb[87].mxu0  ;;  %v3310_v31 = vrot.slane %v3301_v21, %v3309_v22 }
 0x1ff   : > { %v6080_v35 = vpop.f32.mrb[87].mxu1  ;;  %v3306_v26 = vrot.slane %v3301_v21, %v3305_v20  ;;  %v3314_v32 = vrot.slane %v3301_v21, %v3313_v6 }
 0x203   : > { %v2803_v36 = vpop.f32.mrb[88].mxu0 }
 0x204   : > { %v2850_v37 = vadd.f32 %v2803_v36, %v2741_v24  ;;  %v2844_v38 = vpop.f32.mrb[88].mxu1  ;;  %v2805_v39 = vpop.f32.mrb[89].mxu0 }
 0x205   : > { %v2852_v40 = vadd.f32 %v2844_v38, %v2743_v28  ;;  %v2851_v41 = vadd.f32 %v2805_v39, %v2742_v27  ;;  %v6085_v42 = vpop.f32.mrb[89].mxu1  ;;  %v2807_v43 = vpop.f32.mrb[90].mxu0 }
 0x206   : > { %v2847_v44 = vpop.f32.mrb[90].mxu1  ;;  %v2808_v45 = vpop.f32.mrb[91].mxu0 }
 0x207   : > { %v6086_v46 = vpop.f32.mrb[91].mxu1 }
 0x20b   : > { %v2913_v47 = vpop.f32.mrb[92].mxu0 }
 0x20c   : > { %v2960_v1 = vadd.f32 %v2913_v47, %v2850_v37  ;;  %v2954_v49 = vpop.f32.mrb[92].mxu1  ;;  %v2915_v50 = vpop.f32.mrb[93].mxu0 }
 0x20d   : > { %v2962_v51 = vadd.f32 %v2954_v49, %v2852_v40  ;;  %v2961_v52 = vadd.f32 %v2915_v50, %v2851_v41  ;;  %v6091_v53 = vpop.f32.mrb[93].mxu1  ;;  %v2917_v54 = vpop.f32.mrb[94].mxu0 }
 0x20e   : > { %v2957_v55 = vpop.f32.mrb[94].mxu1  ;;  %v2918_v56 = vpop.f32.mrb[95].mxu0 }
 0x20f   : > { %v6092_v57 = vpop.f32.mrb[95].mxu1 }
 0x213   : > { %v3023_v58 = vpop.f32.mrb[96].mxu0 }
 0x214   : > { %v3070_v59 = vadd.f32 %v3023_v58, %v2960_v1  ;;  %v3064_v60 = vpop.f32.mrb[96].mxu1  ;;  %v3025_v61 = vpop.f32.mrb[97].mxu0 }
 0x215   : > { %v3072_v62 = vadd.f32 %v3064_v60, %v2962_v51  ;;  %v3071_v63 = vadd.f32 %v3025_v61, %v2961_v52  ;;  %v6097_v3 = vpop.f32.mrb[97].mxu1  ;;  %v3027_v4 = vpop.f32.mrb[98].mxu0 }
 0x216   : > { %v3067_v7 = vpop.f32.mrb[98].mxu1  ;;  %v3028_v8 = vpop.f32.mrb[99].mxu0 }
 0x217   : > { %v6098_v48 = vpop.f32.mrb[99].mxu1 }
 0x21b   : > { %v3132_v11 = vpop.f32.mrb[100].mxu0 }
 0x21c   : > { %v3179_v12 = vadd.f32 %v3132_v11, %v3070_v59  ;;  %v3173_v13 = vpop.f32.mrb[100].mxu1  ;;  %v3134_v30 = vpop.f32.mrb[101].mxu0 }
 0x21d   : > { %v3181_v33 = vadd.f32 %v3173_v13, %v3072_v62  ;;  %v3180_v16 = vadd.f32 %v3134_v30, %v3071_v63  ;;  %v6103_v34 = vpop.f32.mrb[101].mxu1  ;;  %v3136_v18 = vpop.f32.mrb[102].mxu0 }
 0x21e   : > { %v3176_v9 = vpop.f32.mrb[102].mxu1  ;;  %v3137_v19 = vpop.f32.mrb[103].mxu0 }
 0x21f   : > { %v6104_v5 = vpop.f32.mrb[103].mxu1 }
 0x223   : > { %v3242_v23 = vpop.f32.mrb[104].mxu0 }
 0x224   : > { %v3289_v2 = vadd.f32 %v3242_v23, %v3179_v12  ;;  %v3283_v24 = vpop.f32.mrb[104].mxu1  ;;  %v3244_v25 = vpop.f32.mrb[105].mxu0 }
 0x225   : > { %v3291_v28 = vadd.f32 %v3283_v24, %v3181_v33  ;;  %v3290_v27 = vadd.f32 %v3244_v25, %v3180_v16  ;;  %v6109_v29 = vpop.f32.mrb[105].mxu1  ;;  %v3246_v14 = vpop.f32.mrb[106].mxu0 }
 0x226   : > { %v3298_v35 = vadd.f32 %v3296_v17, %v3289_v2  ;;  %v3286_v36 = vpop.f32.mrb[106].mxu1  ;;  %v3247_v37 = vpop.f32.mrb[107].mxu0  ;;  %v3494_v29 = vld [vmem:[#allocation3 + $0x8] sm:$0xf] }
 0x227   : > { %v3299_v38 = vadd.f32 %v3296_v17, %v3290_v27  ;;  %v3300_v39 = vadd.f32 %v3296_v17, %v3291_v28  ;;  %v6110_v40 = vpop.f32.mrb[107].mxu1 }
 0x228   : > { %v3318_v41 = vmul.f32 %v3306_v26, %v3298_v35 }
 0x229   : > { %v3319_v42 = vmul.f32 %v3310_v31, %v3299_v38  ;;  %v3320_v43 = vmul.f32 %v3314_v32, %v3300_v39 }
 0x22a   : > { %v3322_v44 = vsel %vm3321_vm0, %v3318_v41, 0.0 }
 0x22b   : > { %v3323_v45 = vsel %vm3321_vm0, %v3319_v42, 0.0  ;;  %v3325_v47 = vsel %vm3321_vm0, %v3320_v43, 0.0  ;;  %v3764_v43 = vld [vmem:[#allocation3 + $0x8] sm:$0xf] }
 0x22c   : > { %v3324_v46 = vadd.f32 %v3323_v45, %v3322_v44  ;;  %v3986_v44 = vld [vmem:[#allocation3 + $0x8] sm:$0xf]  ;;  %v3770_v45 = vpack.c.bf16 %v3764_v43, %v3764_v43 }
 0x22e   : > { %v3326_v1 = vadd.f32 %v3325_v47, %v3324_v46  ;;  %v3992_v46 = vpack.c.bf16 %v3986_v44, %v3986_v44  ;;  %v3912_v47 = vld [vmem:[#allocation3 + $0x8] sm:$0xf] }
 0x230   : > { %3327 = vadd.xlane.f32.xlu1 %v3326_v1  ;;  %v4134_v1 = vld [vmem:[#allocation3 + $0x8] sm:$0xf] }
 0x2bd   : > { %v3328_v49 = vpop.xlane.xlu1 %3327 }
 0x2be   : > { %v3329_v50 = vmul.f32 0.015625, %v3328_v49  ;;  %v3918_v49 = vpack.c.bf16 %v3912_v47, %v3912_v47 }
 0x2c0   : > { %v3330_v51 = vsub.f32 %v3298_v35, %v3329_v50  ;;  %v3331_v52 = vsub.f32 %v3299_v38, %v3329_v50  ;;  %v3332_v53 = vsub.f32 %v3300_v39, %v3329_v50  ;;  %v3691_v35 = vld [vmem:[#allocation3 + $0x8] sm:$0xf]  ;;  %v4140_v50 = vpack.c.bf16 %v4134_v1, %v4134_v1 }
 0x2c1   : > { %v3697_v37 = vpack.c.bf16 %v3691_v35, %v3691_v35  ;;  %v3617_v38 = vld [vmem:[#allocation3 + $0x8] sm:$0xf] }
 0x2c2   : > { %v3333_v54 = vmul.f32 %v3330_v51, %v3306_v26  ;;  %v3334_v55 = vmul.f32 %v3331_v52, %v3310_v31  ;;  %v3335_v56 = vmul.f32 %v3332_v53, %v3314_v32  ;;  %v3500_v32 = vpack.c.bf16 %v3494_v29, %v3494_v29  ;;  %v3838_v39 = vld [vmem:[#allocation3 + $0x8] sm:$0xf] }
 0x2c3   : > { %v3623_v41 = vpack.c.bf16 %v3617_v38, %v3617_v38  ;;  %v3844_v42 = vpack.c.bf16 %v3838_v39, %v3838_v39  ;;  %v4060_v51 = vld [vmem:[#allocation3 + $0x8] sm:$0xf] }
 0x2c4   : > { %v3336_v57 = vmul.f32 %v3333_v54, %v3333_v54  ;;  %v3337_v58 = vmul.f32 %v3334_v55, %v3334_v55  ;;  %v3338_v59 = vmul.f32 %v3335_v56, %v3335_v56  ;;  %v4282_v52 = vld [vmem:[#allocation3 + $0x8] sm:$0xf]  ;;  %v4066_v53 = vpack.c.bf16 %v4060_v51, %v4060_v51 }
 0x2c5   : > { %v4726_v29 = vld [vmem:[#allocation3 + $0x8] sm:$0xf] }
 0x2c6   : > { %v3339_v60 = vsel %vm3321_vm0, %v3336_v57, 0.0  ;;  %v3340_v61 = vsel %vm3321_vm0, %v3337_v58, 0.0  ;;  %v3342_v63 = vsel %vm3321_vm0, %v3338_v59, 0.0  ;;  %v4356_v59 = vld [vmem:[#allocation3 + $0x8] sm:$0xf] }
 0x2c7   : > { %v3341_v62 = vadd.f32 %v3340_v61, %v3339_v60  ;;  %v4362_v60 = vpack.c.bf16 %v4356_v59, %v4356_v59  ;;  %v4873_v35 = vld [vmem:[#allocation3 + $0x8] sm:$0xf] }
 0x2c8   : > { %v4947_v38 = vld [vmem:[#allocation3 + $0x8] sm:$0xf] }
 0x2c9   : > { %v3343_v3 = vadd.f32 %v3342_v63, %v3341_v62  ;;  %v4953_v39 = vpack.c.bf16 %v4947_v38, %v4947_v38 }
 0x2cb   : > { %3344 = vadd.xlane.f32.xlu0 %v3343_v3 }
 0x358   : > { %v3345_v4 = vpop.xlane.xlu0 %3344 }
 0x359   : > { %v3346_v7 = vmul.f32 0.015625, %v3345_v4 }
 0x35b   : > { %v3347_v8 = vadd.f32 1e-05, %v3346_v7 }
 0x35d   : > { %6198 = vrsqrt.f32 %v3347_v8 }
 0x367   : > { %v6199_v48 = vpop.eup %6198 }
 0x368   : > { %v3349_v10 = vmul.f32 %v6199_v48, %v3333_v54  ;;  %v3350_v11 = vmul.f32 %v6199_v48, %v3334_v55  ;;  %v3351_v12 = vmul.f32 %v6199_v48, %v3335_v56  ;;  %v4288_v54 = vpack.c.bf16 %v4282_v52, %v4282_v52  ;;  %v4208_v55 = vld [vmem:[#allocation3 + $0x8] sm:$0xf] }
 0x369   : > { %v4430_v56 = vld [vmem:[#allocation3 + $0x8] sm:$0xf]  ;;  %v4214_v57 = vpack.c.bf16 %v4208_v55, %v4208_v55 }
 0x36a   : > { %vm3352_vm1 = vcmp.ge.f32.partialorder %v3349_v10, 0.0  ;;  %vm3353_vm2 = vcmp.ge.f32.partialorder %v3350_v11, 0.0  ;;  %vm3354_vm10 = vcmp.ge.f32.partialorder %v3351_v12, 0.0  ;;  %v3355_v13 = vmul.f32 0.01, %v3349_v10 }
 0x36b   : > { %v3356_v30 = vmul.f32 0.01, %v3350_v11  ;;  %v3357_v33 = vmul.f32 0.01, %v3351_v12  ;;  %v4436_v58 = vpack.c.bf16 %v4430_v56, %v4430_v56  ;;  %v5169_v52 = vld [vmem:[#allocation3 + $0x8] sm:$0xf] }
 0x36c   : > { %v3358_v16 = vsel %vm3352_vm1, %v3349_v10, %v3355_v13  ;;  %vm3448_vm1 = vcmask 23556   ;;  %v5243_v56 = vld [vmem:[#allocation3 + $0x8] sm:$0xf] }
 0x36d   : > { %v3359_v34 = vsel %vm3353_vm2, %v3350_v11, %v3356_v30  ;;  %v3360_v18 = vsel %vm3354_vm10, %v3351_v12, %v3357_v33  ;;  %vm3430_vm2 = vcmask 970648   ;;  %vm3444_vm10 = vcmask 285696  }
 0x36e   : > { %v3363_v9 = vcombine.low %v3358_v16, %v3359_v34  ;;  %3366 = vst [vmem:[#allocation2 + $0x8] sm:$0xf] %v3360_v18  ;;  %v5249_v59 = vpack.c.bf16 %v5243_v56, %v5243_v56 }
 0x370   : > { %3365 = vst [vmem:[#allocation2] sm:$0xff] %v3363_v9 }
 0x375   : > { %v3458_v28 = vld [vmem:[#allocation2 + $0x8] sm:$0xf] }
 0x376   : > { %v3472_v31 = vld [vmem:[#allocation2 + $0x8] sm:$0xf] }
 0x377   : > { %v3376_v19 = vld [vmem:[#allocation2] sm:$0xf]  ;;  %v3439_v2 = vld [vmem:[#allocation2 + $0x4] sm:$0xf]  ;;  %v3465_v14 = vld [vmem:[#allocation2 + $0x8] sm:$0xf] }
 0x378   : > { %v3369_v5 = vld [vmem:[#allocation2] sm:$0xf]  ;;  %3378 = vrot.lane.b32.xlu0 %v3376_v19, %s6232_s11  ;;  %v3432_v25 = vld [vmem:[#allocation2 + $0x4] sm:$0xf]  ;;  %v3479_v40 = vld [vmem:[#allocation2 + $0x8] sm:$0xf] }
 0x379   : > { %3371 = vrot.lane.b32.xlu1 %v3369_v5, %s6233_s12  ;;  %v3397_v21 = vld [vmem:[#allocation2] sm:$0xf]  ;;  %v3418_v26 = vld [vmem:[#allocation2 + $0x4] sm:$0xf] }
 0x37a   : > { %v3383_v6 = vld [vmem:[#allocation2] sm:$0xf]  ;;  %v3425_v27 = vld [vmem:[#allocation2 + $0x4] sm:$0xf] }
 0x37b   : > { %v3411_v23 = vld [vmem:[#allocation2] sm:$0xf]  ;;  %v3451_v36 = vld [vmem:[#allocation2 + $0x4] sm:$0xf] }
 0x37c   : > { %3399 = vrot.lane.b32.xlu0 %v3397_v21, %s6234_s14  ;;  %v3390_v17 = vld [vmem:[#allocation2] sm:$0xf] }
 0x37d   : > { %3385 = vrot.lane.b32.xlu1 %v3383_v6, %s6235_s15  ;;  %v3404_v24 = vld [vmem:[#allocation2] sm:$0xf] }
 0x380   : > { %3413 = vrot.lane.b32.xlu0 %v3411_v23, %s6236_s17 }
 0x381   : > { %3392 = vrot.lane.b32.xlu1 %v3390_v17, %s6237_s18  ;;  %v3492_v17 = vld [vmem:[%s7398_s3] sm:$0x3] }
 0x384   : > { %3441 = vrot.lane.b32.xlu0 %v3439_v2, %s6235_s15  ;;  %v4504_v2 = vld [vmem:[#allocation3 + $0x8] sm:$0xf] }
 0x385   : > { %3406 = vrot.lane.b32.xlu1 %v3404_v24, %s6238_s19  ;;  %v4510_v24 = vpack.c.bf16 %v4504_v2, %v4504_v2 }
 0x388   : > { %3434 = vrot.lane.b32.xlu0 %v3432_v25, %s6232_s11  ;;  %s6249_s11 = smov 85   ;;  %v4578_v25 = vld [vmem:[#allocation3 + $0x8] sm:$0xf] }
 0x389   : > { %3420 = vrot.lane.b32.xlu1 %v3418_v26, %s6239_s21  ;;  %v4584_v26 = vpack.c.bf16 %v4578_v25, %v4578_v25 }
 0x38c   : > { %3460 = vrot.lane.b32.xlu0 %v3458_v28, %s6234_s14  ;;  %s6250_s14 = smov 86   ;;  %v4652_v28 = vld [vmem:[#allocation3 + $0x8] sm:$0xf] }
 0x38d   : > { %3427 = vrot.lane.b32.xlu1 %v3425_v27, %s6233_s12  ;;  %v4658_v27 = vpack.c.bf16 %v4652_v28, %v4652_v28 }
 0x390   : > { %3474 = vrot.lane.b32.xlu0 %v3472_v31, %s6236_s17  ;;  %v4732_v31 = vpack.c.bf16 %v4726_v29, %v4726_v29 }
 0x391   : > { %3467 = vrot.lane.b32.xlu1 %v3465_v14, %s6238_s19  ;;  %s6252_s19 = smov 80   ;;  %v4799_v14 = vld [vmem:[#allocation3 + $0x8] sm:$0xf] }
 0x394   : > { %3510 = vrot.lane.b32.xlu0 %v3500_v32, %s6215_s30  ;;  %v4805_v32 = vpack.c.bf16 %v4799_v14, %v4799_v14 }
 0x395   : > { %3453 = vrot.lane.b32.xlu1 %v3451_v36, %s6237_s18  ;;  %s6251_s18 = smov 84   ;;  %v4879_v36 = vpack.c.bf16 %v4873_v35, %v4873_v35 }
 0x398   : > { %3707 = vrot.lane.b32.xlu0 %v3697_v37, %s6217_s13 }
 0x399   : > { %3481 = vrot.lane.b32.xlu1 %v3479_v40, %s6239_s21  ;;  %s6254_s21 = smov 56  }
 0x39c   : > { %3854 = vrot.lane.b32.xlu0 %v3844_v42, %s6241_s23  ;;  %v5021_v42 = vld [vmem:[#allocation3 + $0x8] sm:$0xf] }
 0x39d   : > { %3633 = vrot.lane.b32.xlu1 %v3623_v41, %s6240_s22  ;;  %v5027_v43 = vpack.c.bf16 %v5021_v42, %v5021_v42 }
 0x3a0   : > { %4002 = vrot.lane.b32.xlu0 %v3992_v46, %s6243_s27  ;;  %v5095_v46 = vld [vmem:[#allocation3 + $0x8] sm:$0xf] }
 0x3a1   : > { %3780 = vrot.lane.b32.xlu1 %v3770_v45, %s6242_s26 }
 0x3a4   : > { %4150 = vrot.lane.b32.xlu0 %v4140_v50, %s6245_s29 }
 0x3a5   : > { %3928 = vrot.lane.b32.xlu1 %v3918_v49, %s6244_s28  ;;  %v5101_v49 = vpack.c.bf16 %v5095_v46, %v5095_v46 }
 0x3a8   : > { %4298 = vrot.lane.b32.xlu0 %v4288_v54, %s6247_s9 }
 0x3a9   : > { %4076 = vrot.lane.b32.xlu1 %v4066_v53, %s6246_s8  ;;  %v5175_v53 = vpack.c.bf16 %v5169_v52, %v5169_v52 }
 0x3ac   : > { %4446 = vrot.lane.b32.xlu0 %v4436_v58, %s6249_s11 }
 0x3ad   : > { %4224 = vrot.lane.b32.xlu1 %v4214_v57, %s6248_s10 }
 0x3b1   : > { %4372 = vrot.lane.b32.xlu1 %v4362_v60, %s6250_s14  ;;  %v5317_v60 = vld [vmem:[#allocation3 + $0x8] sm:$0xf] }
 0x3ea   : > { %v3379_v61 = vpop.permute.xlu0 %3378 }
 0x3eb   : > { %v3372_v62 = vpop.permute.xlu1 %3371 }
 0x3ec   : > { %3375 = vst.msk [vmem:[#allocation3] sm:$0xf] %vm3374_vm11, %v3372_v62  ;;  %vm3437_vm11 = vcmask 1019848  }
 0x3ed   : > { %3382 = vst.msk [vmem:[#allocation3] sm:$0xf] %vm3381_vm12, %v3379_v61  ;;  %vm3449_vm12 = vmor %vm3448_vm1, %vm3447_vm9  ;;  %vm3514_vm9 = vcmask 31744   ;;  %vm3635_vm1 = vcmask 1031168  }
 0x3ee   : > { %v3400_v63 = vpop.permute.xlu0 %3399 }
 0x3ef   : > { %v3386_v3 = vpop.permute.xlu1 %3385 }
 0x3f0   : > { %3389 = vst.msk [vmem:[#allocation3] sm:$0xf] %vm3388_vm13, %v3386_v3  ;;  %vm3456_vm13 = vcmask 68648  }
 0x3f2   : > { %v3414_v4 = vpop.permute.xlu0 %3413 }
 0x3f3   : > { %v3393_v7 = vpop.permute.xlu1 %3392 }
 0x3f4   : > { %3396 = vst.msk [vmem:[#allocation3] sm:$0xf] %vm3395_vm14, %v3393_v7  ;;  %vm3463_vm14 = vcmask 216248   ;;  %v5391_v7 = vld [vmem:[#allocation3 + $0x8] sm:$0xf] }
 0x3f5   : > { %3403 = vst.msk [vmem:[#allocation3] sm:$0xf] %vm3402_vm15, %v3400_v63  ;;  %vm3470_vm15 = vcmask 265448   ;;  %v5323_v63 = vpack.c.bf16 %v5317_v60, %v5317_v60  ;;  %v5827_v60 = vld [vmem:[%s7398_s3 + $0xa] sm:$0x3] }
 0x3f6   : > { %v3442_v48 = vpop.permute.xlu0 %3441 }
 0x3f7   : > { %v3407_v8 = vpop.permute.xlu1 %3406  ;;  %v3443_v11 = vrot.slane %v3442_v48, 4 }
 0x3f8   : > { %3410 = vst.msk [vmem:[#allocation3] sm:$0xf] %vm3409_vm4, %v3407_v8  ;;  %vm3477_vm4 = vcmask 314648  }
 0x3f9   : > { %3417 = vst.msk [vmem:[#allocation3] sm:$0xf] %vm3416_vm6, %v3414_v4  ;;  %v3445_v30 = vsel %vm3444_vm10, %v3443_v11, %v3442_v48  ;;  %vm3484_vm6 = vcmask 363848   ;;  %v5464_v11 = vld [vmem:[%s7399_s4] sm:$0xf]  ;;  %vm4078_vm10 = vcmask 932864  }
 0x3fa   : > { %v3435_v12 = vpop.permute.xlu0 %3434 }
 0x3fb   : > { %v3421_v10 = vpop.permute.xlu1 %3420 }
 0x3fc   : > { %3424 = vst.msk [vmem:[#allocation3] sm:$0xf] %vm3423_vm7, %v3421_v10  ;;  %vm3518_vm7 = vcmask 1041408   ;;  %v5397_v10 = vpack.c.bf16 %v5391_v7, %v5391_v7 }
 0x3fe   : > { %v3461_v16 = vpop.permute.xlu0 %3460 }
 0x3ff   : > { %v3428_v13 = vpop.permute.xlu1 %3427 }
 0x400   : > { %3431 = vst.msk [vmem:[#allocation3] sm:$0xf] %vm3430_vm2, %v3428_v13  ;;  %vm3856_vm2 = vcmask 982016  }
 0x401   : > { %3438 = vst.msk [vmem:[#allocation3] sm:$0xf] %vm3437_vm11, %v3435_v12  ;;  %vm4004_vm11 = vcmask 941056  }
 0x402   : > { %3450 = vst.msk [vmem:[#allocation3] sm:$0xff] %vm3449_vm12, %v3445_v30  ;;  %v3475_v18 = vpop.permute.xlu0 %3474  ;;  %vm4226_vm12 = vcmask 744448  }
 0x403   : > { %v3468_v33 = vpop.permute.xlu1 %3467 }
 0x406   : > { %v7025_v37 = vpop.permute.xlu0 %3510 }
 0x407   : > { %v3454_v34 = vpop.permute.xlu1 %3453 }
 0x408   : > { %3457 = vst.msk [vmem:[#allocation3 + $0x4] sm:$0xf] %vm3456_vm13, %v3454_v34  ;;  %vm4152_vm13 = vcmask 752640  }
 0x409   : > { %3464 = vst.msk [vmem:[#allocation3 + $0x4] sm:$0xf] %vm3463_vm14, %v3461_v16  ;;  %vm4374_vm14 = vcmask 703488  }
 0x40a   : > { %3471 = vst.msk [vmem:[#allocation3 + $0x4] sm:$0xf] %vm3470_vm15, %v3468_v33  ;;  %v7031_v40 = vpop.permute.xlu0 %3707  ;;  %vm4300_vm15 = vcmask 736256  }
 0x40b   : > { %3478 = vst.msk [vmem:[#allocation3 + $0x4] sm:$0xf] %vm3477_vm4, %v3475_v18  ;;  %v3482_v9 = vpop.permute.xlu1 %3481  ;;  %vm4522_vm4 = vcmask 687104  }
 0x40c   : > { %3485 = vst.msk [vmem:[#allocation3 + $0x4] sm:$0xf] %vm3484_vm6, %v3482_v9  ;;  %vm4448_vm6 = vcmask 695296  }
 0x40e   : > { %v7042_v44 = vpop.permute.xlu0 %3854 }
 0x40f   : > { %v7033_v41 = vpop.permute.xlu1 %3633 }
 0x412   : > { %v7048_v47 = vpop.permute.xlu0 %4002 }
 0x413   : > { %v3616_v19 = vld [vmem:[#allocation3] sm:$0xff]  ;;  %v7044_v45 = vpop.permute.xlu1 %3780 }
 0x414   : > { %v6942_v5 = vpack.c.bf16 %v3616_v19, %v3616_v19  ;;  %v3488_v21 = vcombine.high %v3616_v19, %v3616_v19 }
 0x416   : > { %3629 = vrot.lane.b32.xlu1 %v6942_v5, %s6240_s22  ;;  %3506 = vrot.lane.b32.xlu0 %v6942_v5, %s6215_s30  ;;  %v6948_v6 = vpack.c.bf16 %v3488_v21, %v3488_v21  ;;  %v3570_v23 = vsel %vm3518_vm7, %v6942_v5, 0  ;;  %v7057_v50 = vpop.permute.xlu0 %4150 }
 0x417   : > { %v7050_v1 = vpop.permute.xlu1 %3928 }
 0x418   : > { %5816 = vmatprep.subr.msk.bf16.mxu1 %vm3518_vm7, %v6948_v6 }
 0x419   : > { %3576 = vmatpush1.bf16.msra.mxu1 %v3570_v23 }
 0x41a   : > { %3776 = vrot.lane.b32.xlu1 %v6942_v5, %s6242_s26  ;;  %3703 = vrot.lane.b32.xlu0 %v6942_v5, %s6217_s13  ;;  %v7065_v54 = vpop.permute.xlu0 %4298 }
 0x41b   : > { %v7059_v51 = vpop.permute.xlu1 %4076 }
 0x41c   : > { %5817 = vmatmul.mubr.msk.bf16.vlgmr.msra.gmra.mrb[108].mxu1 %vm3514_vm9, %v3492_v17 }
 0x41d   : > { %3752 = vmatprep.mubr.bf16.mxu1 %v6212_v0 }
 0x41e   : > { %3924 = vrot.lane.b32.xlu1 %v6942_v5, %s6244_s28  ;;  %3850 = vrot.lane.b32.xlu0 %v6942_v5, %s6241_s23  ;;  %v7073_v57 = vpop.permute.xlu0 %4446 }
 0x41f   : > { %v7067_v55 = vpop.permute.xlu1 %4224 }
 0x422   : > { %4072 = vrot.lane.b32.xlu1 %v6942_v5, %s6246_s8  ;;  %3998 = vrot.lane.b32.xlu0 %v6942_v5, %s6243_s27 }
 0x423   : > { %v7075_v58 = vpop.permute.xlu1 %4372 }
 0x426   : > { %4220 = vrot.lane.b32.xlu1 %v6942_v5, %s6248_s10  ;;  %4146 = vrot.lane.b32.xlu0 %v6942_v5, %s6245_s29 }
 0x42a   : > { %4368 = vrot.lane.b32.xlu1 %v6942_v5, %s6250_s14  ;;  %4294 = vrot.lane.b32.xlu0 %v6942_v5, %s6247_s9 }
 0x42e   : > { %4442 = vrot.lane.b32.xlu0 %v6942_v5, %s6249_s11  ;;  %3508 = vrot.lane.b32.xlu1 %v6948_v6, %s6215_s30  ;;  %s6253_s30 = smov 79  }
 0x432   : > { %3631 = vrot.lane.b32.xlu0 %v6948_v6, %s6240_s22  ;;  %4516 = vrot.lane.b32.xlu1 %v6942_v5, %s6251_s18 }
 0x436   : > { %4590 = vrot.lane.b32.xlu0 %v6942_v5, %s6252_s19  ;;  %4520 = vrot.lane.b32.xlu1 %v4510_v24, %s6251_s18 }
 0x43a   : > { %3778 = vrot.lane.b32.xlu0 %v6948_v6, %s6242_s26  ;;  %3705 = vrot.lane.b32.xlu1 %v6948_v6, %s6217_s13  ;;  %s6256_s26 = smov 54  }
 0x43e   : > { %4594 = vrot.lane.b32.xlu0 %v4584_v26, %s6252_s19  ;;  %4664 = vrot.lane.b32.xlu1 %v6942_v5, %s6253_s30 }
 0x442   : > { %3926 = vrot.lane.b32.xlu0 %v6948_v6, %s6244_s28  ;;  %3852 = vrot.lane.b32.xlu1 %v6948_v6, %s6241_s23  ;;  %s6255_s23 = smov 55   ;;  %s6258_s28 = smov 49  }
 0x446   : > { %4738 = vrot.lane.b32.xlu0 %v6942_v5, %s6220_s16  ;;  %4668 = vrot.lane.b32.xlu1 %v4658_v27, %s6253_s30  ;;  %v5818_v27 = vld [vmem:[%s7398_s3 + $0x4] sm:$0x3] }
 0x44a   : > { %4074 = vrot.lane.b32.xlu0 %v6948_v6, %s6246_s8  ;;  %4000 = vrot.lane.b32.xlu1 %v6948_v6, %s6243_s27  ;;  %s6257_s27 = smov 50   ;;  %s6261_s8 = smov 42  }
 0x44e   : > { %4742 = vrot.lane.b32.xlu0 %v4732_v31, %s6220_s16  ;;  %4811 = vrot.lane.b32.xlu1 %v6942_v5, %s6254_s21 }
 0x452   : > { %4222 = vrot.lane.b32.xlu0 %v6948_v6, %s6248_s10  ;;  %4148 = vrot.lane.b32.xlu1 %v6948_v6, %s6245_s29  ;;  %s6259_s29 = smov 48   ;;  %s6270_s10 = smov 64  }
 0x456   : > { %4885 = vrot.lane.b32.xlu0 %v6942_v5, %s6255_s23  ;;  %4815 = vrot.lane.b32.xlu1 %v4805_v32, %s6254_s21 }
 0x45a   : > { %4370 = vrot.lane.b32.xlu0 %v6948_v6, %s6250_s14  ;;  %4296 = vrot.lane.b32.xlu1 %v6948_v6, %s6247_s9  ;;  %s6269_s9 = smov 66  }
 0x45e   : > { %4889 = vrot.lane.b32.xlu0 %v4879_v36, %s6255_s23  ;;  %4959 = vrot.lane.b32.xlu1 %v6942_v5, %s6256_s26 }
 0x462   : > { %4518 = vrot.lane.b32.xlu0 %v6948_v6, %s6251_s18  ;;  %4444 = vrot.lane.b32.xlu1 %v6948_v6, %s6249_s11 }
 0x466   : > { %5033 = vrot.lane.b32.xlu0 %v6942_v5, %s6257_s27  ;;  %4963 = vrot.lane.b32.xlu1 %v4953_v39, %s6256_s26  ;;  %v5821_v39 = vld [vmem:[%s7398_s3 + $0x6] sm:$0x3] }
 0x46a   : > { %4666 = vrot.lane.b32.xlu0 %v6948_v6, %s6253_s30  ;;  %4592 = vrot.lane.b32.xlu1 %v6948_v6, %s6252_s19 }
 0x46e   : > { %5037 = vrot.lane.b32.xlu0 %v5027_v43, %s6257_s27  ;;  %5107 = vrot.lane.b32.xlu1 %v6942_v5, %s6258_s28 }
 0x472   : > { %4813 = vrot.lane.b32.xlu0 %v6948_v6, %s6254_s21  ;;  %4740 = vrot.lane.b32.xlu1 %v6948_v6, %s6220_s16  ;;  %s6260_s16 = smov 44   ;;  %s5691_s21 = sshll.u32 %s7404_s25, 2 }
 0x473   : > { %s6264_s25 = smov 106  }
 0x476   : > { %5181 = vrot.lane.b32.xlu0 %v6942_v5, %s6259_s29  ;;  %5111 = vrot.lane.b32.xlu1 %v5101_v49, %s6258_s28 }
 0x47a   : > { %4961 = vrot.lane.b32.xlu0 %v6948_v6, %s6256_s26  ;;  %4887 = vrot.lane.b32.xlu1 %v6948_v6, %s6255_s23  ;;  %s6262_s23 = smov 124  }
 0x47e   : > { %5185 = vrot.lane.b32.xlu0 %v5175_v53, %s6259_s29  ;;  %5255 = vrot.lane.b32.xlu1 %v6942_v5, %s6260_s16 }
 0x482   : > { %5109 = vrot.lane.b32.xlu0 %v6948_v6, %s6258_s28  ;;  %5035 = vrot.lane.b32.xlu1 %v6948_v6, %s6257_s27  ;;  %s7370_s28 = scalar_lea.vmem %s7402_s7, %s5691_s21 }
 0x486   : > { %5329 = vrot.lane.b32.xlu0 %v6942_v5, %s6233_s12  ;;  %5259 = vrot.lane.b32.xlu1 %v5249_v59, %s6260_s16 }
 0x488   : > { %v3507_v61 = vpop.permute.xlu0 %3506  ;;  %v3630_v62 = vpop.permute.xlu1 %3629 }
 0x48a   : > { %5257 = vrot.lane.b32.xlu0 %v6948_v6, %s6260_s16  ;;  %5183 = vrot.lane.b32.xlu1 %v6948_v6, %s6259_s29  ;;  %s6263_s29 = smov 108   ;;  %s6266_s16 = smov 102  }
 0x48c   : > { %v3704_v3 = vpop.permute.xlu0 %3703  ;;  %v3777_v4 = vpop.permute.xlu1 %3776 }
 0x48e   : > { %5333 = vrot.lane.b32.xlu0 %v5323_v63, %s6233_s12  ;;  %5403 = vrot.lane.b32.xlu1 %v6942_v5, %s6261_s8 }
 0x490   : > { %v7083_v8 = vpop.permute.xlu0 %3850  ;;  %v3925_v48 = vpop.permute.xlu1 %3924 }
 0x492   : > { %5405 = vrot.lane.b32.xlu0 %v6948_v6, %s6261_s8  ;;  %5331 = vrot.lane.b32.xlu1 %v6948_v6, %s6233_s12  ;;  %v5813_v6 = vld [vmem:[%s7398_s3 + $0x2] sm:$0x3] }
 0x494   : > { %v7091_v12 = vpop.permute.xlu0 %3998  ;;  %v7093_v13 = vpop.permute.xlu1 %4072 }
 0x496   : > { %5467 = vperm.xlu0 %6180, %v5464_v11   ;;  %5407 = vrot.lane.b32.xlu1 %v5397_v10, %s6261_s8  ;;  %v5833_v11 = vld [vmem:[%s7398_s3 + $0xe] sm:$0x3]  ;;  %s6267_s8 = smov 88  }
 0x498   : > { %v7095_v30 = vpop.permute.xlu0 %4146  ;;  %v7097_v33 = vpop.permute.xlu1 %4220 }
 0x49c   : > { %v7099_v16 = vpop.permute.xlu0 %4294  ;;  %v7101_v34 = vpop.permute.xlu1 %4368 }
 0x4a0   : > { %v7103_v18 = vpop.permute.xlu0 %4442  ;;  %v3509_v9 = vpop.permute.xlu1 %3508 }
 0x4a1   : > { %v3512_v19 = vsel %vm536_vm3, %v3507_v61, %v3509_v9  ;;  %v3513_v5 = vsel %vm536_vm3, %v3509_v9, %v7025_v37  ;;  %vm3782_vm3 = vcmask 990208  }
 0x4a2   : > { %v3520_v21 = vsel %vm3518_vm7, %v3512_v19, 0  ;;  %5814 = vmatprep.subr.msk.bf16.mxu0 %vm3518_vm7, %v3513_v5 }
 0x4a3   : > { %3526 = vmatpush1.bf16.msra.mxu0 %v3520_v21 }
 0x4a4   : > { %v3632_v23 = vpop.permute.xlu0 %3631  ;;  %v7113_v17 = vpop.permute.xlu1 %4516 }
 0x4a5   : > { %v3636_v2 = vsel %vm3635_vm1, %v3630_v62, %v3632_v23  ;;  %v3637_v24 = vsel %vm3635_vm1, %v3632_v23, %v7033_v41  ;;  %vm4670_vm1 = vcmask 646144  }
 0x4a6   : > { %v3642_v25 = vsel %vm3518_vm7, %v3636_v2, 0  ;;  %5815 = vmatmul.mubr.msk.bf16.vlgmr.msra.gmra.mrb[108].mxu0 %vm3514_vm9, %v5813_v6  ;;  %5819 = vmatprep.subr.msk.bf16.mxu0 %vm3518_vm7, %v3637_v24 }
 0x4a7   : > { %3648 = vmatpush1.bf16.msra.mxu0 %v3642_v25  ;;  %3679 = vmatprep.mubr.bf16.mxu0 %v6212_v0 }
 0x4a8   : > { %v7120_v26 = vpop.permute.xlu0 %4590  ;;  %v7122_v28 = vpop.permute.xlu1 %4520 }
 0x4ac   : > { %v3779_v29 = vpop.permute.xlu0 %3778  ;;  %v3706_v31 = vpop.permute.xlu1 %3705 }
 0x4ad   : > { %v3783_v14 = vsel %vm3782_vm3, %v3777_v4, %v3779_v29  ;;  %v3784_v32 = vsel %vm3782_vm3, %v3779_v29, %v7044_v45  ;;  %v3709_v35 = vsel %vm889_vm5, %v3704_v3, %v3706_v31  ;;  %v3710_v36 = vsel %vm889_vm5, %v3706_v31, %v7031_v40  ;;  %v5824_v40 = vld [vmem:[%s7398_s3 + $0x8] sm:$0x3] }
 0x4ae   : > { %v3789_v37 = vsel %vm3518_vm7, %v3783_v14, 0  ;;  %v3715_v38 = vsel %vm3518_vm7, %v3709_v35, 0  ;;  %5820 = vmatmul.mubr.msk.bf16.vlgmr.msra.gmra.mrb[112].mxu0 %vm3514_vm9, %v5818_v27  ;;  %5822 = vmatprep.subr.msk.bf16.mxu1 %vm3518_vm7, %v3710_v36  ;;  %vm3930_vm5 = vcmask 949248   ;;  %vm4596_vm3 = vcmask 654336  }
 0x4af   : > { %5825 = vmatprep.subr.msk.bf16.mxu0 %vm3518_vm7, %v3784_v32  ;;  %3721 = vmatpush1.bf16.msra.mxu1 %v3715_v38 }
 0x4b0   : > { %3795 = vmatpush1.bf16.msra.mxu0 %v3789_v37  ;;  %v7139_v41 = vpop.permute.xlu0 %4594  ;;  %v7141_v42 = vpop.permute.xlu1 %4664  ;;  %3826 = vmatprep.mubr.bf16.mxu0 %v6212_v0 }
 0x4b2   : > { %5823 = vmatmul.mubr.msk.bf16.vlgmr.msra.gmra.mrb[112].mxu1 %vm3514_vm9, %v5821_v39 }
 0x4b3   : > { %3900 = vmatprep.mubr.bf16.mxu1 %v6212_v0 }
 0x4b4   : > { %v3927_v43 = vpop.permute.xlu0 %3926  ;;  %v3853_v45 = vpop.permute.xlu1 %3852 }
 0x4b5   : > { %v3931_v46 = vsel %vm3930_vm5, %v3925_v48, %v3927_v43  ;;  %v3932_v49 = vsel %vm3930_vm5, %v3927_v43, %v7050_v1  ;;  %v3857_v52 = vsel %vm3856_vm2, %v7083_v8, %v3853_v45  ;;  %v3858_v53 = vsel %vm3856_vm2, %v3853_v45, %v7042_v44  ;;  %v5830_v44 = vld [vmem:[%s7398_s3 + $0xc] sm:$0x3] }
 0x4b6   : > { %v3937_v56 = vsel %vm3518_vm7, %v3931_v46, 0  ;;  %v3863_v59 = vsel %vm3518_vm7, %v3857_v52, 0  ;;  %5826 = vmatmul.mubr.msk.bf16.vlgmr.msra.gmra.mrb[116].mxu0 %vm3514_vm9, %v5824_v40  ;;  %5828 = vmatprep.subr.msk.bf16.mxu1 %vm3518_vm7, %v3858_v53  ;;  %vm4817_vm5 = vcmask 457728   ;;  %vm4891_vm2 = vcmask 449536  }
 0x4b7   : > { %5831 = vmatprep.subr.msk.bf16.mxu0 %vm3518_vm7, %v3932_v49  ;;  %3869 = vmatpush1.bf16.msra.mxu1 %v3863_v59 }
 0x4b8   : > { %3943 = vmatpush1.bf16.msra.mxu0 %v3937_v56  ;;  %v7160_v1 = vpop.permute.xlu0 %4738  ;;  %v7162_v61 = vpop.permute.xlu1 %4668  ;;  %3974 = vmatprep.mubr.bf16.mxu0 %v6212_v0 }
 0x4ba   : > { %5829 = vmatmul.mubr.msk.bf16.vlgmr.msra.gmra.mrb[116].mxu1 %vm3514_vm9, %v5827_v60 }
 0x4bb   : > { %4048 = vmatprep.mubr.bf16.mxu1 %v6212_v0 }
 0x4bc   : > { %v4075_v62 = vpop.permute.xlu0 %4074  ;;  %v4001_v63 = vpop.permute.xlu1 %4000 }
 0x4bd   : > { %v4079_v3 = vsel %vm4078_vm10, %v7093_v13, %v4075_v62  ;;  %v4080_v4 = vsel %vm4078_vm10, %v4075_v62, %v7059_v51  ;;  %v4005_v7 = vsel %vm4004_vm11, %v7091_v12, %v4001_v63  ;;  %v4006_v8 = vsel %vm4004_vm11, %v4001_v63, %v7048_v47  ;;  %v5836_v47 = vld [vmem:[%s7398_s3 + $0x10] sm:$0x3] }
 0x4be   : > { %v4085_v48 = vsel %vm3518_vm7, %v4079_v3, 0  ;;  %v4011_v10 = vsel %vm3518_vm7, %v4005_v7, 0  ;;  %5832 = vmatmul.mubr.msk.bf16.vlgmr.msra.gmra.mrb[120].mxu0 %vm3514_vm9, %v5830_v44  ;;  %5834 = vmatprep.subr.msk.bf16.mxu1 %vm3518_vm7, %v4006_v8  ;;  %vm5113_vm10 = vcmask 400384   ;;  %vm5039_vm11 = vcmask 408576  }
 0x4bf   : > { %5837 = vmatprep.subr.msk.bf16.mxu0 %vm3518_vm7, %v4080_v4  ;;  %4017 = vmatpush1.bf16.msra.mxu1 %v4011_v10 }
 0x4c0   : > { %4091 = vmatpush1.bf16.msra.mxu0 %v4085_v48  ;;  %v7182_v51 = vpop.permute.xlu0 %4742  ;;  %v7184_v12 = vpop.permute.xlu1 %4811  ;;  %4122 = vmatprep.mubr.bf16.mxu0 %v6212_v0 }
 0x4c2   : > { %5835 = vmatmul.mubr.msk.bf16.vlgmr.msra.gmra.mrb[120].mxu1 %vm3514_vm9, %v5833_v11 }
 0x4c3   : > { %4196 = vmatprep.mubr.bf16.mxu1 %v6212_v0 }
 0x4c4   : > { %v4223_v13 = vpop.permute.xlu0 %4222  ;;  %v4149_v9 = vpop.permute.xlu1 %4148 }
 0x4c5   : > { %v4227_v19 = vsel %vm4226_vm12, %v7097_v33, %v4223_v13  ;;  %v4228_v5 = vsel %vm4226_vm12, %v4223_v13, %v7067_v55  ;;  %v4153_v21 = vsel %vm4152_vm13, %v7095_v30, %v4149_v9  ;;  %v4154_v6 = vsel %vm4152_vm13, %v4149_v9, %v7057_v50  ;;  %v5839_v33 = vld [vmem:[%s7398_s3 + $0x12] sm:$0x3]  ;;  %v5842_v50 = vld [vmem:[%s7398_s3 + $0x14] sm:$0x3] }
 0x4c6   : > { %v4233_v23 = vsel %vm3518_vm7, %v4227_v19, 0  ;;  %v4159_v2 = vsel %vm3518_vm7, %v4153_v21, 0  ;;  %5838 = vmatmul.mubr.msk.bf16.vlgmr.msra.gmra.mrb[124].mxu0 %vm3514_vm9, %v5836_v47  ;;  %5840 = vmatprep.subr.msk.bf16.mxu1 %vm3518_vm7, %v4154_v6  ;;  %vm5261_vm12 = vcmask 359424   ;;  %vm5187_vm13 = vcmask 392192  }
 0x4c7   : > { %5843 = vmatprep.subr.msk.bf16.mxu0 %vm3518_vm7, %v4228_v5  ;;  %4165 = vmatpush1.bf16.msra.mxu1 %v4159_v2 }
 0x4c8   : > { %4239 = vmatpush1.bf16.msra.mxu0 %v4233_v23  ;;  %v7204_v55 = vpop.permute.xlu0 %4885  ;;  %v7206_v30 = vpop.permute.xlu1 %4815  ;;  %4270 = vmatprep.mubr.bf16.mxu0 %v6212_v0 }
 0x4ca   : > { %5841 = vmatmul.mubr.msk.bf16.vlgmr.msra.gmra.mrb[124].mxu1 %vm3514_vm9, %v5839_v33  ;;  %v5869_v33 = vld [vmem:[%s7398_s3 + $0x26] sm:$0x3] }
 0x4cb   : > { %4344 = vmatprep.mubr.bf16.mxu1 %v6212_v0 }
 0x4cc   : > { %v4371_v24 = vpop.permute.xlu0 %4370  ;;  %v4297_v25 = vpop.permute.xlu1 %4296 }
 0x4cd   : > { %v4375_v27 = vsel %vm4374_vm14, %v7101_v34, %v4371_v24  ;;  %v4376_v29 = vsel %vm4374_vm14, %v4371_v24, %v7075_v58  ;;  %v4301_v31 = vsel %vm4300_vm15, %v7099_v16, %v4297_v25  ;;  %v4302_v14 = vsel %vm4300_vm15, %v4297_v25, %v7065_v54  ;;  %v5845_v34 = vld [vmem:[%s7398_s3 + $0x16] sm:$0x3]  ;;  %v5848_v54 = vld [vmem:[%s7398_s3 + $0x18] sm:$0x3] }
 0x4ce   : > { %v4381_v32 = vsel %vm3518_vm7, %v4375_v27, 0  ;;  %v4307_v35 = vsel %vm3518_vm7, %v4301_v31, 0  ;;  %5844 = vmatmul.mubr.msk.bf16.vlgmr.msra.gmra.mrb[128].mxu0 %vm3514_vm9, %v5842_v50  ;;  %5846 = vmatprep.subr.msk.bf16.mxu1 %vm3518_vm7, %v4302_v14  ;;  %v5872_v50 = vld [vmem:[%s7398_s3 + $0x28] sm:$0x3]  ;;  %vm5335_vm14 = vcmask 351232   ;;  %vm5409_vm15 = vcmask 343040  }
 0x4cf   : > { %5849 = vmatprep.subr.msk.bf16.mxu0 %vm3518_vm7, %v4376_v29  ;;  %4313 = vmatpush1.bf16.msra.mxu1 %v4307_v35 }
 0x4d0   : > { %4387 = vmatpush1.bf16.msra.mxu0 %v4381_v32  ;;  %v7226_v58 = vpop.permute.xlu0 %4889  ;;  %v7228_v16 = vpop.permute.xlu1 %4959  ;;  %4418 = vmatprep.mubr.bf16.mxu0 %v6212_v0 }
 0x4d2   : > { %5847 = vmatmul.mubr.msk.bf16.vlgmr.msra.gmra.mrb[128].mxu1 %vm3514_vm9, %v5845_v34  ;;  %v5875_v34 = vld [vmem:[%s7398_s3 + $0x2a] sm:$0x3] }
 0x4d3   : > { %4492 = vmatprep.mubr.bf16.mxu1 %v6212_v0 }
 0x4d4   : > { %v4519_v36 = vpop.permute.xlu0 %4518  ;;  %v4445_v37 = vpop.permute.xlu1 %4444 }
 0x4d5   : > { %v4523_v38 = vsel %vm4522_vm4, %v7113_v17, %v4519_v36  ;;  %v4524_v39 = vsel %vm4522_vm4, %v4519_v36, %v7122_v28  ;;  %v4449_v40 = vsel %vm4448_vm6, %v7103_v18, %v4445_v37  ;;  %v4450_v43 = vsel %vm4448_vm6, %v4445_v37, %v7073_v57  ;;  %v5851_v17 = vld [vmem:[%s7398_s3 + $0x1a] sm:$0x3]  ;;  %v5854_v57 = vld [vmem:[%s7398_s3 + $0x1c] sm:$0x3] }
 0x4d6   : > { %v4529_v45 = vsel %vm3518_vm7, %v4523_v38, 0  ;;  %v4455_v46 = vsel %vm3518_vm7, %v4449_v40, 0  ;;  %5850 = vmatmul.mubr.msk.bf16.vlgmr.msra.gmra.mrb[132].mxu0 %vm3514_vm9, %v5848_v54  ;;  %5852 = vmatprep.subr.msk.bf16.mxu1 %vm3518_vm7, %v4450_v43  ;;  %v5878_v54 = vld [vmem:[%s7398_s3 + $0x2c] sm:$0x3]  ;;  %vm5527_vm4 = vcmask 60448   ;;  %vm5534_vm6 = vcmask 93248  }
 0x4d7   : > { %5855 = vmatprep.subr.msk.bf16.mxu0 %vm3518_vm7, %v4524_v39  ;;  %4461 = vmatpush1.bf16.msra.mxu1 %v4455_v46 }
 0x4d8   : > { %4535 = vmatpush1.bf16.msra.mxu0 %v4529_v45  ;;  %v7248_v28 = vpop.permute.xlu0 %5033  ;;  %v4964_v18 = vpop.permute.xlu1 %4963  ;;  %4566 = vmatprep.mubr.bf16.mxu0 %v6212_v0 }
 0x4da   : > { %5853 = vmatmul.mubr.msk.bf16.vlgmr.msra.gmra.mrb[132].mxu1 %vm3514_vm9, %v5851_v17 }
 0x4db   : > { %4640 = vmatprep.mubr.bf16.mxu1 %v6212_v0 }
 0x4dc   : > { %v4667_v49 = vpop.permute.xlu0 %4666  ;;  %v4593_v52 = vpop.permute.xlu1 %4592 }
 0x4dd   : > { %v4671_v53 = vsel %vm4670_vm1, %v7141_v42, %v4667_v49  ;;  %v4672_v56 = vsel %vm4670_vm1, %v4667_v49, %v7162_v61  ;;  %v4597_v59 = vsel %vm4596_vm3, %v7120_v26, %v4593_v52  ;;  %v4598_v60 = vsel %vm4596_vm3, %v4593_v52, %v7139_v41  ;;  %v5857_v42 = vld [vmem:[%s7398_s3 + $0x1e] sm:$0x3]  ;;  %v5860_v41 = vld [vmem:[%s7398_s3 + $0x20] sm:$0x3] }
 0x4de   : > { %v4677_v44 = vsel %vm3518_vm7, %v4671_v53, 0  ;;  %v4603_v62 = vsel %vm3518_vm7, %v4597_v59, 0  ;;  %5856 = vmatmul.mubr.msk.bf16.vlgmr.msra.gmra.mrb[136].mxu0 %vm3514_vm9, %v5854_v57  ;;  %5858 = vmatprep.subr.msk.bf16.mxu1 %vm3518_vm7, %v4598_v60  ;;  %vm5541_vm1 = vcmask 126048   ;;  %vm5548_vm3 = vcmask 158848  }
 0x4df   : > { %5861 = vmatprep.subr.msk.bf16.mxu0 %vm3518_vm7, %v4672_v56  ;;  %4609 = vmatpush1.bf16.msra.mxu1 %v4603_v62  ;;  %v5884_v56 = vld [vmem:[%s7398_s3 + $0x30] sm:$0x3] }
 0x4e0   : > { %4683 = vmatpush1.bf16.msra.mxu0 %v4677_v44  ;;  %v5038_v61 = vpop.permute.xlu0 %5037  ;;  %v5108_v26 = vpop.permute.xlu1 %5107  ;;  %4714 = vmatprep.mubr.bf16.mxu0 %v6212_v0 }
 0x4e2   : > { %5859 = vmatmul.mubr.msk.bf16.vlgmr.msra.gmra.mrb[136].mxu1 %vm3514_vm9, %v5857_v42 }
 0x4e3   : > { %4787 = vmatprep.mubr.bf16.mxu1 %v6212_v0 }
 0x4e4   : > { %v4814_v63 = vpop.permute.xlu0 %4813  ;;  %v4741_v3 = vpop.permute.xlu1 %4740 }
 0x4e5   : > { %v4818_v4 = vsel %vm4817_vm5, %v7184_v12, %v4814_v63  ;;  %v4819_v7 = vsel %vm4817_vm5, %v4814_v63, %v7206_v30  ;;  %v4744_v8 = vsel %vm1328_vm8, %v7160_v1, %v4741_v3  ;;  %v4745_v48 = vsel %vm1328_vm8, %v4741_v3, %v7182_v51  ;;  %v5863_v12 = vld [vmem:[%s7398_s3 + $0x22] sm:$0x3]  ;;  %v5866_v51 = vld [vmem:[%s7398_s3 + $0x24] sm:$0x3] }
 0x4e6   : > { %v4824_v10 = vsel %vm3518_vm7, %v4818_v4, 0  ;;  %v4750_v11 = vsel %vm3518_vm7, %v4744_v8, 0  ;;  %5862 = vmatmul.mubr.msk.bf16.vlgmr.msra.gmra.mrb[140].mxu0 %vm3514_vm9, %v5860_v41  ;;  %5864 = vmatprep.subr.msk.bf16.mxu1 %vm3518_vm7, %v4745_v48  ;;  %vm4965_vm8 = vcmask 441344   ;;  %v5890_v4 = vld [vmem:[%s7398_s3 + $0x34] sm:$0x3]  ;;  %vm5555_vm5 = vcmask 191648  }
 0x4e7   : > { %5867 = vmatprep.subr.msk.bf16.mxu0 %vm3518_vm7, %v4819_v7  ;;  %4756 = vmatpush1.bf16.msra.mxu1 %v4750_v11 }
 0x4e8   : > { %4830 = vmatpush1.bf16.msra.mxu0 %v4824_v10  ;;  %v5182_v1 = vpop.permute.xlu0 %5181  ;;  %v5112_v47 = vpop.permute.xlu1 %5111  ;;  %4861 = vmatprep.mubr.bf16.mxu0 %v6212_v0 }
 0x4ea   : > { %5865 = vmatmul.mubr.msk.bf16.vlgmr.msra.gmra.mrb[140].mxu1 %vm3514_vm9, %v5863_v12 }
 0x4eb   : > { %4935 = vmatprep.mubr.bf16.mxu1 %v6212_v0 }
 0x4ec   : > { %v4962_v13 = vpop.permute.xlu0 %4961  ;;  %v4888_v9 = vpop.permute.xlu1 %4887 }
 0x4ed   : > { %v4966_v19 = vsel %vm4965_vm8, %v7228_v16, %v4962_v13  ;;  %v4967_v5 = vsel %vm4965_vm8, %v4962_v13, %v4964_v18  ;;  %v4892_v21 = vsel %vm4891_vm2, %v7204_v55, %v4888_v9  ;;  %v4893_v6 = vsel %vm4891_vm2, %v4888_v9, %v7226_v58  ;;  %v5881_v18 = vld [vmem:[%s7398_s3 + $0x2e] sm:$0x3] }
 0x4ee   : > { %v4972_v23 = vsel %vm3518_vm7, %v4966_v19, 0  ;;  %v4898_v2 = vsel %vm3518_vm7, %v4892_v21, 0  ;;  %5868 = vmatmul.mubr.msk.bf16.vlgmr.msra.gmra.mrb[144].mxu0 %vm3514_vm9, %v5866_v51  ;;  %5870 = vmatprep.subr.msk.bf16.mxu1 %vm3518_vm7, %v4893_v6  ;;  %vm5562_vm8 = vcmask 224448   ;;  %vm5569_vm2 = vcmask 257248  }
 0x4ef   : > { %5873 = vmatprep.subr.msk.bf16.mxu0 %vm3518_vm7, %v4967_v5  ;;  %4904 = vmatpush1.bf16.msra.mxu1 %v4898_v2  ;;  %v3609_v45 = vpop.f32.mrb[108].mxu1 }
 0x4f0   : > { %4978 = vmatpush1.bf16.msra.mxu0 %v4972_v23  ;;  %v5186_v30 = vpop.permute.xlu0 %5185  ;;  %v5256_v55 = vpop.permute.xlu1 %5255  ;;  %5009 = vmatprep.mubr.bf16.mxu0 %v6212_v0 }
 0x4f2   : > { %5871 = vmatmul.mubr.msk.bf16.vlgmr.msra.gmra.mrb[144].mxu1 %vm3514_vm9, %v5869_v33 }
 0x4f3   : > { %5083 = vmatprep.mubr.bf16.mxu1 %v6212_v0 }
 0x4f4   : > { %v5110_v24 = vpop.permute.xlu0 %5109  ;;  %v5036_v25 = vpop.permute.xlu1 %5035 }
 0x4f5   : > { %v5114_v27 = vsel %vm5113_vm10, %v5108_v26, %v5110_v24  ;;  %v5115_v29 = vsel %vm5113_vm10, %v5110_v24, %v5112_v47  ;;  %v5040_v31 = vsel %vm5039_vm11, %v7248_v28, %v5036_v25  ;;  %v5041_v14 = vsel %vm5039_vm11, %v5036_v25, %v5038_v61  ;;  %v3611_v28 = vpop.f32.mrb[109].mxu1  ;;  %v5887_v26 = vld [vmem:[%s7398_s3 + $0x32] sm:$0x3] }
 0x4f6   : > { %v5120_v32 = vsel %vm3518_vm7, %v5114_v27, 0  ;;  %v5046_v35 = vsel %vm3518_vm7, %v5040_v31, 0  ;;  %5874 = vmatmul.mubr.msk.bf16.vlgmr.msra.gmra.mrb[148].mxu0 %vm3514_vm9, %v5872_v50  ;;  %5876 = vmatprep.subr.msk.bf16.mxu1 %vm3518_vm7, %v5041_v14  ;;  %v3613_v57 = vpop.f32.mrb[110].mxu1  ;;  %vm5576_vm10 = vcmask 290048   ;;  %vm5583_vm11 = vcmask 322848  }
 0x4f7   : > { %5879 = vmatprep.subr.msk.bf16.mxu0 %vm3518_vm7, %v5115_v29  ;;  %5052 = vmatpush1.bf16.msra.mxu1 %v5046_v35  ;;  %v3614_v53 = vpop.f32.mrb[111].mxu1 }
 0x4f8   : > { %5126 = vmatpush1.bf16.msra.mxu0 %v5120_v32  ;;  %v5330_v58 = vpop.permute.xlu0 %5329  ;;  %v5260_v16 = vpop.permute.xlu1 %5259  ;;  %5157 = vmatprep.mubr.bf16.mxu0 %v6212_v0 }
 0x4fa   : > { %5877 = vmatmul.mubr.msk.bf16.vlgmr.msra.gmra.mrb[148].mxu1 %vm3514_vm9, %v5875_v34 }
 0x4fb   : > { %5231 = vmatprep.mubr.bf16.mxu1 %v6212_v0 }
 0x4fc   : > { %v5258_v36 = vpop.permute.xlu0 %5257  ;;  %v5184_v37 = vpop.permute.xlu1 %5183 }
 0x4fd   : > { %v5262_v38 = vsel %vm5261_vm12, %v5256_v55, %v5258_v36  ;;  %v5263_v39 = vsel %vm5261_vm12, %v5258_v36, %v5260_v16  ;;  %v5188_v40 = vsel %vm5187_vm13, %v5182_v1, %v5184_v37  ;;  %v5189_v43 = vsel %vm5187_vm13, %v5184_v37, %v5186_v30 }
 0x4fe   : > { %v5268_v46 = vsel %vm3518_vm7, %v5262_v38, 0  ;;  %v5194_v17 = vsel %vm3518_vm7, %v5188_v40, 0  ;;  %5880 = vmatmul.mubr.msk.bf16.vlgmr.msra.gmra.mrb[152].mxu0 %vm3514_vm9, %v5878_v54  ;;  %5882 = vmatprep.subr.msk.bf16.mxu1 %vm3518_vm7, %v5189_v43  ;;  %vm5590_vm12 = vcmask 355648   ;;  %vm5597_vm13 = vcmask 388448  }
 0x4ff   : > { %5885 = vmatprep.subr.msk.bf16.mxu0 %vm3518_vm7, %v5263_v39  ;;  %5200 = vmatpush1.bf16.msra.mxu1 %v5194_v17 }
 0x500   : > { %5274 = vmatpush1.bf16.msra.mxu0 %v5268_v46  ;;  %v5334_v49 = vpop.permute.xlu0 %5333  ;;  %v5404_v52 = vpop.permute.xlu1 %5403  ;;  %5305 = vmatprep.mubr.bf16.mxu0 %v6212_v0 }
 0x502   : > { %5883 = vmatmul.mubr.msk.bf16.vlgmr.msra.gmra.mrb[152].mxu1 %vm3514_vm9, %v5881_v18 }
 0x503   : > { %5379 = vmatprep.mubr.bf16.mxu1 %v6212_v0 }
 0x504   : > { %v5406_v59 = vpop.permute.xlu0 %5405  ;;  %v5332_v60 = vpop.permute.xlu1 %5331 }
 0x505   : > { %v5336_v44 = vsel %vm5335_vm14, %v5330_v58, %v5332_v60  ;;  %v5337_v62 = vsel %vm5335_vm14, %v5332_v60, %v5334_v49  ;;  %v5410_v61 = vsel %vm5409_vm15, %v5404_v52, %v5406_v59  ;;  %vm5604_vm14 = vcmask 421248  }
 0x506   : > { %v5342_v42 = vsel %vm3518_vm7, %v5336_v44, 0  ;;  %5886 = vmatmul.mubr.msk.bf16.vlgmr.msra.gmra.mrb[156].mxu0 %vm3514_vm9, %v5884_v56  ;;  %5888 = vmatprep.subr.msk.bf16.mxu1 %vm3518_vm7, %v5337_v62  ;;  %v5416_v3 = vsel %vm3518_vm7, %v5410_v61, 0 }
 0x507   : > { %5348 = vmatpush1.bf16.msra.mxu1 %v5342_v42  ;;  %5453 = vmatprep.mubr.bf16.mxu0 %v6212_v0 }
 0x508   : > { %v5408_v41 = vpop.permute.xlu1 %5407 }
 0x509   : > { %v5411_v63 = vsel %vm5409_vm15, %v5406_v59, %v5408_v41  ;;  %vm5611_vm15 = vcmask 454048  }
 0x50a   : > { %5889 = vmatmul.mubr.msk.bf16.vlgmr.msra.gmra.mrb[156].mxu1 %vm3514_vm9, %v5887_v26  ;;  %5891 = vmatprep.subr.msk.bf16.mxu0 %vm3518_vm7, %v5411_v63 }
 0x50b   : > { %5422 = vmatpush1.bf16.msra.mxu0 %v5416_v3 }
 0x50e   : > { %5892 = vmatmul.mubr.msk.bf16.vlgmr.msra.gmra.mrb[160].mxu0 %vm3514_vm9, %v5890_v4 }
 0x579   : > { %v3559_v7 = vpop.f32.mrb[108].mxu0 }
 0x57a   : > { %v3561_v8 = vpop.f32.mrb[109].mxu0  ;;  %v3610_v48 = vadd.f32 %v3609_v45, %v3559_v7 }
 0x57b   : > { %v3563_v10 = vpop.f32.mrb[110].mxu0  ;;  %v3612_v0 = vadd.f32 %v3611_v28, %v3561_v8 }
 0x57c   : > { %v3564_v11 = vpop.f32.mrb[111].mxu0 }
 0x581   : > { %v3681_v12 = vpop.f32.mrb[112].mxu0 }
 0x582   : > { %v3688_v1 = vadd.f32 %v3681_v12, %v3610_v48  ;;  %v3683_v47 = vpop.f32.mrb[113].mxu0 }
 0x583   : > { %v3689_v51 = vadd.f32 %v3683_v47, %v3612_v0  ;;  %v3685_v13 = vpop.f32.mrb[114].mxu0 }
 0x584   : > { %v3686_v9 = vpop.f32.mrb[115].mxu0 }
 0x585   : > { %v3754_v19 = vpop.f32.mrb[112].mxu1 }
 0x586   : > { %v3761_v5 = vadd.f32 %v3754_v19, %v3688_v1  ;;  %v3756_v21 = vpop.f32.mrb[113].mxu1 }
 0x587   : > { %v3762_v6 = vadd.f32 %v3756_v21, %v3689_v51  ;;  %v3758_v23 = vpop.f32.mrb[114].mxu1 }
 0x588   : > { %v3759_v2 = vpop.f32.mrb[115].mxu1 }
 0x589   : > { %v3828_v33 = vpop.f32.mrb[116].mxu0 }
 0x58a   : > { %v3835_v30 = vadd.f32 %v3828_v33, %v3761_v5  ;;  %v3830_v55 = vpop.f32.mrb[117].mxu0 }
 0x58b   : > { %v3836_v50 = vadd.f32 %v3830_v55, %v3762_v6  ;;  %v3832_v24 = vpop.f32.mrb[118].mxu0 }
 0x58c   : > { %v3833_v25 = vpop.f32.mrb[119].mxu0 }
 0x58d   : > { %v3902_v27 = vpop.f32.mrb[116].mxu1 }
 0x58e   : > { %v3909_v29 = vadd.f32 %v3902_v27, %v3835_v30  ;;  %v3904_v31 = vpop.f32.mrb[117].mxu1 }
 0x58f   : > { %v3910_v14 = vadd.f32 %v3904_v31, %v3836_v50  ;;  %v3906_v32 = vpop.f32.mrb[118].mxu1 }
 0x590   : > { %v3907_v35 = vpop.f32.mrb[119].mxu1 }
 0x591   : > { %v3976_v34 = vpop.f32.mrb[120].mxu0 }
 0x592   : > { %v3983_v58 = vadd.f32 %v3976_v34, %v3909_v29  ;;  %v3978_v16 = vpop.f32.mrb[121].mxu0 }
 0x593   : > { %v3984_v54 = vadd.f32 %v3978_v16, %v3910_v14  ;;  %v3980_v36 = vpop.f32.mrb[122].mxu0 }
 0x594   : > { %v3981_v37 = vpop.f32.mrb[123].mxu0 }
 0x595   : > { %v4050_v38 = vpop.f32.mrb[120].mxu1 }
 0x596   : > { %v4057_v39 = vadd.f32 %v4050_v38, %v3983_v58  ;;  %v4052_v40 = vpop.f32.mrb[121].mxu1 }
 0x597   : > { %v4058_v43 = vadd.f32 %v4052_v40, %v3984_v54  ;;  %v4054_v45 = vpop.f32.mrb[122].mxu1 }
 0x598   : > { %v4055_v46 = vpop.f32.mrb[123].mxu1 }
 0x599   : > { %v4124_v17 = vpop.f32.mrb[124].mxu0 }
 0x59a   : > { %v4131_v28 = vadd.f32 %v4124_v17, %v4057_v39  ;;  %v4126_v18 = vpop.f32.mrb[125].mxu0 }
 0x59b   : > { %v4132_v57 = vadd.f32 %v4126_v18, %v4058_v43  ;;  %v4128_v49 = vpop.f32.mrb[126].mxu0 }
 0x59c   : > { %v4129_v52 = vpop.f32.mrb[127].mxu0 }
 0x59d   : > { %v4198_v53 = vpop.f32.mrb[124].mxu1 }
 0x59e   : > { %v4205_v56 = vadd.f32 %v4198_v53, %v4131_v28  ;;  %v4200_v59 = vpop.f32.mrb[125].mxu1 }
 0x59f   : > { %v4206_v60 = vadd.f32 %v4200_v59, %v4132_v57  ;;  %v4202_v44 = vpop.f32.mrb[126].mxu1 }
 0x5a0   : > { %v4203_v62 = vpop.f32.mrb[127].mxu1 }
 0x5a1   : > { %v4272_v42 = vpop.f32.mrb[128].mxu0 }
 0x5a2   : > { %v4279_v61 = vadd.f32 %v4272_v42, %v4205_v56  ;;  %v4274_v26 = vpop.f32.mrb[129].mxu0 }
 0x5a3   : > { %v4280_v41 = vadd.f32 %v4274_v26, %v4206_v60  ;;  %v4276_v63 = vpop.f32.mrb[130].mxu0 }
 0x5a4   : > { %v4277_v3 = vpop.f32.mrb[131].mxu0 }
 0x5a5   : > { %v4346_v4 = vpop.f32.mrb[128].mxu1 }
 0x5a6   : > { %v4353_v7 = vadd.f32 %v4346_v4, %v4279_v61  ;;  %v4348_v8 = vpop.f32.mrb[129].mxu1 }
 0x5a7   : > { %v4354_v48 = vadd.f32 %v4348_v8, %v4280_v41  ;;  %v4350_v10 = vpop.f32.mrb[130].mxu1 }
 0x5a8   : > { %v4351_v0 = vpop.f32.mrb[131].mxu1 }
 0x5a9   : > { %v4420_v11 = vpop.f32.mrb[132].mxu0 }
 0x5aa   : > { %v4427_v12 = vadd.f32 %v4420_v11, %v4353_v7  ;;  %v4422_v1 = vpop.f32.mrb[133].mxu0 }
 0x5ab   : > { %v4428_v47 = vadd.f32 %v4422_v1, %v4354_v48  ;;  %v4424_v51 = vpop.f32.mrb[134].mxu0 }
 0x5ac   : > { %v4425_v13 = vpop.f32.mrb[135].mxu0 }
 0x5ad   : > { %v4494_v9 = vpop.f32.mrb[132].mxu1 }
 0x5ae   : > { %v4501_v19 = vadd.f32 %v4494_v9, %v4427_v12  ;;  %v4496_v5 = vpop.f32.mrb[133].mxu1 }
 0x5af   : > { %v4502_v21 = vadd.f32 %v4496_v5, %v4428_v47  ;;  %v4498_v6 = vpop.f32.mrb[134].mxu1 }
 0x5b0   : > { %v4499_v23 = vpop.f32.mrb[135].mxu1 }
 0x5b1   : > { %v4568_v2 = vpop.f32.mrb[136].mxu0 }
 0x5b2   : > { %v4575_v33 = vadd.f32 %v4568_v2, %v4501_v19  ;;  %v4570_v30 = vpop.f32.mrb[137].mxu0 }
 0x5b3   : > { %v4576_v55 = vadd.f32 %v4570_v30, %v4502_v21  ;;  %v4572_v50 = vpop.f32.mrb[138].mxu0 }
 0x5b4   : > { %v4573_v24 = vpop.f32.mrb[139].mxu0 }
 0x5b5   : > { %v4642_v25 = vpop.f32.mrb[136].mxu1 }
 0x5b6   : > { %v4649_v27 = vadd.f32 %v4642_v25, %v4575_v33  ;;  %v4644_v29 = vpop.f32.mrb[137].mxu1 }
 0x5b7   : > { %v4650_v31 = vadd.f32 %v4644_v29, %v4576_v55  ;;  %v4646_v14 = vpop.f32.mrb[138].mxu1 }
 0x5b8   : > { %v4647_v32 = vpop.f32.mrb[139].mxu1 }
 0x5b9   : > { %v4716_v35 = vpop.f32.mrb[140].mxu0 }
 0x5ba   : > { %v4723_v34 = vadd.f32 %v4716_v35, %v4649_v27  ;;  %v4718_v58 = vpop.f32.mrb[141].mxu0 }
 0x5bb   : > { %v4724_v16 = vadd.f32 %v4718_v58, %v4650_v31  ;;  %v4720_v54 = vpop.f32.mrb[142].mxu0  ;;  %v5472_v31 = vld [vmem:[%s7401_s6] sm:$0x3] }
 0x5bc   : > { %v4721_v36 = vpop.f32.mrb[143].mxu0  ;;  %v5477_v58 = vrot.slane %v5472_v31, %v3305_v20  ;;  %v5468_v54 = vpop.permute.xlu0 %5467 }
 0x5bd   : > { %v4789_v37 = vpop.f32.mrb[140].mxu1 }
 0x5be   : > { %v4796_v38 = vadd.f32 %v4789_v37, %v4723_v34  ;;  %v4791_v39 = vpop.f32.mrb[141].mxu1  ;;  %v5481_v37 = vrot.slane %v5472_v31, %v3309_v22 }
 0x5bf   : > { %v4797_v40 = vadd.f32 %v4791_v39, %v4724_v16  ;;  %v4793_v43 = vpop.f32.mrb[142].mxu1 }
 0x5c0   : > { %v4794_v45 = vpop.f32.mrb[143].mxu1 }
 0x5c1   : > { %v4863_v46 = vpop.f32.mrb[144].mxu0 }
 0x5c2   : > { %v4870_v17 = vadd.f32 %v4863_v46, %v4796_v38  ;;  %v4865_v28 = vpop.f32.mrb[145].mxu0 }
 0x5c3   : > { %v4871_v18 = vadd.f32 %v4865_v28, %v4797_v40  ;;  %v4867_v57 = vpop.f32.mrb[146].mxu0 }
 0x5c4   : > { %v4868_v49 = vpop.f32.mrb[147].mxu0 }
 0x5c5   : > { %v4937_v52 = vpop.f32.mrb[144].mxu1 }
 0x5c6   : > { %v4944_v53 = vadd.f32 %v4937_v52, %v4870_v17  ;;  %v4939_v56 = vpop.f32.mrb[145].mxu1 }
 0x5c7   : > { %v4945_v59 = vadd.f32 %v4939_v56, %v4871_v18  ;;  %v4941_v60 = vpop.f32.mrb[146].mxu1 }
 0x5c8   : > { %v4942_v44 = vpop.f32.mrb[147].mxu1 }
 0x5c9   : > { %v5011_v62 = vpop.f32.mrb[148].mxu0 }
 0x5ca   : > { %v5018_v42 = vadd.f32 %v5011_v62, %v4944_v53  ;;  %v5013_v61 = vpop.f32.mrb[149].mxu0 }
 0x5cb   : > { %v5019_v26 = vadd.f32 %v5013_v61, %v4945_v59  ;;  %v5015_v41 = vpop.f32.mrb[150].mxu0 }
 0x5cc   : > { %v5016_v63 = vpop.f32.mrb[151].mxu0 }
 0x5cd   : > { %v5085_v3 = vpop.f32.mrb[148].mxu1 }
 0x5ce   : > { %v5092_v4 = vadd.f32 %v5085_v3, %v5018_v42  ;;  %v5087_v7 = vpop.f32.mrb[149].mxu1 }
 0x5cf   : > { %v5093_v8 = vadd.f32 %v5087_v7, %v5019_v26  ;;  %v5089_v48 = vpop.f32.mrb[150].mxu1 }
 0x5d0   : > { %v5090_v10 = vpop.f32.mrb[151].mxu1 }
 0x5d1   : > { %v5159_v0 = vpop.f32.mrb[152].mxu0 }
 0x5d2   : > { %v5166_v11 = vadd.f32 %v5159_v0, %v5092_v4  ;;  %v5161_v12 = vpop.f32.mrb[153].mxu0 }
 0x5d3   : > { %v5167_v1 = vadd.f32 %v5161_v12, %v5093_v8  ;;  %v5163_v47 = vpop.f32.mrb[154].mxu0 }
 0x5d4   : > { %v5164_v51 = vpop.f32.mrb[155].mxu0 }
 0x5d5   : > { %v5233_v13 = vpop.f32.mrb[152].mxu1 }
 0x5d6   : > { %v5240_v9 = vadd.f32 %v5233_v13, %v5166_v11  ;;  %v5235_v19 = vpop.f32.mrb[153].mxu1 }
 0x5d7   : > { %v5241_v5 = vadd.f32 %v5235_v19, %v5167_v1  ;;  %v5237_v21 = vpop.f32.mrb[154].mxu1 }
 0x5d8   : > { %v5238_v6 = vpop.f32.mrb[155].mxu1 }
 0x5d9   : > { %v5307_v23 = vpop.f32.mrb[156].mxu0 }
 0x5da   : > { %v5314_v2 = vadd.f32 %v5307_v23, %v5240_v9  ;;  %v5309_v33 = vpop.f32.mrb[157].mxu0 }
 0x5db   : > { %v5315_v30 = vadd.f32 %v5309_v33, %v5241_v5  ;;  %v5311_v55 = vpop.f32.mrb[158].mxu0 }
 0x5dc   : > { %v5312_v50 = vpop.f32.mrb[159].mxu0 }
 0x5dd   : > { %v5381_v24 = vpop.f32.mrb[156].mxu1 }
 0x5de   : > { %v5388_v25 = vadd.f32 %v5381_v24, %v5314_v2  ;;  %v5383_v27 = vpop.f32.mrb[157].mxu1 }
 0x5df   : > { %v5389_v29 = vadd.f32 %v5383_v27, %v5315_v30  ;;  %v5385_v14 = vpop.f32.mrb[158].mxu1 }
 0x5e0   : > { %v5386_v32 = vpop.f32.mrb[159].mxu1 }
 0x5e1   : > { %v5455_v35 = vpop.f32.mrb[160].mxu0 }
 0x5e2   : > { %v5462_v34 = vadd.f32 %v5455_v35, %v5388_v25  ;;  %v5457_v16 = vpop.f32.mrb[161].mxu0 }
 0x5e3   : > { %v5463_v36 = vadd.f32 %v5457_v16, %v5389_v29  ;;  %v5459_v38 = vpop.f32.mrb[162].mxu0 }
 0x5e4   : > { %v5470_v39 = vadd.f32 %v5468_v54, %v5462_v34  ;;  %v5460_v40 = vpop.f32.mrb[163].mxu0 }
 0x5e5   : > { %v5471_v43 = vadd.f32 %v5468_v54, %v5463_v36 }
 0x5e6   : > { %v5484_v45 = vmul.f32 %v5477_v58, %v5470_v39 }
 0x5e7   : > { %v5485_v46 = vmul.f32 %v5481_v37, %v5471_v43 }
 0x5e8   : > { %v5486_v17 = vsel %vm3321_vm0, %v5484_v45, 0.0 }
 0x5e9   : > { %v5487_v28 = vsel %vm3321_vm0, %v5485_v46, 0.0 }
 0x5ea   : > { %v5488_v18 = vadd.f32 %v5487_v28, %v5486_v17 }
 0x5ec   : > { %5489 = vadd.xlane.f32.xlu1 %v5488_v18 }
 0x679   : > { %v5490_v57 = vpop.xlane.xlu1 %5489 }
 0x67a   : > { %v5491_v20 = vmul.f32 0.015625, %v5490_v57 }
 0x67c   : > { %v5492_v49 = vsub.f32 %v5470_v39, %v5491_v20  ;;  %v5493_v52 = vsub.f32 %v5471_v43, %v5491_v20 }
 0x67e   : > { %v5494_v53 = vmul.f32 %v5492_v49, %v5477_v58  ;;  %v5495_v56 = vmul.f32 %v5493_v52, %v5481_v37 }
 0x680   : > { %v5496_v15 = vmul.f32 %v5494_v53, %v5494_v53  ;;  %v5497_v22 = vmul.f32 %v5495_v56, %v5495_v56 }
 0x682   : > { %v5498_v59 = vsel %vm3321_vm0, %v5496_v15, 0.0  ;;  %v5499_v60 = vsel %vm3321_vm0, %v5497_v22, 0.0  ;;  %vm5520_vm0 = vcmask 27648  }
 0x683   : > { %v5500_v44 = vadd.f32 %v5499_v60, %v5498_v59 }
 0x685   : > { %5501 = vadd.xlane.f32.xlu0 %v5500_v44 }
 0x712   : > { %v5502_v62 = vpop.xlane.xlu0 %5501 }
 0x713   : > { %v5503_v42 = vmul.f32 0.015625, %v5502_v62 }
 0x715   : > { %v5504_v61 = vadd.f32 1e-05, %v5503_v42 }
 0x717   : > { %6200 = vrsqrt.f32 %v5504_v61 }
 0x721   : > { %v6201_v26 = vpop.eup %6200 }
 0x722   : > { %v5506_v41 = vmul.f32 %v6201_v26, %v5494_v53  ;;  %v5507_v63 = vmul.f32 %v6201_v26, %v5495_v56 }
 0x724   : > { %vm5508_vm7 = vcmp.ge.f32.partialorder %v5506_v41, 0.0  ;;  %vm5509_vm9 = vcmp.ge.f32.partialorder %v5507_v63, 0.0  ;;  %v5510_v3 = vmul.f32 0.01, %v5506_v41  ;;  %v5511_v4 = vmul.f32 0.01, %v5507_v63 }
 0x726   : > { %v5512_v7 = vsel %vm5508_vm7, %v5506_v41, %v5510_v3  ;;  %v5513_v8 = vsel %vm5509_vm9, %v5507_v63, %v5511_v4  ;;  %vm5618_vm7 = vcmask 486848   ;;  %vm5627_vm9 = vcmask 506880  }
 0x727   : > { %v5516_v48 = vcombine.low %v5512_v7, %v5513_v8  ;;  %v6203_v33 = vcombine.low %v5513_v8, %v5513_v8 }
 0x729   : > { %5518 = vst [vmem:[#allocation4] sm:$0xff] %v5516_v48 }
 0x730   : > { %v5529_v10 = vld [vmem:[#allocation4] sm:$0xf] }
 0x731   : > { %v5522_v0 = vld [vmem:[#allocation4] sm:$0xf]  ;;  %5531 = vrot.lane.b32.xlu1 %v5529_v10, %s6262_s23 }
 0x732   : > { %5524 = vrot.lane.b32.xlu0 %v5522_v0, %s6240_s22  ;;  %v5536_v11 = vld [vmem:[#allocation4] sm:$0xf]  ;;  %s6265_s22 = smov 104  }
 0x733   : > { %v5543_v12 = vld [vmem:[#allocation4] sm:$0xf] }
 0x734   : > { %v5519_v1 = vld [vmem:[#allocation4] sm:$0xf] }
 0x735   : > { %5538 = vrot.lane.b32.xlu1 %v5536_v11, %s6217_s13  ;;  %5521 = vst.msk [vmem:[%s7370_s28] sm:$0xf] %vm5520_vm0, %v5519_v1  ;;  %v5550_v47 = vld [vmem:[#allocation4] sm:$0xf]  ;;  %s6268_s13 = smov 82   ;;  %vm5630_vm0 = vcmask 519648  }
 0x736   : > { %5545 = vrot.lane.b32.xlu0 %v5543_v12, %s6263_s29  ;;  %v5557_v51 = vld [vmem:[#allocation4] sm:$0xf] }
 0x737   : > { %v5564_v13 = vld [vmem:[#allocation4] sm:$0xf] }
 0x738   : > { %v5571_v9 = vld [vmem:[#allocation4] sm:$0xf] }
 0x739   : > { %5552 = vrot.lane.b32.xlu1 %v5550_v47, %s6264_s25  ;;  %v5578_v19 = vld [vmem:[#allocation4] sm:$0xf] }
 0x73a   : > { %5559 = vrot.lane.b32.xlu0 %v5557_v51, %s6265_s22  ;;  %v5585_v5 = vld [vmem:[#allocation4] sm:$0xf] }
 0x73b   : > { %v5592_v21 = vld [vmem:[#allocation4] sm:$0xf] }
 0x73c   : > { %v5599_v6 = vld [vmem:[#allocation4] sm:$0xf] }
 0x73d   : > { %5566 = vrot.lane.b32.xlu1 %v5564_v13, %s6266_s16  ;;  %v5606_v23 = vld [vmem:[#allocation4] sm:$0xf] }
 0x73e   : > { %5573 = vrot.lane.b32.xlu0 %v5571_v9, %s6267_s8  ;;  %v5613_v2 = vld [vmem:[#allocation4] sm:$0xf] }
 0x741   : > { %5580 = vrot.lane.b32.xlu1 %v5578_v19, %s6250_s14  ;;  %s6271_s14 = smov 62  }
 0x742   : > { %5587 = vrot.lane.b32.xlu0 %v5585_v5, %s6251_s18 }
 0x745   : > { %5594 = vrot.lane.b32.xlu1 %v5592_v21, %s6268_s13 }
 0x746   : > { %5601 = vrot.lane.b32.xlu0 %v5599_v6, %s6224_s20 }
 0x749   : > { %5608 = vrot.lane.b32.xlu1 %v5606_v23, %s6269_s9 }
 0x74a   : > { %5615 = vrot.lane.b32.xlu0 %v5613_v2, %s6270_s10 }
 0x74d   : > { %5623 = vrot.lane.b32.xlu1 %v5516_v48, %s6271_s14 }
 0x74e   : > { %5625 = vrot.lane.b32.xlu0 %v6203_v33, %s6271_s14 }
 0x7a3   : > { %v5532_v30 = vpop.permute.xlu1 %5531 }
 0x7a4   : > { %v5525_v55 = vpop.permute.xlu0 %5524 }
 0x7a5   : > { %5528 = vst.msk [vmem:[%s7370_s28] sm:$0xf] %vm5527_vm4, %v5525_v55 }
 0x7a6   : > { %5535 = vst.msk [vmem:[%s7370_s28] sm:$0xf] %vm5534_vm6, %v5532_v30 }
 0x7a7   : > { %v5539_v50 = vpop.permute.xlu1 %5538 }
 0x7a8   : > { %v5546_v24 = vpop.permute.xlu0 %5545  ;;  %5542 = vst.msk [vmem:[%s7370_s28] sm:$0xf] %vm5541_vm1, %v5539_v50 }
 0x7a9   : > { %5549 = vst.msk [vmem:[%s7370_s28] sm:$0xf] %vm5548_vm3, %v5546_v24 }
 0x7ab   : > { %v5553_v25 = vpop.permute.xlu1 %5552 }
 0x7ac   : > { %v5560_v27 = vpop.permute.xlu0 %5559  ;;  %5556 = vst.msk [vmem:[%s7370_s28] sm:$0xf] %vm5555_vm5, %v5553_v25 }
 0x7ad   : > { %5563 = vst.msk [vmem:[%s7370_s28] sm:$0xf] %vm5562_vm8, %v5560_v27 }
 0x7af   : > { %v5567_v29 = vpop.permute.xlu1 %5566 }
 0x7b0   : > { %v5574_v31 = vpop.permute.xlu0 %5573  ;;  %5570 = vst.msk [vmem:[%s7370_s28] sm:$0xf] %vm5569_vm2, %v5567_v29 }
 0x7b1   : > { %5577 = vst.msk [vmem:[%s7370_s28] sm:$0xf] %vm5576_vm10, %v5574_v31 }
 0x7b3   : > { %v5581_v14 = vpop.permute.xlu1 %5580 }
 0x7b4   : > { %v5588_v32 = vpop.permute.xlu0 %5587  ;;  %5584 = vst.msk [vmem:[%s7370_s28] sm:$0xf] %vm5583_vm11, %v5581_v14 }
 0x7b5   : > { %5591 = vst.msk [vmem:[%s7370_s28] sm:$0xf] %vm5590_vm12, %v5588_v32 }
 0x7b7   : > { %v5595_v35 = vpop.permute.xlu1 %5594 }
 0x7b8   : > { %v5602_v34 = vpop.permute.xlu0 %5601  ;;  %5598 = vst.msk [vmem:[%s7370_s28] sm:$0xf] %vm5597_vm13, %v5595_v35 }
 0x7b9   : > { %5605 = vst.msk [vmem:[%s7370_s28] sm:$0xf] %vm5604_vm14, %v5602_v34 }
 0x7bb   : > { %v5609_v58 = vpop.permute.xlu1 %5608 }
 0x7bc   : > { %v5616_v16 = vpop.permute.xlu0 %5615  ;;  %5612 = vst.msk [vmem:[%s7370_s28] sm:$0xf] %vm5611_vm15, %v5609_v58 }
 0x7bd   : > { %5619 = vst.msk [vmem:[%s7370_s28] sm:$0xf] %vm5618_vm7, %v5616_v16 }
 0x7bf   : > { %v5624_v54 = vpop.permute.xlu1 %5623 }
 0x7c0   : > { %v5626_v36 = vpop.permute.xlu0 %5625 }
 0x7c1   : > { %v5628_v37 = vsel %vm5627_vm9, %v5624_v54, %v5626_v36 }
 0x7c2   : > { %5631 = vst.msk [vmem:[%s7370_s28] sm:$0xf] %vm5630_vm0, %v5628_v37 }
 0x7c3 PF: > { %s17_s24 = sadd.s32 1, %s6210_s24  }
 0x7c4   : > { %p14_p4 = scmp.ge.s32.totalorder %s17_s24, 4  }
 0x7c6   :  { %16 = sbr.rel (!%p14_p4) target bundleno = 1 (0x1), region = 130 }

</bundles_post_ra>
